<compile_context>
chip_gen: v6e
topology: v6e:2x2x1
jax: 0.10.0
libtpu: 0.0.40
codegen_flags: <defaults>
</compile_context>

<pallas_src>
import math
import numpy as np
import jax
import jax.numpy as jnp
from jax.experimental import pallas as pl
from jax.experimental.pallas import tpu as pltpu

HIDDEN = 64
N_HARM = 4
N_DIR = 3
EMBED_DIM = N_DIR * N_HARM * 2  # 24


def _osg_sketch_kernel(feat_ref, phase_ref,
                       w1a_ref, w1b_ref, b1_ref,
                       w2_ref, b2_ref, w3_ref, b3_ref,
                       w4_ref, b4_ref, out_ref):
    # features: (TM, P*C) bf16, plane-mean already folded into w1a (1/P scale)
    x = feat_ref[...]

    # harmonic embedding: phase = [d*f, d*f + pi/2]  ->  sin(phase) = [sin, cos]
    he = jnp.sin(phase_ref[...])                                   # (TM, 24) f32

    # layer 1: features (bf16 MXU path) + harmonics, f32 accumulation
    z1 = (jnp.dot(x, w1a_ref[...], preferred_element_type=jnp.float32)
          + jnp.dot(he, w1b_ref[...], preferred_element_type=jnp.float32)
          + b1_ref[...])
    h1 = jnp.maximum(z1, 0.0)          # sqrt(2) gain folded into w2

    z2 = jnp.dot(h1, w2_ref[...], preferred_element_type=jnp.float32) + b2_ref[...]
    h2 = jnp.maximum(z2, 0.0)          # sqrt(2) gain folded into w3

    z3 = jnp.dot(h2, w3_ref[...], preferred_element_type=jnp.float32) + b3_ref[...]
    h3 = jnp.maximum(z3, 0.0)          # sqrt(2) gain folded into w4

    z4 = jnp.dot(h3, w4_ref[...], preferred_element_type=jnp.float32) + b4_ref[...]

    rgb = jax.nn.sigmoid(z4) * (1.0 + 2.0 * 0.001) - 0.001
    out_ref[...] = rgb.astype(out_ref.dtype)


def init_params(key, n_features, decoder_output_dim, decoder_lr_mul=1.0):
    """Deterministic init matching FullyConnectedLayer.__init__ (randn/lr_mul, zero bias)."""
    in_dim = n_features + EMBED_DIM
    k1, k2, k3, k4 = jax.random.split(key, 4)
    return {
        "w1": jax.random.normal(k1, (HIDDEN, in_dim), jnp.float32),
        "b1": jnp.zeros((HIDDEN,), jnp.float32),
        "w2": jax.random.normal(k2, (HIDDEN, HIDDEN), jnp.float32),
        "b2": jnp.zeros((HIDDEN,), jnp.float32),
        "w3": jax.random.normal(k3, (HIDDEN, HIDDEN), jnp.float32),
        "b3": jnp.zeros((HIDDEN,), jnp.float32),
        "w4": jax.random.normal(k4, (decoder_output_dim, HIDDEN), jnp.float32) / decoder_lr_mul,
        "b4": jnp.zeros((decoder_output_dim,), jnp.float32),
        "lr_mul4": decoder_lr_mul,
    }


def osg_decoder_sketch_forward(sampled_features, ray_directions, params, *, tile_rows=1024):
    # --- glue: layout plumbing + parameter gain folding (plain JAX) ---
    if sampled_features.ndim > 3:
        N, P, M, C = sampled_features.shape
        feat2d = jnp.transpose(sampled_features, (0, 2, 1, 3)).reshape(N * M, P * C)
    else:
        N, M, C = sampled_features.shape
        P = 1
        feat2d = sampled_features.reshape(N * M, C)
    NM = N * M
    PC = P * C

    # bf16 feature stream (dominant HBM traffic); accumulation stays f32 in-kernel.
    feat2d = feat2d.astype(jnp.bfloat16)

    # harmonic phases: [d*f, d*f + pi/2]  so a single sin gives [sin, cos]
    dirs = ray_directions.reshape(NM, N_DIR).astype(jnp.float32)
    freqs = 2.0 ** jnp.arange(N_HARM, dtype=jnp.float32)
    emb = (dirs[:, :, None] * freqs[None, None, :]).reshape(NM, N_DIR * N_HARM)
    phase = jnp.concatenate([emb, emb + jnp.float32(math.pi / 2.0)], axis=1)  # (NM, 24)

    # weight prep: StyleGAN2 gains + plane-mean + relu sqrt(2) gains, all folded here
    lr4 = params["lr_mul4"]
    sqrt2 = math.sqrt(2.0)
    g1 = 1.0 / math.sqrt(C + EMBED_DIM)
    g23 = 1.0 / math.sqrt(HIDDEN)
    g4 = lr4 / math.sqrt(HIDDEN)

    w1 = params["w1"] * g1
    # plane-mean folded: stack the (C,64) feature weight P times, scale by 1/P
    w1a = jnp.tile(jnp.transpose(w1[:, :C]), (P, 1)) / float(P)           # (P*C, 64)
    w1a = w1a.astype(jnp.bfloat16)
    w1b = jnp.transpose(w1[:, C:])                                        # (24, 64) f32
    b1 = params["b1"].reshape(1, HIDDEN)
    w2 = jnp.transpose(params["w2"] * g23) * sqrt2                        # relu gain of layer1
    b2 = params["b2"].reshape(1, HIDDEN)
    w3 = jnp.transpose(params["w3"] * g23) * sqrt2                        # relu gain of layer2
    b3 = params["b3"].reshape(1, HIDDEN)
    w4 = jnp.transpose(params["w4"] * g4) * sqrt2                         # relu gain of layer3
    out_dim = w4.shape[1]
    b4 = (params["b4"] * lr4).reshape(1, out_dim)

    # row tiling: clamp tile to problem size (multiple of 8), pad rows, cdiv grid
    rows_aligned = max(8, ((NM + 7) // 8) * 8)
    tr = max(8, (min(tile_rows, rows_aligned) // 8) * 8)
    grid_len = pl.cdiv(NM, tr)
    rows_pad = grid_len * tr
    if rows_pad != NM:
        feat2d = jnp.pad(feat2d, ((0, rows_pad - NM), (0, 0)))
        phase = jnp.pad(phase, ((0, rows_pad - NM), (0, 0)))

    def full_spec(a):
        nd = a.ndim
        return pl.BlockSpec(a.shape, lambda i, _nd=nd: (0,) * _nd)

    out = pl.pallas_call(
        _osg_sketch_kernel,
        out_shape=jax.ShapeDtypeStruct((rows_pad, out_dim), jnp.float32),
        grid=(grid_len,),
        in_specs=[
            pl.BlockSpec((tr, PC), lambda i: (i, 0)),                     # features (bf16)
            pl.BlockSpec((tr, EMBED_DIM), lambda i: (i, 0)),              # phases  (f32)
            full_spec(w1a), full_spec(w1b), full_spec(b1),
            full_spec(w2), full_spec(b2),
            full_spec(w3), full_spec(b3),
            full_spec(w4), full_spec(b4),
        ],
        out_specs=pl.BlockSpec((tr, out_dim), lambda i: (i, 0)),
        compiler_params=pltpu.CompilerParams(dimension_semantics=("parallel",)),
    )(feat2d, phase, w1a, w1b, b1, w2, b2, w3, b3, w4, b4)

    return {"sketch": out[:NM].reshape(N, M, out_dim)}


def reference_forward(sampled_features, ray_directions, params):
    """Pure-JAX reference mirroring the PyTorch module exactly (all f32)."""
    x = sampled_features
    if x.ndim > 3:
        x = jnp.mean(x, axis=1)
    N, M, C = x.shape
    x = x.reshape(N * M, C)
    d = ray_directions.reshape(N * M, N_DIR)
    freqs = 2.0 ** jnp.arange(N_HARM, dtype=jnp.float32)
    emb = (d[:, :, None] * freqs[None, None, :]).reshape(N * M, N_DIR * N_HARM)
    he = jnp.concatenate([jnp.sin(emb), jnp.cos(emb)], axis=-1)
    x = jnp.concatenate([x, he], axis=1)

    def fc(x, w, b, lr_mul, act):
        w_eff = w * (lr_mul / math.sqrt(w.shape[1]))
        b_eff = b * lr_mul
        y = x @ w_eff.T + b_eff[None, :]
        if act == "relu":
            y = jnp.maximum(y, 0.0) * math.sqrt(2.0)
        return y

    x = fc(x, params["w1"], params["b1"], 1.0, "relu")
    x = fc(x, params["w2"], params["b2"], 1.0, "relu")
    x = fc(x, params["w3"], params["b3"], 1.0, "relu")
    x = fc(x, params["w4"], params["b4"], params["lr_mul4"], "linear")
    x = x.reshape(N, M, -1)
    rgb = jax.nn.sigmoid(x) * (1 + 2 * 0.001) - 0.001
    return {"sketch": rgb}


if __name__ == "__main__":
    key = jax.random.PRNGKey(0)
    k_feat, k_dir, k_param = jax.random.split(key, 3)

    # small shapes consistent with the module: N batches, P triplanes, M rays, C features
    N, P, M, C = 2, 3, 64, 32
    out_dim = 3            # options['decoder_output_dim']
    lr_mul = 1.0           # options['decoder_lr_mul']

    sampled_features = jax.random.normal(k_feat, (N, P, M, C), jnp.float32)
    ray_directions = jax.random.normal(k_dir, (N, M, 3), jnp.float32)
    ray_directions = ray_directions / jnp.linalg.norm(ray_directions, axis=-1, keepdims=True)

    params = init_params(k_param, n_features=C, decoder_output_dim=out_dim,
                         decoder_lr_mul=lr_mul)

    out = osg_decoder_sketch_forward(sampled_features, ray_directions, params)
    jax.block_until_ready(out["sketch"])

    ref = reference_forward(sampled_features, ray_directions, params)
    # Tolerance relaxed vs the pure-f32 version: the feature stream (and its W1
    # slice) travels in bf16; accumulation remains f32.
    np.testing.assert_allclose(np.asarray(out["sketch"]), np.asarray(ref["sketch"]),
                               rtol=2e-2, atol=2e-2)
    print("KERNEL_OK")
</pallas_src>

<mosaic_0001>
module attributes {stable_mosaic.version = 11 : i64} {
  func.func @_osg_sketch_kernel(%arg0: i32, %arg1: memref<128x96xbf16, #tpu.memory_space<vmem>>, %arg2: memref<128x24xf32, #tpu.memory_space<vmem>>, %arg3: memref<96x64xbf16, #tpu.memory_space<vmem>>, %arg4: memref<24x64xf32, #tpu.memory_space<vmem>>, %arg5: memref<1x64xf32, #tpu.memory_space<vmem>>, %arg6: memref<64x64xf32, #tpu.memory_space<vmem>>, %arg7: memref<1x64xf32, #tpu.memory_space<vmem>>, %arg8: memref<64x64xf32, #tpu.memory_space<vmem>>, %arg9: memref<1x64xf32, #tpu.memory_space<vmem>>, %arg10: memref<64x3xf32, #tpu.memory_space<vmem>>, %arg11: memref<1x3xf32, #tpu.memory_space<vmem>>, %arg12: memref<128x3xf32, #tpu.memory_space<vmem>>) attributes {dimension_semantics = [#tpu.dimension_semantics<parallel>], iteration_bounds = array<i64: 1>, scalar_prefetch = 0 : i64, scratch_operands = 0 : i64, tpu.core_type = #tpu.core_type<tc>, window_params = [{transform_indices = @transform_0, window_bounds = array<i64: 128, 96>}, {transform_indices = @transform_1, window_bounds = array<i64: 128, 24>}, {pipeline_mode = #tpu.pipeline_mode<synchronous>, transform_indices = @transform_2, window_bounds = array<i64: 96, 64>}, {pipeline_mode = #tpu.pipeline_mode<synchronous>, transform_indices = @transform_3, window_bounds = array<i64: 24, 64>}, {pipeline_mode = #tpu.pipeline_mode<synchronous>, transform_indices = @transform_4, window_bounds = array<i64: 1, 64>}, {pipeline_mode = #tpu.pipeline_mode<synchronous>, transform_indices = @transform_5, window_bounds = array<i64: 64, 64>}, {pipeline_mode = #tpu.pipeline_mode<synchronous>, transform_indices = @transform_6, window_bounds = array<i64: 1, 64>}, {pipeline_mode = #tpu.pipeline_mode<synchronous>, transform_indices = @transform_7, window_bounds = array<i64: 64, 64>}, {pipeline_mode = #tpu.pipeline_mode<synchronous>, transform_indices = @transform_8, window_bounds = array<i64: 1, 64>}, {pipeline_mode = #tpu.pipeline_mode<synchronous>, transform_indices = @transform_9, window_bounds = array<i64: 64, 3>}, {pipeline_mode = #tpu.pipeline_mode<synchronous>, transform_indices = @transform_10, window_bounds = array<i64: 1, 3>}, {transform_indices = @transform_11, window_bounds = array<i64: 128, 3>}]} {
    %c0 = arith.constant 0 : index
    %c0_0 = arith.constant 0 : index
    %0 = vector.load %arg1[%c0, %c0_0] : memref<128x96xbf16, #tpu.memory_space<vmem>>, vector<128x96xbf16>
    %c0_1 = arith.constant 0 : index
    %c0_2 = arith.constant 0 : index
    %1 = vector.load %arg2[%c0_1, %c0_2] : memref<128x24xf32, #tpu.memory_space<vmem>>, vector<128x24xf32>
    %2 = math.sin %1 : vector<128x24xf32>
    %c0_3 = arith.constant 0 : index
    %c0_4 = arith.constant 0 : index
    %3 = vector.load %arg3[%c0_3, %c0_4] : memref<96x64xbf16, #tpu.memory_space<vmem>>, vector<96x64xbf16>
    %cst = arith.constant dense<0.000000e+00> : vector<128x64xf32>
    %4 = tpu.matmul %0, %3, %cst {dimension_numbers = #tpu.dot_dimension_numbers<[1], [0], [0], [1], [0, 0, 1, 1], [], []>} : vector<128x96xbf16>, vector<96x64xbf16>, vector<128x64xf32> -> vector<128x64xf32>
    %c0_5 = arith.constant 0 : index
    %c0_6 = arith.constant 0 : index
    %5 = vector.load %arg4[%c0_5, %c0_6] : memref<24x64xf32, #tpu.memory_space<vmem>>, vector<24x64xf32>
    %cst_7 = arith.constant dense<0.000000e+00> : vector<128x64xf32>
    %6 = tpu.matmul %2, %5, %cst_7 {dimension_numbers = #tpu.dot_dimension_numbers<[1], [0], [0], [1], [0, 0, 1, 1], [], []>} : vector<128x24xf32>, vector<24x64xf32>, vector<128x64xf32> -> vector<128x64xf32>
    %7 = arith.addf %4, %6 : vector<128x64xf32>
    %c0_8 = arith.constant 0 : index
    %c0_9 = arith.constant 0 : index
    %8 = vector.load %arg5[%c0_8, %c0_9] : memref<1x64xf32, #tpu.memory_space<vmem>>, vector<1x64xf32>
    %9 = vector.broadcast %8 : vector<1x64xf32> to vector<128x64xf32>
    %10 = arith.addf %7, %9 : vector<128x64xf32>
    %cst_10 = arith.constant 0.000000e+00 : f32
    %11 = vector.broadcast %cst_10 : f32 to vector<128x64xf32>
    %12 = arith.maximumf %10, %11 : vector<128x64xf32>
    %c0_11 = arith.constant 0 : index
    %c0_12 = arith.constant 0 : index
    %13 = vector.load %arg6[%c0_11, %c0_12] : memref<64x64xf32, #tpu.memory_space<vmem>>, vector<64x64xf32>
    %cst_13 = arith.constant dense<0.000000e+00> : vector<128x64xf32>
    %14 = tpu.matmul %12, %13, %cst_13 {dimension_numbers = #tpu.dot_dimension_numbers<[1], [0], [0], [1], [0, 0, 1, 1], [], []>} : vector<128x64xf32>, vector<64x64xf32>, vector<128x64xf32> -> vector<128x64xf32>
    %c0_14 = arith.constant 0 : index
    %c0_15 = arith.constant 0 : index
    %15 = vector.load %arg7[%c0_14, %c0_15] : memref<1x64xf32, #tpu.memory_space<vmem>>, vector<1x64xf32>
    %16 = vector.broadcast %15 : vector<1x64xf32> to vector<128x64xf32>
    %17 = arith.addf %14, %16 : vector<128x64xf32>
    %cst_16 = arith.constant 0.000000e+00 : f32
    %18 = vector.broadcast %cst_16 : f32 to vector<128x64xf32>
    %19 = arith.maximumf %17, %18 : vector<128x64xf32>
    %c0_17 = arith.constant 0 : index
    %c0_18 = arith.constant 0 : index
    %20 = vector.load %arg8[%c0_17, %c0_18] : memref<64x64xf32, #tpu.memory_space<vmem>>, vector<64x64xf32>
    %cst_19 = arith.constant dense<0.000000e+00> : vector<128x64xf32>
    %21 = tpu.matmul %19, %20, %cst_19 {dimension_numbers = #tpu.dot_dimension_numbers<[1], [0], [0], [1], [0, 0, 1, 1], [], []>} : vector<128x64xf32>, vector<64x64xf32>, vector<128x64xf32> -> vector<128x64xf32>
    %c0_20 = arith.constant 0 : index
    %c0_21 = arith.constant 0 : index
    %22 = vector.load %arg9[%c0_20, %c0_21] : memref<1x64xf32, #tpu.memory_space<vmem>>, vector<1x64xf32>
    %23 = vector.broadcast %22 : vector<1x64xf32> to vector<128x64xf32>
    %24 = arith.addf %21, %23 : vector<128x64xf32>
    %cst_22 = arith.constant 0.000000e+00 : f32
    %25 = vector.broadcast %cst_22 : f32 to vector<128x64xf32>
    %26 = arith.maximumf %24, %25 : vector<128x64xf32>
    %c0_23 = arith.constant 0 : index
    %c0_24 = arith.constant 0 : index
    %27 = vector.load %arg10[%c0_23, %c0_24] : memref<64x3xf32, #tpu.memory_space<vmem>>, vector<64x3xf32>
    %cst_25 = arith.constant dense<0.000000e+00> : vector<128x3xf32>
    %28 = tpu.matmul %26, %27, %cst_25 {dimension_numbers = #tpu.dot_dimension_numbers<[1], [0], [0], [1], [0, 0, 1, 1], [], []>} : vector<128x64xf32>, vector<64x3xf32>, vector<128x3xf32> -> vector<128x3xf32>
    %c0_26 = arith.constant 0 : index
    %c0_27 = arith.constant 0 : index
    %29 = vector.load %arg11[%c0_26, %c0_27] : memref<1x3xf32, #tpu.memory_space<vmem>>, vector<1x3xf32>
    %30 = vector.broadcast %29 : vector<1x3xf32> to vector<128x3xf32>
    %31 = arith.addf %28, %30 : vector<128x3xf32>
    %32 = arith.negf %31 : vector<128x3xf32>
    %33 = math.exp %32 : vector<128x3xf32>
    %cst_28 = arith.constant 1.000000e+00 : f32
    %34 = vector.broadcast %cst_28 : f32 to vector<128x3xf32>
    %35 = arith.addf %34, %33 : vector<128x3xf32>
    %36 = arith.divf %34, %35 : vector<128x3xf32>
    %cst_29 = arith.constant 1.002000e+00 : f32
    %37 = vector.broadcast %cst_29 : f32 to vector<128x3xf32>
    %38 = arith.mulf %36, %37 : vector<128x3xf32>
    %cst_30 = arith.constant 1.000000e-03 : f32
    %39 = vector.broadcast %cst_30 : f32 to vector<128x3xf32>
    %40 = arith.subf %38, %39 : vector<128x3xf32>
    %c0_31 = arith.constant 0 : index
    %c0_32 = arith.constant 0 : index
    %41 = vector.load %arg12[%c0_31, %c0_32] : memref<128x3xf32, #tpu.memory_space<vmem>>, vector<128x3xf32>
    tpu.vector_store %arg12[%c0_31, %c0_32], %40 {strides = array<i32>} : memref<128x3xf32, #tpu.memory_space<vmem>>, vector<128x3xf32>,
    return
  }
  func.func @transform_0(%arg0: i32) -> (i32, i32) {
    %c0_i32 = arith.constant 0 : i32
    %c0_i32_0 = arith.constant 0 : i32
    return %arg0, %c0_i32 : i32, i32
  }
  func.func @transform_1(%arg0: i32) -> (i32, i32) {
    %c0_i32 = arith.constant 0 : i32
    %c0_i32_0 = arith.constant 0 : i32
    return %arg0, %c0_i32 : i32, i32
  }
  func.func @transform_2(%arg0: i32) -> (i32, i32) {
    %c0_i32 = arith.constant 0 : i32
    %c0_i32_0 = arith.constant 0 : i32
    %c0_i32_1 = arith.constant 0 : i32
    return %c0_i32, %c0_i32_0 : i32, i32
  }
  func.func @transform_3(%arg0: i32) -> (i32, i32) {
    %c0_i32 = arith.constant 0 : i32
    %c0_i32_0 = arith.constant 0 : i32
    %c0_i32_1 = arith.constant 0 : i32
    return %c0_i32, %c0_i32_0 : i32, i32
  }
  func.func @transform_4(%arg0: i32) -> (i32, i32) {
    %c0_i32 = arith.constant 0 : i32
    %c0_i32_0 = arith.constant 0 : i32
    %c0_i32_1 = arith.constant 0 : i32
    return %c0_i32, %c0_i32_0 : i32, i32
  }
  func.func @transform_5(%arg0: i32) -> (i32, i32) {
    %c0_i32 = arith.constant 0 : i32
    %c0_i32_0 = arith.constant 0 : i32
    %c0_i32_1 = arith.constant 0 : i32
    return %c0_i32, %c0_i32_0 : i32, i32
  }
  func.func @transform_6(%arg0: i32) -> (i32, i32) {
    %c0_i32 = arith.constant 0 : i32
    %c0_i32_0 = arith.constant 0 : i32
    %c0_i32_1 = arith.constant 0 : i32
    return %c0_i32, %c0_i32_0 : i32, i32
  }
  func.func @transform_7(%arg0: i32) -> (i32, i32) {
    %c0_i32 = arith.constant 0 : i32
    %c0_i32_0 = arith.constant 0 : i32
    %c0_i32_1 = arith.constant 0 : i32
    return %c0_i32, %c0_i32_0 : i32, i32
  }
  func.func @transform_8(%arg0: i32) -> (i32, i32) {
    %c0_i32 = arith.constant 0 : i32
    %c0_i32_0 = arith.constant 0 : i32
    %c0_i32_1 = arith.constant 0 : i32
    return %c0_i32, %c0_i32_0 : i32, i32
  }
  func.func @transform_9(%arg0: i32) -> (i32, i32) {
    %c0_i32 = arith.constant 0 : i32
    %c0_i32_0 = arith.constant 0 : i32
    %c0_i32_1 = arith.constant 0 : i32
    return %c0_i32, %c0_i32_0 : i32, i32
  }
  func.func @transform_10(%arg0: i32) -> (i32, i32) {
    %c0_i32 = arith.constant 0 : i32
    %c0_i32_0 = arith.constant 0 : i32
    %c0_i32_1 = arith.constant 0 : i32
    return %c0_i32, %c0_i32_0 : i32, i32
  }
  func.func @transform_11(%arg0: i32) -> (i32, i32) {
    %c0_i32 = arith.constant 0 : i32
    %c0_i32_0 = arith.constant 0 : i32
    return %arg0, %c0_i32 : i32, i32
  }
}

</mosaic_0001>

<bundles_post_ra>
// kernel: tpu_custom_call.1
= control target key start
LH: loop header
LB: loop body
LE: loop exit
PB: predicated region body
PF: predicated region fallthrough
CT: control target
= control target key end

     0   :  { %v3674_v29 = vmov 683565275   ;;  %v3675_v31 = vmov 2475754826   ;;  %v3676_v33 = vmov 2131351028   ;;  %s5446_s3 = inlined_call_operand.vmem [shape: f32[24,64], index: 3, kind: input, shape index: {}]   ;;  %s5447_s1 = inlined_call_operand.vmem [shape: f32[128,24], index: 1, kind: input, shape index: {}]   ;;  %s5448_s2 = inlined_call_operand.vmem [shape: bf16[96,64], index: 2, kind: input, shape index: {}]   ;;  %s5449_s0 = inlined_call_operand.vmem [shape: bf16[128,96], index: 0, kind: input, shape index: {}]   ;;  %s5450_s5 = inlined_call_operand.vmem [shape: f32[64,64], index: 5, kind: input, shape index: {}]   ;;  %s5451_s4 = inlined_call_operand.vmem [shape: f32[1,64], index: 4, kind: input, shape index: {}]   ;;  %s5452_s7 = inlined_call_operand.vmem [shape: f32[64,64], index: 7, kind: input, shape index: {}]   ;;  %s5453_s6 = inlined_call_operand.vmem [shape: f32[1,64], index: 6, kind: input, shape index: {}]   ;;  %s5454_s9 = inlined_call_operand.vmem [shape: f32[64,3], index: 9, kind: input, shape index: {}]   ;;  %s5455_s8 = inlined_call_operand.vmem [shape: f32[1,64], index: 8, kind: input, shape index: {}]   ;;  %s5456_s10 = inlined_call_operand.vmem [shape: f32[1,3], index: 10, kind: input, shape index: {}]   ;;  %s5457_s11 = inlined_call_operand.vmem [shape: f32[128,3], index: 11, kind: output, shape index: {}]  }
   0x1   :  { %v1749_v0 = vld [vmem:[%s5446_s3 + $0x10] sm:$0xff]  ;;  %v1748_v1 = vld [vmem:[%s5446_s3 + $0x8] sm:$0xff]  ;;  %v1747_v2 = vld [vmem:[%s5446_s3] sm:$0xff]  ;;  %v3677_v35 = vmov 2102212464  }
   0x2   :  { %3456 = vmatprep.subr.mxu1 %v1749_v0  ;;  %v3752_v3 = vld [vmem:[%s5447_s1 + $0x40] sm:$0xff]  ;;  %3278 = vmatprep.subr.mxu0 %v1749_v0  ;;  %v3759_v6 = vld [vmem:[%s5448_s2 + $0x28] sm:$0xff]   ;;  %v3776_v19 = vld [vmem:[%s5447_s1 + $0x50] sm:$0xff]  ;;  %v3678_v37 = vmov 920167782  }
   0x3   :  { %3459 = vmatpush3.msra.mxu1 %v1749_v0  ;;  %v903_v4 = vand.u32 2147483647, %v3752_v3  ;;  %v906_v5 = vand.u32 2139095040, %v3752_v3  ;;  %3279 = vmatpush3.msra.mxu0 %v1749_v0  ;;  %v3764_v7 = vld [vmem:[%s5447_s1 + $0x48] sm:$0xff]  ;;  %v1111_v26 = vand.u32 2147483647, %v3776_v19 }
   0x4   :  { %3457 = vmatprep.subr.mxu1 %v1748_v1  ;;  %3280 = vmatprep.subr.mxu0 %v1748_v1  ;;  %v1007_v10 = vand.u32 2147483647, %v3764_v7  ;;  %v1010_v11 = vand.u32 2139095040, %v3764_v7  ;;  %v1114_v27 = vand.u32 2139095040, %v3776_v19  ;;  %v3679_v44 = vmov 1326507024  }
   0x5   :  { %3460 = vmatpush3.msra.mxu1 %v1748_v1  ;;  %v907_v8 = vshrl.u32 %v906_v5, 23  ;;  %v910_v9 = vand.u32 8388607, %v903_v4  ;;  %3281 = vmatpush3.msra.mxu0 %v1748_v1  ;;  %vm905_vm13 = vcmp.lt.s32.totalorder %v3752_v3, 0  ;;  %vm3869_vm14 = vcmp.le.f32.partialorder %v903_v4, 0.7853982 }
   0x6   :  { %3458 = vmatprep.subr.mxu1 %v1747_v2  ;;  %3282 = vmatprep.subr.mxu0 %v1747_v2  ;;  %v1011_v13 = vshrl.u32 %v1010_v11, 23  ;;  %v1014_v14 = vand.u32 8388607, %v1007_v10 }
   0x7   :  { %3461 = vmatpush3.msra.mxu1 %v1747_v2  ;;  %v3019_v12 = vadd.s32 4294967169, %v907_v8  ;;  %3283 = vmatpush3.msra.mxu0 %v1747_v2  ;;  %v911_v15 = vor.u32 8388608, %v910_v9 }
   0x8   :  { %3308 = vmatprep.subr.bf16.mxu1 %v3759_v6  ;;  %v3023_v17 = vadd.s32 4294967169, %v1011_v13  ;;  %v1015_v18 = vor.u32 8388608, %v1014_v14 }
   0x9   :  { %v913_v16 = vadd.s32 1, %v3019_v12  ;;  %v3778_v24 = vshll.u32 %v911_v15, 8 }
   0xa   :  { %v1017_v21 = vadd.s32 1, %v3023_v17  ;;  %v3780_v25 = vshll.u32 %v1015_v18, 8 }
   0xb   :  { %vm914_vm0 = vcmp.gt.s32.totalorder %v913_v16, 0 }
   0xc   :  { %v915_v20 = vsel %vm914_vm0, %v913_v16, 0  ;;  %vm1018_vm1 = vcmp.gt.s32.totalorder %v1017_v21, 0 }
   0xd   :  { %v916_v22 = vshrl.u32 %v915_v20, 5  ;;  %v917_v23 = vand.u32 31, %v915_v20  ;;  %v1019_v49 = vsel %vm1018_vm1, %v1017_v21, 0 }
   0xe   :  { %v1020_v52 = vshrl.u32 %v1019_v49, 5  ;;  %v1021_v53 = vand.u32 31, %v1019_v49 }
   0xf   :  { %v918_v28 = vsub.s32 32, %v917_v23  ;;  %v920_v30 = vshll.u32 %v3674_v29, %v917_v23  ;;  %v923_v32 = vshll.u32 %v3675_v31, %v917_v23  ;;  %v926_v34 = vshll.u32 %v3676_v33, %v917_v23 }
  0x10   :  { %v929_v36 = vshll.u32 %v3677_v35, %v917_v23  ;;  %v932_v38 = vshll.u32 %v3678_v37, %v917_v23  ;;  %vm935_vm2 = vcmp.lt.s32.totalorder %v916_v22, 1  ;;  %vm936_vm3 = vcmp.lt.s32.totalorder %v916_v22, 2 }
  0x11   :  { %v919_v39 = vshrl.u32 %v3674_v29, %v918_v28  ;;  %v921_v40 = vshrl.u32 %v3675_v31, %v918_v28  ;;  %v924_v41 = vshrl.u32 %v3676_v33, %v918_v28  ;;  %v927_v42 = vshrl.u32 %v3677_v35, %v918_v28 }
  0x12   :  { %v930_v43 = vshrl.u32 %v3678_v37, %v918_v28  ;;  %v933_v45 = vshrl.u32 %v3679_v44, %v918_v28  ;;  %vm937_vm4 = vcmp.lt.s32.totalorder %v916_v22, 3  ;;  %vm938_vm5 = vcmp.lt.s32.totalorder %v916_v22, 4 }
  0x13   :  { %v922_v46 = vor.u32 %v921_v40, %v920_v30  ;;  %v925_v47 = vor.u32 %v924_v41, %v923_v32  ;;  %v928_v48 = vor.u32 %v927_v42, %v926_v34  ;;  %v1022_v61 = vsub.s32 32, %v1021_v53 }
  0x14   :  { %v931_v50 = vor.u32 %v930_v43, %v929_v36  ;;  %v934_v51 = vor.u32 %v933_v45, %v932_v38  ;;  %v1024_v1 = vshll.u32 %v3674_v29, %v1021_v53  ;;  %v1027_v16 = vshll.u32 %v3675_v31, %v1021_v53  ;;  %v3837_v43 = vld [vmem:[%s5447_s1 + $0x58] sm:$0xff] }
  0x15   :  { %v939_v54 = vsel %vm935_vm2, %v919_v39, %v922_v46  ;;  %v940_v55 = vsel %vm938_vm5, %v928_v48, 2102212464  ;;  %v943_v56 = vsel %vm935_vm2, %v922_v46, %v925_v47  ;;  %v947_v57 = vsel %vm935_vm2, %v925_v47, %v928_v48 }
  0x16   :  { %v941_v58 = vsel %vm937_vm4, %v925_v47, %v940_v55  ;;  %v944_v59 = vsel %vm938_vm5, %v931_v50, 920167782  ;;  %v948_v60 = vsel %vm938_vm5, %v934_v51, 1326507024  ;;  %v1023_v9 = vshrl.u32 %v3674_v29, %v1022_v61 }
  0x17   :  { %v942_v62 = vsel %vm936_vm3, %v939_v54, %v941_v58  ;;  %v945_v63 = vsel %vm937_vm4, %v928_v48, %v944_v59  ;;  %v949_v0 = vsel %vm937_vm4, %v931_v50, %v948_v60  ;;  %v1025_v15 = vshrl.u32 %v3675_v31, %v1022_v61 }
  0x18   :  { %v946_v2 = vsel %vm936_vm3, %v943_v56, %v945_v63  ;;  %v950_v5 = vsel %vm936_vm3, %v947_v57, %v949_v0  ;;  %v958_v8 = vmul.u32 %v3778_v24, %v942_v62  ;;  %v1028_v17 = vshrl.u32 %v3676_v33, %v1022_v61 }
  0x19   :  { %v3809_v11 = vmul.u32.u64.low %v3778_v24, %v950_v5  ;;  %v3810_v12 = vmul.u32.u64.high %v3778_v24, %v950_v5, %v3809_v11  ;;  %v3813_v13 = vmul.u32.u64.low %v3778_v24, %v946_v2  ;;  %v3814_v14 = vmul.u32.u64.high %v3778_v24, %v946_v2, %v3813_v13 }
  0x1a   :  { %v1030_v18 = vshll.u32 %v3676_v33, %v1021_v53  ;;  %v1031_v20 = vshrl.u32 %v3677_v35, %v1022_v61  ;;  %v1033_v21 = vshll.u32 %v3677_v35, %v1021_v53  ;;  %v1034_v22 = vshrl.u32 %v3678_v37, %v1022_v61 }
  0x1b   :  { %v1036_v23 = vshll.u32 %v3678_v37, %v1021_v53  ;;  %v1026_v28 = vor.u32 %v1025_v15, %v1024_v1  ;;  %v1029_v24 = vor.u32 %v1028_v17, %v1027_v16  ;;  %v1037_v30 = vshrl.u32 %v3679_v44, %v1022_v61 }
  0x1c   :  { %vm1039_vm6 = vcmp.lt.s32.totalorder %v1020_v52, 1  ;;  %vm960_vm7 = vc.u32 %v3810_v12, %v3813_v13  ;;  %v961_v32 = vadd.s32 1, %v3814_v14  ;;  %v1032_v34 = vor.u32 %v1031_v20, %v1030_v18 }
  0x1d   :  { %v1115_v36 = vshrl.u32 %v1114_v27, 23  ;;  %v1035_v38 = vor.u32 %v1034_v22, %v1033_v21  ;;  %v1038_v39 = vor.u32 %v1037_v30, %v1036_v23  ;;  %vm1040_vm8 = vcmp.lt.s32.totalorder %v1020_v52, 2 }
  0x1e   :  { %vm1041_vm9 = vcmp.lt.s32.totalorder %v1020_v52, 3  ;;  %v962_v40 = vsel %vm960_vm7, %v961_v32, %v3814_v14  ;;  %vm1042_vm10 = vcmp.lt.s32.totalorder %v1020_v52, 4  ;;  %v1043_v41 = vsel %vm1039_vm6, %v1023_v9, %v1026_v28 }
  0x1f   :  { %v1047_v42 = vsel %vm1039_vm6, %v1026_v28, %v1029_v24  ;;  %v963_v45 = vadd.s32 %v962_v40, %v958_v8  ;;  %v1044_v46 = vsel %vm1042_vm10, %v1032_v34, 2102212464  ;;  %v1048_v47 = vsel %vm1042_vm10, %v1035_v38, 920167782 }
  0x20   :  { %v1051_v27 = vsel %vm1039_vm6, %v1029_v24, %v1032_v34  ;;  %v1045_v48 = vsel %vm1041_vm9, %v1029_v24, %v1044_v46  ;;  %v1049_v49 = vsel %vm1041_vm9, %v1032_v34, %v1048_v47  ;;  %v1052_v50 = vsel %vm1042_vm10, %v1038_v39, 1326507024 }
  0x21   :  { %v3027_v51 = vadd.s32 4294967169, %v1115_v36  ;;  %v964_v53 = vadd.s32 536870912, %v963_v45  ;;  %v1050_v54 = vsel %vm1040_vm8, %v1047_v42, %v1049_v49  ;;  %v1053_v55 = vsel %vm1041_vm9, %v1035_v38, %v1052_v50 }
  0x22   :  { %v1218_v56 = vand.u32 2139095040, %v3837_v43  ;;  %v1046_v57 = vsel %vm1040_vm8, %v1043_v41, %v1045_v48  ;;  %v1054_v58 = vsel %vm1040_vm8, %v1051_v27, %v1053_v55  ;;  %v1118_v5 = vand.u32 8388607, %v1111_v26 }
  0x23   :  { %v3848_v59 = vmul.u32.u64.low %v3780_v25, %v1050_v54  ;;  %v3849_v60 = vmul.u32.u64.high %v3780_v25, %v1050_v54, %v3848_v59  ;;  %v965_v61 = vshrl.u32 %v964_v53, 30  ;;  %v1121_v0 = vadd.s32 1, %v3027_v51 }
  0x24   :  { %v3852_v62 = vmul.u32.u64.low %v3780_v25, %v1054_v58  ;;  %v3853_v63 = vmul.u32.u64.high %v3780_v25, %v1054_v58, %v3852_v62  ;;  %v1062_v2 = vmul.u32 %v3780_v25, %v1046_v57  ;;  %v1219_v52 = vshrl.u32 %v1218_v56, 23 }
  0x25   :  { %v966_v1 = vshll.u32 %v965_v61, 30  ;;  %v1065_v8 = vadd.s32 1, %v3849_v60  ;;  %vm1122_vm11 = vcmp.gt.s32.totalorder %v1121_v0, 0  ;;  %v989_v11 = vsub.s32 4, %v965_v61 }
  0x26   :  { %vm1064_vm12 = vc.u32 %v3853_v63, %v3848_v59  ;;  %v1123_v15 = vsel %vm1122_vm11, %v1121_v0, 0  ;;  %v1119_v18 = vor.u32 8388608, %v1118_v5  ;;  %v1215_v20 = vand.u32 2147483647, %v3837_v43 }
  0x27   :  { %v967_v9 = vsub.s32 %v963_v45, %v966_v1  ;;  %v1066_v14 = vsel %vm1064_vm12, %v1065_v8, %v3849_v60  ;;  %v1125_v25 = vand.u32 31, %v1123_v15  ;;  %v3031_v21 = vadd.s32 4294967169, %v1219_v52 }
  0x28   :  { %v1067_v17 = vadd.s32 %v1066_v14, %v1062_v2  ;;  %v3865_v23 = vsel %vm905_vm13, %v989_v11, %v965_v61  ;;  %v959_v30 = vadd.s32 %v3813_v13, %v3810_v12  ;;  %v3875_v36 = vshrl.u32 %v1123_v15, 5 }
  0x29   :  { %v969_v16 = vsub.s32 0, %v967_v9  ;;  %v1126_v32 = vsub.s32 32, %v1125_v25  ;;  %v3877_v38 = vshll.u32 %v1119_v18, 8  ;;  %v3881_v39 = vand.u32 8388607, %v1215_v20 }
  0x2a   :  { %v1068_v28 = vadd.s32 536870912, %v1067_v17  ;;  %v992_v4 = vsel %vm3869_vm14, 0, %v3865_v23  ;;  %v3887_v40 = vadd.s32 %v3848_v59, %v3853_v63  ;;  %v3891_v12 = vadd.s32 1, %v3031_v21 }
  0x2b   :  { %v3020_v22 = vmin.u32 %v969_v16, %v967_v9  ;;  %v1128_v42 = vshll.u32 %v3674_v29, %v1125_v25  ;;  %v1131_v45 = vshll.u32 %v3675_v31, %v1125_v25  ;;  %v1134_v46 = vshll.u32 %v3676_v33, %v1125_v25 }
  0x2c   :  { %v3889_v41 = vshrl.u32 %v1068_v28, 30  ;;  %v1129_v27 = vshrl.u32 %v3675_v31, %v1126_v32  ;;  %v1132_v48 = vshrl.u32 %v3676_v33, %v1126_v32  ;;  %v1135_v49 = vshrl.u32 %v3677_v35, %v1126_v32 }
  0x2d   :  { %v971_v34 = vclz %v3020_v22  ;;  %v1137_v50 = vshll.u32 %v3677_v35, %v1125_v25  ;;  %v1138_v51 = vshrl.u32 %v3678_v37, %v1126_v32  ;;  %vm1143_vm0 = vcmp.lt.s32.totalorder %v3875_v36, 1 }
  0x2e   :  { %v1070_v47 = vshll.u32 %v3889_v41, 30  ;;  %v1140_v55 = vshll.u32 %v3678_v37, %v1125_v25  ;;  %v1141_v56 = vshrl.u32 %v3679_v44, %v1126_v32  ;;  %v1127_v60 = vshrl.u32 %v3674_v29, %v1126_v32 }
  0x2f   :  { %v3021_v13 = vadd.s32 4294967294, %v971_v34  ;;  %v1130_v62 = vor.u32 %v1129_v27, %v1128_v42  ;;  %v1133_v63 = vor.u32 %v1132_v48, %v1131_v45  ;;  %v1136_v0 = vor.u32 %v1135_v49, %v1134_v46 }
  0x30   :  { %v3903_v54 = vsub.s32 %v1067_v17, %v1070_v47  ;;  %v1139_v5 = vor.u32 %v1138_v51, %v1137_v50  ;;  %vm1146_vm1 = vcmp.lt.s32.totalorder %v3875_v36, 4  ;;  %v1142_v52 = vor.u32 %v1141_v56, %v1140_v55 }
  0x31   :  { %vm3022_vm15 = vcmp.lt.s32.totalorder %v3021_v13, 0  ;;  %v1148_v11 = vsel %vm1146_vm1, %v1136_v0, 2102212464  ;;  %vm1226_vm2 = vcmp.gt.s32.totalorder %v3891_v12, 0  ;;  %vm1009_vm3 = vcmp.lt.s32.totalorder %v3764_v7, 0 }
  0x32   :  { %v974_v53 = vsel %vm3022_vm15, 0, %v3021_v13  ;;  %v1073_v61 = vsub.s32 0, %v3903_v54  ;;  %vm1144_vm4 = vcmp.lt.s32.totalorder %v3875_v36, 2  ;;  %vm1145_vm5 = vcmp.lt.s32.totalorder %v3875_v36, 3 }
  0x33   :  { %v975_v57 = vsub.s32 32, %v974_v53  ;;  %v976_v58 = vshll.u32 %v967_v9, %v974_v53  ;;  %v979_v59 = vsub.s32 4294967266, %v974_v53  ;;  %v1147_v16 = vsel %vm1143_vm0, %v1127_v60, %v1130_v62 }
  0x34   :  { %v3024_v8 = vmin.u32 %v1073_v61, %v3903_v54  ;;  %v1149_v17 = vsel %vm1145_vm5, %v1133_v63, %v1148_v11  ;;  %v1151_v18 = vsel %vm1143_vm0, %v1130_v62, %v1133_v63  ;;  %v1093_v22 = vsub.s32 4, %v3889_v41 }
  0x35   :  { %v977_v1 = vshrl.u32 %v959_v30, %v975_v57  ;;  %v980_v2 = vadd.s32 127, %v979_v59  ;;  %v1152_v28 = vsel %vm1146_vm1, %v1139_v5, 920167782  ;;  %vm3928_vm6 = vcmp.le.f32.partialorder %v1007_v10, 0.7853982 }
  0x36   :  { %v1075_v15 = vclz %v3024_v8  ;;  %v1153_v34 = vsel %vm1145_vm5, %v1136_v0, %v1152_v28  ;;  %v1155_v13 = vsel %vm1143_vm0, %v1133_v63, %v1136_v0  ;;  %v1156_v42 = vsel %vm1146_vm1, %v1142_v52, 1326507024 }
  0x37   :  { %v978_v9 = vor.u32 %v977_v1, %v976_v58  ;;  %v981_v14 = vshll.u32 %v980_v2, 23  ;;  %v1150_v46 = vsel %vm1144_vm4, %v1147_v16, %v1149_v17  ;;  %v1154_v10 = vsel %vm1144_vm4, %v1151_v18, %v1153_v34 }
  0x38   :  { %v3025_v32 = vadd.s32 4294967294, %v1075_v15  ;;  %v1157_v47 = vsel %vm1145_vm5, %v1139_v5, %v1156_v42  ;;  %v3947_v48 = vmul.u32.u64.low %v3877_v38, %v1154_v10  ;;  %v3948_v49 = vmul.u32.u64.high %v3877_v38, %v1154_v10, %v3947_v48 }
  0x39   :  { %v982_v25 = vor.u32 4788187, %v981_v14  ;;  %v985_v21 = vcvt.s32.f32 %v978_v9  ;;  %v1158_v27 = vsel %vm1144_vm4, %v1155_v13, %v1157_v47  ;;  %v1227_v36 = vsel %vm1226_vm2, %v3891_v12, 0  ;;  %v3998_v13 = vld [vmem:[%s5447_s1 + $0x60] sm:$0xff] }
  0x3a   :  { %vm3026_vm7 = vcmp.lt.s32.totalorder %v3025_v32, 0  ;;  %v3952_v53 = vmul.u32.u64.low %v3877_v38, %v1158_v27  ;;  %v3953_v55 = vmul.u32.u64.high %v3877_v38, %v1158_v27, %v3952_v53  ;;  %v996_v60 = vadd.s32 3, %v992_v4 }
  0x3b   :  { %v983_v45 = vand.u32 2147483647, %v982_v25  ;;  %v1078_v51 = vsel %vm3026_vm7, 0, %v3025_v32  ;;  %v1166_v61 = vmul.u32 %v3877_v38, %v1150_v46  ;;  %v1229_v62 = vand.u32 31, %v1227_v36 }
  0x3c   :  { %v1079_v56 = vsub.s32 32, %v1078_v51  ;;  %v1080_v57 = vshll.u32 %v3903_v54, %v1078_v51  ;;  %v1083_v58 = vsub.s32 4294967266, %v1078_v51  ;;  %v1094_v54 = vsel %vm1009_vm3, %v1093_v22, %v3889_v41 }
  0x3d   :  { %v986_v50 = vmul.f32 %v985_v21, %v983_v45  ;;  %v1169_v1 = vadd.s32 1, %v3948_v49  ;;  %vm1168_vm8 = vc.u32 %v3953_v55, %v3947_v48  ;;  %v1223_v23 = vor.u32 8388608, %v3881_v39 }
  0x3e   :  { %v1081_v63 = vshrl.u32 %v3887_v40, %v1079_v56  ;;  %v1084_v0 = vadd.s32 127, %v1083_v58  ;;  %v1230_v4 = vsub.s32 32, %v1229_v62  ;;  %v3978_v41 = vand.u32 3, %v996_v60 }
  0x3f   :  { %v987_v59 = vxor.u32 2147483648, %v986_v50  ;;  %v1170_v5 = vsel %vm1168_vm8, %v1169_v1, %v3948_v49  ;;  %v1096_v8 = vsel %vm3928_vm6, 0, %v1094_v54  ;;  %v3982_v39 = vshrl.u32 %v1227_v36, 5 }
  0x40   :  { %v1082_v40 = vor.u32 %v1081_v63, %v1080_v57  ;;  %v1085_v2 = vshll.u32 %v1084_v0, 23  ;;  %v1171_v52 = vadd.s32 %v1170_v5, %v1166_v61  ;;  %v1232_v24 = vshll.u32 %v3674_v29, %v1229_v62 }
  0x41   :  { %v988_v12 = vsel %vm905_vm13, %v987_v59, %v986_v50  ;;  %v1233_v15 = vshrl.u32 %v3675_v31, %v1230_v4  ;;  %v1235_v16 = vshll.u32 %v3675_v31, %v1229_v62  ;;  %v1236_v18 = vshrl.u32 %v3676_v33, %v1230_v4 }
  0x42   :  { %v991_v38 = vsel %vm3869_vm14, %v3752_v3, %v988_v12  ;;  %v1086_v11 = vor.u32 4788187, %v1085_v2  ;;  %v1089_v9 = vcvt.s32.f32 %v1082_v40  ;;  %v1172_v14 = vadd.s32 536870912, %v1171_v52 }
  0x43   :  { %3546 = vcosq.f32 %v991_v38  ;;  %v1238_v25 = vshll.u32 %v3676_v33, %v1229_v62  ;;  %v1241_v21 = vshll.u32 %v3677_v35, %v1229_v62  ;;  %v1239_v28 = vshrl.u32 %v3677_v35, %v1230_v4 }
  0x44   :  { %3548 = vsinq.f32 %v991_v38  ;;  %v1087_v17 = vand.u32 2147483647, %v1086_v11  ;;  %v3990_v22 = vshrl.u32 %v1172_v14, 30  ;;  %v1242_v32 = vshrl.u32 %v3678_v37, %v1230_v4 }
  0x45   :  { %v1244_v34 = vshll.u32 %v3678_v37, %v1229_v62  ;;  %v1245_v45 = vshrl.u32 %v3679_v44, %v1230_v4  ;;  %v4001_v46 = vshll.u32 %v1223_v23, 8  ;;  %v1319_v10 = vand.u32 2147483647, %v3998_v13 }
  0x46   :  { %v1090_v42 = vmul.f32 %v1089_v9, %v1087_v17  ;;  %vm999_vm9 = vcmp.eq.s32.totalorder %v3978_v41, 0  ;;  %vm1002_vm10 = vcmp.eq.s32.totalorder %v3978_v41, 2  ;;  %v1100_v47 = vadd.s32 3, %v1096_v8 }
  0x47   :  { %v1174_v27 = vshll.u32 %v3990_v22, 30  ;;  %v1234_v49 = vor.u32 %v1233_v15, %v1232_v24  ;;  %vm998_vm11 = vcmp.lt.s32.totalorder %v3978_v41, 2  ;;  %v1237_v51 = vor.u32 %v1236_v18, %v1235_v16 }
  0x48   :  { %v1091_v50 = vxor.u32 2147483648, %v1090_v42  ;;  %v1243_v53 = vor.u32 %v1242_v32, %v1241_v21  ;;  %v1246_v56 = vor.u32 %v1245_v45, %v1244_v34  ;;  %vm995_vm12 = vweird.f32 %v3752_v3 }
  0x49   :  { %v4009_v57 = vsub.s32 %v1171_v52, %v1174_v27  ;;  %v1240_v58 = vor.u32 %v1239_v28, %v1238_v25  ;;  %vm1247_vm13 = vcmp.lt.s32.totalorder %v3982_v39, 1  ;;  %vm1250_vm14 = vcmp.lt.s32.totalorder %v3982_v39, 4 }
  0x4a   :  { %vm1750_vm15 = vcmask 195584   ;;  %v1092_v36 = vsel %vm1009_vm3, %v1091_v50, %v1090_v42  ;;  %v1231_v59 = vshrl.u32 %v3674_v29, %v1230_v4  ;;  %vm1249_vm0 = vcmp.lt.s32.totalorder %v3982_v39, 3 }
  0x4b   :  { %v1322_v60 = vand.u32 2139095040, %v3998_v13  ;;  %v1095_v61 = vsel %vm3928_vm6, %v3764_v7, %v1092_v36  ;;  %vm1113_vm1 = vcmp.lt.s32.totalorder %v3776_v19, 0  ;;  %v1177_v62 = vsub.s32 0, %v4009_v57 }
  0x4c   :  { %vm1248_vm2 = vcmp.lt.s32.totalorder %v3982_v39, 2  ;;  %v1252_v63 = vsel %vm1250_vm14, %v1240_v58, 2102212464  ;;  %3550 = vcosq.f32 %v1095_v61  ;;  %v1255_v0 = vsel %vm1247_vm13, %v1234_v49, %v1237_v51 }
  0x4d   :  { %v1256_v54 = vsel %vm1250_vm14, %v1243_v53, 920167782  ;;  %v1260_v1 = vsel %vm1250_vm14, %v1246_v56, 1326507024  ;;  %3552 = vsinq.f32 %v1095_v61  ;;  %v3028_v12 = vmin.u32 %v1177_v62, %v4009_v57 }
  0x4e   :  { %v1257_v30 = vsel %vm1249_vm0, %v1240_v58, %v1256_v54  ;;  %v1259_v23 = vsel %vm1247_vm13, %v1237_v51, %v1240_v58  ;;  %v4031_v38 = vand.u32 3, %v1100_v47  ;;  %v1251_v40 = vsel %vm1247_vm13, %v1231_v59, %v1234_v49 }
  0x4f   :  { %v1261_v2 = vsel %vm1249_vm0, %v1243_v53, %v1260_v1  ;;  %v1323_v5 = vshrl.u32 %v1322_v60, 23  ;;  %v1179_v11 = vclz %v3028_v12  ;;  %v1253_v9 = vsel %vm1249_vm0, %v1237_v51, %v1252_v63 }
  0x50   :  { %v3547_v4 = vpop.eup %3546  ;;  %v1258_v14 = vsel %vm1248_vm2, %v1255_v0, %v1257_v30  ;;  %v1197_v15 = vsub.s32 4, %v3990_v22  ;;  %v1262_v16 = vsel %vm1248_vm2, %v1259_v23, %v1261_v2  ;;  %v1254_v34 = vsel %vm1248_vm2, %v1251_v40, %v1253_v9 }
  0x51   :  { %v3549_v8 = vpop.eup %3548  ;;  %v1003_v52 = vxor.u32 2147483648, %v3547_v4  ;;  %v3035_v17 = vadd.s32 4294967169, %v1323_v5  ;;  %v3029_v25 = vadd.s32 4294967294, %v1179_v11  ;;  %v1167_v27 = vadd.s32 %v3947_v48, %v3953_v55 }
  0x52   :  { %v1000_v24 = vxor.u32 2147483648, %v3549_v8  ;;  %v4047_v21 = vmul.u32.u64.low %v4001_v46, %v1262_v16  ;;  %v4048_v28 = vmul.u32.u64.high %v4001_v46, %v1262_v16, %v4047_v21  ;;  %vm1099_vm4 = vweird.f32 %v3764_v7  ;;  %v4099_v16 = vld [vmem:[%s5447_s1 + $0x68] sm:$0xff] }
  0x53   :  { %v1004_v18 = vsel %vm1002_vm10, %v1003_v52, %v3549_v8  ;;  %v4055_v42 = vmul.u32.u64.low %v4001_v46, %v1258_v14  ;;  %v4056_v45 = vmul.u32.u64.high %v4001_v46, %v1258_v14, %v4055_v42  ;;  %vm3030_vm3 = vcmp.lt.s32.totalorder %v3029_v25, 0 }
  0x54   :  { %v1001_v32 = vsel %vm999_vm9, %v3547_v4, %v1000_v24  ;;  %v1329_v49 = vadd.s32 1, %v3035_v17  ;;  %v1182_v39 = vsel %vm3030_vm3, 0, %v3029_v25  ;;  %v1198_v51 = vsel %vm1113_vm1, %v1197_v15, %v3990_v22 }
  0x55   :  { %v1005_v47 = vsel %vm998_vm11, %v1001_v32, %v1004_v18  ;;  %v1326_v53 = vand.u32 8388607, %v1319_v10  ;;  %v1183_v41 = vsub.s32 32, %v1182_v39  ;;  %v1184_v48 = vshll.u32 %v4009_v57, %v1182_v39  ;;  %v3533_v18 = vld [vmem:[%s5448_s2 + $0x20] sm:$0xff]  }
  0x56   :  { %v1006_v50 = vsel %vm995_vm12, nan, %v1005_v47  ;;  %v1187_v55 = vsub.s32 4294967266, %v1182_v39  ;;  %v1270_v56 = vmul.u32 %v4001_v46, %v1254_v34  ;;  %vm4076_vm5 = vcmp.le.f32.partialorder %v1111_v26, 0.7853982 }
  0x57   :  { %3296 = vmatprep.mubr.msk.f32.mxu1 %vm1750_vm15, %v1006_v50  ;;  %vm1272_vm6 = vc.u32 %v4048_v28, %v4055_v42  ;;  %v1273_v22 = vadd.s32 1, %v4056_v45  ;;  %vm1330_vm7 = vcmp.gt.s32.totalorder %v1329_v49, 0  ;;  %v1185_v58 = vshrl.u32 %v1167_v27, %v1183_v41 }
  0x58   :  { %v1188_v36 = vadd.s32 127, %v1187_v55  ;;  %v1200_v57 = vsel %vm4076_vm5, 0, %v1198_v51  ;;  %v1331_v59 = vsel %vm1330_vm7, %v1329_v49, 0  ;;  %vm1102_vm8 = vcmp.lt.s32.totalorder %v4031_v38, 2 }
  0x59   :  { %v1274_v46 = vsel %vm1272_vm6, %v1273_v22, %v4056_v45  ;;  %v1327_v26 = vor.u32 8388608, %v1326_v53  ;;  %v1333_v60 = vand.u32 31, %v1331_v59  ;;  %v3551_v61 = vpop.eup %3550  ;;  %vm1106_vm9 = vcmp.eq.s32.totalorder %v4031_v38, 2 }
  0x5a   :  { %v1186_v62 = vor.u32 %v1185_v58, %v1184_v48  ;;  %v1189_v63 = vshll.u32 %v1188_v36, 23  ;;  %v1275_v0 = vadd.s32 %v1274_v46, %v1270_v56  ;;  %v3553_v54 = vpop.eup %3552  ;;  %vm1103_vm10 = vcmp.eq.s32.totalorder %v4031_v38, 0  ;;  %v3534_v48 = vld [vmem:[%s5448_s2 + $0x18] sm:$0xff]  }
  0x5b   :  { %v1107_v1 = vxor.u32 2147483648, %v3551_v61  ;;  %v1204_v12 = vadd.s32 3, %v1200_v57  ;;  %v1334_v30 = vsub.s32 32, %v1333_v60  ;;  %v1104_v23 = vxor.u32 2147483648, %v3553_v54 }
  0x5c   :  { %v1190_v4 = vor.u32 4788187, %v1189_v63  ;;  %v1193_v40 = vcvt.s32.f32 %v1186_v62  ;;  %v1276_v2 = vadd.s32 536870912, %v1275_v0  ;;  %v1336_v8 = vshll.u32 %v3674_v29, %v1333_v60 }
  0x5d   :  { %v1108_v5 = vsel %vm1106_vm9, %v1107_v1, %v3553_v54  ;;  %v1339_v52 = vshll.u32 %v3675_v31, %v1333_v60  ;;  %v4091_v11 = vshll.u32 %v1327_v26, 8  ;;  %v1105_v9 = vsel %vm1103_vm10, %v3551_v61, %v1104_v23  ;;  %v3535_v61 = vld [vmem:[%s5448_s2 + $0x10] sm:$0xff]  }
  0x5e   :  { %v1191_v14 = vand.u32 2147483647, %v1190_v4  ;;  %v4093_v24 = vshrl.u32 %v1276_v2, 30  ;;  %v1337_v15 = vshrl.u32 %v3675_v31, %v1334_v30  ;;  %v1109_v17 = vsel %vm1102_vm8, %v1105_v9, %v1108_v5 }
  0x5f   :  { %v1340_v25 = vshrl.u32 %v3676_v33, %v1334_v30  ;;  %v1342_v21 = vshll.u32 %v3676_v33, %v1333_v60  ;;  %v1343_v32 = vshrl.u32 %v3677_v35, %v1334_v30  ;;  %v1110_v34 = vsel %vm1099_vm4, nan, %v1109_v17  ;;  %v3536_v17 = vld [vmem:[%s5448_s2 + $0x8] sm:$0xff]  }
  0x60   :  { %v1194_v45 = vmul.f32 %v1193_v40, %v1191_v14  ;;  %v1278_v47 = vshll.u32 %v4093_v24, 30  ;;  %v1332_v27 = vshrl.u32 %v1331_v59, 5  ;;  %3297 = vmatmul.mubr.msk.f32.vlgmr.msra.gmra.mxu1 %vm1750_vm15, %v1110_v34  ;;  %v1345_v38 = vshll.u32 %v3677_v35, %v1333_v60 }
  0x61   :  { %v1346_v49 = vshrl.u32 %v3678_v37, %v1334_v30  ;;  %v1348_v50 = vshll.u32 %v3678_v37, %v1333_v60  ;;  %v1426_v39 = vand.u32 2139095040, %v4099_v16  ;;  %3309 = vmatpush3.bf16.msra.mxu1 %v3759_v6  ;;  %v1335_v7 = vshrl.u32 %v3674_v29, %v1334_v30 }
  0x62   :  { %v1195_v51 = vxor.u32 2147483648, %v1194_v45  ;;  %v4118_v53 = vsub.s32 %v1275_v0, %v1278_v47  ;;  %v1349_v41 = vshrl.u32 %v3679_v44, %v1334_v30  ;;  %3310 = vmatprep.subr.bf16.mxu1 %v3533_v18  ;;  %v1338_v55 = vor.u32 %v1337_v15, %v1336_v8 }
  0x63   :  { %v1341_v56 = vor.u32 %v1340_v25, %v1339_v52  ;;  %v1344_v22 = vor.u32 %v1343_v32, %v1342_v21  ;;  %v1347_v58 = vor.u32 %v1346_v49, %v1345_v38  ;;  %vm1351_vm11 = vcmp.lt.s32.totalorder %v1332_v27, 1 }
  0x64   :  { %v1196_v36 = vsel %vm1113_vm1, %v1195_v51, %v1194_v45  ;;  %v1281_v6 = vsub.s32 0, %v4118_v53  ;;  %vm1352_vm12 = vcmp.lt.s32.totalorder %v1332_v27, 2  ;;  %v1350_v59 = vor.u32 %v1349_v41, %v1348_v50 }
  0x65   :  { %v1199_v57 = vsel %vm4076_vm5, %v3776_v19, %v1196_v36  ;;  %vm1353_vm13 = vcmp.lt.s32.totalorder %v1332_v27, 3  ;;  %vm1354_vm14 = vcmp.lt.s32.totalorder %v1332_v27, 4  ;;  %3311 = vmatpush3.bf16.msra.mxu1 %v3533_v18  ;;  %v1355_v26 = vsel %vm1351_vm11, %v1335_v7, %v1338_v55 }
  0x66   :  { %3554 = vcosq.f32 %v1199_v57  ;;  %v3032_v46 = vmin.u32 %v1281_v6, %v4118_v53  ;;  %v1356_v60 = vsel %vm1354_vm14, %v1344_v22, 2102212464  ;;  %3312 = vmatprep.subr.bf16.mxu1 %v3534_v48  ;;  %v1359_v62 = vsel %vm1351_vm11, %v1338_v55, %v1341_v56 }
  0x67   :  { %3556 = vsinq.f32 %v1199_v57  ;;  %v1357_v3 = vsel %vm1353_vm13, %v1341_v56, %v1356_v60  ;;  %v1360_v63 = vsel %vm1354_vm14, %v1347_v58, 920167782  ;;  %v4140_v0 = vand.u32 3, %v1204_v12 }
  0x68   :  { %vm1217_vm0 = vcmp.lt.s32.totalorder %v3837_v43, 0  ;;  %v1283_v54 = vclz %v3032_v46  ;;  %v1423_v1 = vand.u32 2147483647, %v4099_v16  ;;  %v1301_v30 = vsub.s32 4, %v4093_v24 }
  0x69   :  { %v1361_v23 = vsel %vm1353_vm13, %v1344_v22, %v1360_v63  ;;  %v1363_v4 = vsel %vm1351_vm11, %v1341_v56, %v1344_v22  ;;  %v1364_v40 = vsel %vm1354_vm14, %v1350_v59, 1326507024  ;;  %3313 = vmatpush3.bf16.msra.mxu1 %v3534_v48  ;;  %v1358_v5 = vsel %vm1352_vm12, %v1355_v26, %v1357_v3  ;;  %v4192_v26 = vld [vmem:[%s5447_s1] sm:$0xff] }
  0x6a   :  { %v3033_v2 = vadd.s32 4294967294, %v1283_v54  ;;  %v1362_v12 = vsel %vm1352_vm12, %v1359_v62, %v1361_v23  ;;  %v1365_v8 = vsel %vm1353_vm13, %v1347_v58, %v1364_v40  ;;  %3314 = vmatprep.subr.bf16.mxu1 %v3535_v61  ;;  %v1427_v15 = vshrl.u32 %v1426_v39, 23 }
  0x6b   :  { %v1366_v52 = vsel %vm1352_vm12, %v1363_v4, %v1365_v8  ;;  %v4153_v9 = vmul.u32.u64.low %v4091_v11, %v1362_v12  ;;  %v4154_v14 = vmul.u32.u64.high %v4091_v11, %v1362_v12, %v4153_v9  ;;  %v1271_v18 = vadd.s32 %v4055_v42, %v4048_v28 }
  0x6c   :  { %vm3034_vm1 = vcmp.lt.s32.totalorder %v3033_v2, 0  ;;  %v4162_v25 = vmul.u32.u64.low %v4091_v11, %v1366_v52  ;;  %v4163_v21 = vmul.u32.u64.high %v4091_v11, %v1366_v52, %v4162_v25  ;;  %v1302_v34 = vsel %vm1217_vm0, %v1301_v30, %v4093_v24 }
  0x6d   :  { %v1286_v32 = vsel %vm3034_vm1, 0, %v3033_v2  ;;  %v3039_v45 = vadd.s32 4294967169, %v1427_v15  ;;  %v1430_v47 = vand.u32 8388607, %v1423_v1  ;;  %v1374_v28 = vmul.u32 %v4091_v11, %v1358_v5  ;;  %3315 = vmatpush3.bf16.msra.mxu1 %v3535_v61 }
  0x6e   :  { %v1287_v27 = vsub.s32 32, %v1286_v32  ;;  %v1288_v38 = vshll.u32 %v4118_v53, %v1286_v32  ;;  %v1291_v49 = vsub.s32 4294967266, %v1286_v32  ;;  %vm1203_vm2 = vweird.f32 %v3776_v19  ;;  %3316 = vmatprep.subr.bf16.mxu1 %v3536_v17 }
  0x6f   :  { %vm4175_vm3 = vcmp.le.f32.partialorder %v1215_v20, 0.7853982  ;;  %v1377_v24 = vadd.s32 1, %v4154_v14  ;;  %v1433_v50 = vadd.s32 1, %v3039_v45  ;;  %vm1376_vm4 = vc.u32 %v4163_v21, %v4153_v9 }
  0x70   :  { %v1289_v39 = vshrl.u32 %v1271_v18, %v1287_v27  ;;  %v1292_v51 = vadd.s32 127, %v1291_v49  ;;  %v1304_v53 = vsel %vm4175_vm3, 0, %v1302_v34  ;;  %vm1206_vm5 = vcmp.lt.s32.totalorder %v4140_v0, 2 }
  0x71   :  { %v1378_v11 = vsel %vm1376_vm4, %v1377_v24, %v4154_v14  ;;  %v1431_v7 = vor.u32 8388608, %v1430_v47  ;;  %vm1434_vm6 = vcmp.gt.s32.totalorder %v1433_v50, 0  ;;  %3317 = vmatpush3.bf16.msra.mxu1 %v3536_v17  ;;  %vm1207_vm7 = vcmp.eq.s32.totalorder %v4140_v0, 0 }
  0x72   :  { %v1290_v20 = vor.u32 %v1289_v39, %v1288_v38  ;;  %v1293_v41 = vshll.u32 %v1292_v51, 23  ;;  %v1379_v48 = vadd.s32 %v1378_v11, %v1374_v28  ;;  %v1435_v55 = vsel %vm1434_vm6, %v1433_v50, 0 }
  0x73   :  { %v3555_v56 = vpop.eup %3554  ;;  %vm1210_vm8 = vcmp.eq.s32.totalorder %v4140_v0, 2  ;;  %v4187_v22 = vadd.s32 3, %v1304_v53  ;;  %v1437_v58 = vand.u32 31, %v1435_v55  ;;  %v4195_v61 = vadd.s32 %v4153_v9, %v4163_v21 }
  0x74   :  { %v3557_v36 = vpop.eup %3556  ;;  %v1211_v6 = vxor.u32 2147483648, %v3555_v56  ;;  %v1294_v57 = vor.u32 4788187, %v1293_v41  ;;  %v1297_v59 = vcvt.s32.f32 %v1290_v20  ;;  %v1380_v46 = vadd.s32 536870912, %v1379_v48 }
  0x75   :  { %v1208_v60 = vxor.u32 2147483648, %v3557_v36  ;;  %v1438_v3 = vsub.s32 32, %v1437_v58  ;;  %v71_v62 = vand.u32 2147483647, %v4192_v26  ;;  %v4198_v23 = vshll.u32 %v1431_v7, 8 }
  0x76   :  { %v1212_v63 = vsel %vm1210_vm8, %v1211_v6, %v3557_v36  ;;  %v1295_v54 = vand.u32 2147483647, %v1294_v57  ;;  %v1381_v30 = vshrl.u32 %v1380_v46, 30  ;;  %vm1321_vm9 = vcmp.lt.s32.totalorder %v3998_v13, 0 }
  0x77   :  { %v1209_v4 = vsel %vm1207_vm7, %v3555_v56, %v1208_v60  ;;  %v1440_v40 = vshll.u32 %v3674_v29, %v1437_v58  ;;  %v1443_v2 = vshll.u32 %v3675_v31, %v1437_v58  ;;  %v74_v5 = vand.u32 2139095040, %v4192_v26 }
  0x78   :  { %v1213_v12 = vsel %vm1206_vm5, %v1209_v4, %v1212_v63  ;;  %v1298_v8 = vmul.f32 %v1297_v59, %v1295_v54  ;;  %v1382_v52 = vshll.u32 %v1381_v30, 30  ;;  %v1441_v9 = vshrl.u32 %v3675_v31, %v1438_v3 }
  0x79   :  { %v1214_v14 = vsel %vm1203_vm2, nan, %v1213_v12  ;;  %v1444_v15 = vshrl.u32 %v3676_v33, %v1438_v3  ;;  %v1446_v17 = vshll.u32 %v3676_v33, %v1437_v58  ;;  %v1447_v18 = vshrl.u32 %v3677_v35, %v1438_v3 }
  0x7a   :  { %3299 = vmatprep.mubr.msk.f32.mxu1 %vm1750_vm15, %v1214_v14  ;;  %v1299_v25 = vxor.u32 2147483648, %v1298_v8  ;;  %v4215_v21 = vsub.s32 %v1379_v48, %v1382_v52  ;;  %v1436_v0 = vshrl.u32 %v1435_v55, 5  ;;  %v1449_v32 = vshll.u32 %v3677_v35, %v1437_v58 }
  0x7b   :  { %v1405_v34 = vsub.s32 4, %v1381_v30  ;;  %v1439_v45 = vshrl.u32 %v3674_v29, %v1438_v3  ;;  %v1450_v19 = vshrl.u32 %v3678_v37, %v1438_v3  ;;  %v1452_v47 = vshll.u32 %v3678_v37, %v1437_v58 }
  0x7c   :  { %v1300_v27 = vsel %vm1217_vm0, %v1299_v25, %v1298_v8  ;;  %v1385_v38 = vsub.s32 0, %v4215_v21  ;;  %v1442_v49 = vor.u32 %v1441_v9, %v1440_v40  ;;  %v1453_v28 = vshrl.u32 %v3679_v44, %v1438_v3 }
  0x7d   :  { %v1303_v24 = vsel %vm4175_vm3, %v3837_v43, %v1300_v27  ;;  %vm4230_vm10 = vcmp.le.f32.partialorder %v1319_v10, 0.7853982  ;;  %v1445_v39 = vor.u32 %v1444_v15, %v1443_v2  ;;  %v1448_v51 = vor.u32 %v1447_v18, %v1446_v17 }
  0x7e   :  { %v1451_v53 = vor.u32 %v1450_v19, %v1449_v32  ;;  %3558 = vcosq.f32 %v1303_v24  ;;  %v3036_v11 = vmin.u32 %v1385_v38, %v4215_v21  ;;  %v1454_v7 = vor.u32 %v1453_v28, %v1452_v47 }
  0x7f   :  { %vm1455_vm11 = vcmp.lt.s32.totalorder %v1436_v0, 1  ;;  %3560 = vsinq.f32 %v1303_v24  ;;  %vm1457_vm12 = vcmp.lt.s32.totalorder %v1436_v0, 3  ;;  %vm1458_vm13 = vcmp.lt.s32.totalorder %v1436_v0, 4 }
  0x80   :  { %v75_v20 = vshrl.u32 %v74_v5, 23  ;;  %v1387_v42 = vclz %v3036_v11  ;;  %v1406_v41 = vsel %vm1321_vm9, %v1405_v34, %v1381_v30  ;;  %vm1456_vm14 = vcmp.lt.s32.totalorder %v1436_v0, 2 }
  0x81   :  { %v1459_v10 = vsel %vm1455_vm11, %v1439_v45, %v1442_v49  ;;  %v1460_v48 = vsel %vm1458_vm13, %v1448_v51, 2102212464  ;;  %v1463_v55 = vsel %vm1455_vm11, %v1442_v49, %v1445_v39  ;;  %v1464_v56 = vsel %vm1458_vm13, %v1451_v53, 920167782 }
  0x82   :  { %v1467_v58 = vsel %vm1455_vm11, %v1445_v39, %v1448_v51  ;;  %v3037_v36 = vadd.s32 4294967294, %v1387_v42  ;;  %v1461_v6 = vsel %vm1457_vm12, %v1445_v39, %v1460_v48  ;;  %v1465_v57 = vsel %vm1457_vm12, %v1448_v51, %v1464_v56 }
  0x83   :  { %v1468_v59 = vsel %vm1458_vm13, %v1454_v7, 1326507024  ;;  %v1462_v46 = vsel %vm1456_vm14, %v1459_v10, %v1461_v6  ;;  %v1466_v60 = vsel %vm1456_vm14, %v1463_v55, %v1465_v57  ;;  %v2987_v63 = vadd.s32 4294967169, %v75_v20 }
  0x84   :  { %v1469_v3 = vsel %vm1457_vm12, %v1451_v53, %v1468_v59  ;;  %vm3038_vm0 = vcmp.lt.s32.totalorder %v3037_v36, 0  ;;  %v4241_v30 = vmul.u32.u64.low %v4198_v23, %v1466_v60  ;;  %v4242_v4 = vmul.u32.u64.high %v4198_v23, %v1466_v60, %v4241_v30 }
  0x85   :  { %v1470_v54 = vsel %vm1456_vm14, %v1467_v58, %v1469_v3  ;;  %v1390_v40 = vsel %vm3038_vm0, 0, %v3037_v36  ;;  %v78_v12 = vand.u32 8388607, %v71_v62  ;;  %v1408_v14 = vsel %vm4230_vm10, 0, %v1406_v41 }
  0x86   :  { %v4246_v2 = vmul.u32.u64.low %v4198_v23, %v1470_v54  ;;  %v4247_v5 = vmul.u32.u64.high %v4198_v23, %v1470_v54, %v4246_v2  ;;  %v1391_v8 = vsub.s32 32, %v1390_v40  ;;  %v1392_v52 = vshll.u32 %v4215_v21, %v1390_v40 }
  0x87   :  { %v1395_v9 = vsub.s32 4294967266, %v1390_v40  ;;  %v1309_v15 = vand.u32 3, %v4187_v22  ;;  %v1478_v17 = vmul.u32 %v4198_v23, %v1462_v46  ;;  %v81_v18 = vadd.s32 1, %v2987_v63 }
  0x88   :  { %v1393_v25 = vshrl.u32 %v4195_v61, %v1391_v8  ;;  %v1481_v32 = vadd.s32 1, %v4242_v4  ;;  %v1412_v34 = vadd.s32 3, %v1408_v14  ;;  %vm1480_vm1 = vc.u32 %v4247_v5, %v4241_v30 }
  0x89   :  { %v1396_v0 = vadd.s32 127, %v1395_v9  ;;  %v79_v45 = vor.u32 8388608, %v78_v12  ;;  %vm82_vm2 = vcmp.gt.s32.totalorder %v81_v18, 0  ;;  %vm1307_vm3 = vweird.f32 %v3837_v43 }
  0x8a   :  { %v1394_v21 = vor.u32 %v1393_v25, %v1392_v52  ;;  %v1482_v47 = vsel %vm1480_vm1, %v1481_v32, %v4242_v4  ;;  %v83_v27 = vsel %vm82_vm2, %v81_v18, 0  ;;  %vm1314_vm4 = vcmp.eq.s32.totalorder %v1309_v15, 2  ;;  %v4292_v32 = vld [vmem:[%s5447_s1 + $0x70] sm:$0xff] }
  0x8b   :  { %v1397_v19 = vshll.u32 %v1396_v0, 23  ;;  %v3559_v22 = vpop.eup %3558  ;;  %v1483_v23 = vadd.s32 %v1482_v47, %v1478_v17  ;;  %v85_v61 = vand.u32 31, %v83_v27  ;;  %vm1311_vm5 = vcmp.eq.s32.totalorder %v1309_v15, 0 }
  0x8c   :  { %v3561_v38 = vpop.eup %3560  ;;  %v1315_v49 = vxor.u32 2147483648, %v3559_v22  ;;  %v1401_v24 = vcvt.s32.f32 %v1394_v21  ;;  %vm1310_vm6 = vcmp.lt.s32.totalorder %v1309_v15, 2  ;;  %v4262_v20 = vand.u32 3, %v1412_v34 }
  0x8d   :  { %v1398_v28 = vor.u32 4788187, %v1397_v19  ;;  %v1312_v39 = vxor.u32 2147483648, %v3561_v38  ;;  %v1484_v51 = vadd.s32 536870912, %v1483_v23  ;;  %v86_v53 = vsub.s32 32, %v85_v61 }
  0x8e   :  { %v1316_v11 = vsel %vm1314_vm4, %v1315_v49, %v3561_v38  ;;  %v4264_v42 = vshll.u32 %v79_v45, 8  ;;  %v88_v48 = vshll.u32 %v3674_v29, %v85_v61  ;;  %v91_v55 = vshll.u32 %v3675_v31, %v85_v61 }
  0x8f   :  { %v1399_v7 = vand.u32 2147483647, %v1398_v28  ;;  %v1313_v41 = vsel %vm1311_vm5, %v3559_v22, %v1312_v39  ;;  %v1485_v10 = vshrl.u32 %v1484_v51, 30  ;;  %v89_v36 = vshrl.u32 %v3675_v31, %v86_v53 }
  0x90   :  { %v1317_v56 = vsel %vm1310_vm6, %v1313_v41, %v1316_v11  ;;  %v92_v6 = vshrl.u32 %v3676_v33, %v86_v53  ;;  %v84_v46 = vshrl.u32 %v83_v27, 5  ;;  %v94_v60 = vshll.u32 %v3676_v33, %v85_v61 }
  0x91   :  { %v1402_v58 = vmul.f32 %v1401_v24, %v1399_v7  ;;  %v1318_v57 = vsel %vm1307_vm3, nan, %v1317_v56  ;;  %v1486_v59 = vshll.u32 %v1485_v10, 30  ;;  %v87_v63 = vshrl.u32 %v3674_v29, %v86_v53 }
  0x92   :  { %3300 = vmatmul.mubr.msk.f32.gmra.mxu1 %vm1750_vm15, %v1318_v57  ;;  %v95_v54 = vshrl.u32 %v3677_v35, %v86_v53  ;;  %v97_v4 = vshll.u32 %v3677_v35, %v85_v61  ;;  %vm1425_vm7 = vcmp.lt.s32.totalorder %v4099_v16, 0  ;;  %v1509_v2 = vsub.s32 4, %v1485_v10 }
  0x93   :  { %v1403_v3 = vxor.u32 2147483648, %v1402_v58  ;;  %v4278_v40 = vsub.s32 %v1483_v23, %v1486_v59  ;;  %v98_v43 = vshrl.u32 %v3678_v37, %v86_v53  ;;  %v100_v12 = vshll.u32 %v3678_v37, %v85_v61 }
  0x94   :  { %v90_v52 = vor.u32 %v89_v36, %v88_v48  ;;  %v93_v9 = vor.u32 %v92_v6, %v91_v55  ;;  %v101_v14 = vshrl.u32 %v3679_v44, %v86_v53  ;;  %vm103_vm8 = vcmp.lt.s32.totalorder %v84_v46, 1 }
  0x95   :  { %v1404_v8 = vsel %vm1321_vm9, %v1403_v3, %v1402_v58  ;;  %v1489_v17 = vsub.s32 0, %v4278_v40  ;;  %v99_v18 = vor.u32 %v98_v43, %v97_v4  ;;  %v96_v25 = vor.u32 %v95_v54, %v94_v60 }
  0x96   :  { %v1407_v15 = vsel %vm4230_vm10, %v3998_v13, %v1404_v8  ;;  %v102_v0 = vor.u32 %v101_v14, %v100_v12  ;;  %vm104_vm11 = vcmp.lt.s32.totalorder %v84_v46, 2  ;;  %vm105_vm9 = vcmp.lt.s32.totalorder %v84_v46, 3 }
  0x97   :  { %3562 = vcosq.f32 %v1407_v15  ;;  %v3040_v34 = vmin.u32 %v1489_v17, %v4278_v40  ;;  %vm106_vm12 = vcmp.lt.s32.totalorder %v84_v46, 4  ;;  %v107_v50 = vsel %vm103_vm8, %v87_v63, %v90_v52 }
  0x98   :  { %3564 = vsinq.f32 %v1407_v15  ;;  %v108_v45 = vsel %vm106_vm12, %v96_v25, 2102212464  ;;  %v111_v21 = vsel %vm103_vm8, %v90_v52, %v93_v9  ;;  %v112_v19 = vsel %vm106_vm12, %v99_v18, 920167782 }
  0x99   :  { %v1479_v47 = vadd.s32 %v4241_v30, %v4247_v5  ;;  %v1491_v27 = vclz %v3040_v34  ;;  %v1527_v22 = vand.u32 2147483647, %v4292_v32  ;;  %v1530_v23 = vand.u32 2139095040, %v4292_v32 }
  0x9a   :  { %v109_v61 = vsel %vm105_vm9, %v93_v9, %v108_v45  ;;  %v113_v38 = vsel %vm105_vm9, %v96_v25, %v112_v19  ;;  %v115_v49 = vsel %vm103_vm8, %v93_v9, %v96_v25  ;;  %v116_v28 = vsel %vm106_vm12, %v102_v0, 1326507024 }
  0x9b   :  { %v3041_v24 = vadd.s32 4294967294, %v1491_v27  ;;  %v110_v39 = vsel %vm104_vm11, %v107_v50, %v109_v61  ;;  %v114_v51 = vsel %vm104_vm11, %v111_v21, %v113_v38  ;;  %v117_v53 = vsel %vm105_vm9, %v99_v18, %v116_v28  ;;  %v3537_v27 = vld [vmem:[%s5448_s2] sm:$0xff]  }
  0x9c   :  { %v1510_v30 = vsel %vm1425_vm7, %v1509_v2, %v1485_v10  ;;  %v118_v5 = vsel %vm104_vm11, %v115_v49, %v117_v53  ;;  %v4311_v11 = vmul.u32.u64.low %v4264_v42, %v114_v51  ;;  %v4312_v7 = vmul.u32.u64.high %v4264_v42, %v114_v51, %v4311_v11  ;;  %3318 = vmatprep.subr.bf16.mxu1 %v3537_v27 }
  0x9d   :  { %vm3042_vm10 = vcmp.lt.s32.totalorder %v3041_v24, 0  ;;  %v4315_v41 = vmul.u32.u64.low %v4264_v42, %v118_v5  ;;  %v4316_v48 = vmul.u32.u64.high %v4264_v42, %v118_v5, %v4315_v41  ;;  %v1531_v55 = vshrl.u32 %v1530_v23, 23  ;;  %3319 = vmatpush3.bf16.msra.mxu1 %v3537_v27 }
  0x9e   :  { %vm4320_vm13 = vcmp.le.f32.partialorder %v1423_v1, 0.7853982  ;;  %v1494_v58 = vsel %vm3042_vm10, 0, %v3041_v24  ;;  %v126_v10 = vmul.u32 %v4264_v42, %v110_v39  ;;  %v129_v60 = vadd.s32 1, %v4312_v7  ;;  %v4336_v42 = vld [vmem:[%s5447_s1 + $0x8] sm:$0xff] }
  0x9f   :  { %v1495_v36 = vsub.s32 32, %v1494_v58  ;;  %v1496_v6 = vshll.u32 %v4278_v40, %v1494_v58  ;;  %v1499_v57 = vsub.s32 4294967266, %v1494_v58  ;;  %v3043_v59 = vadd.s32 4294967169, %v1531_v55 }
  0xa0   :  { %v1512_v46 = vsel %vm4320_vm13, 0, %v1510_v30  ;;  %v1534_v3 = vand.u32 8388607, %v1527_v22  ;;  %vm1414_vm14 = vcmp.lt.s32.totalorder %v4262_v20, 2  ;;  %vm128_vm0 = vc.u32 %v4316_v48, %v4311_v11 }
  0xa1   :  { %v1497_v1 = vshrl.u32 %v1479_v47, %v1495_v36  ;;  %v1500_v63 = vadd.s32 127, %v1499_v57  ;;  %vm1415_vm1 = vcmp.eq.s32.totalorder %v4262_v20, 0  ;;  %vm1418_vm2 = vcmp.eq.s32.totalorder %v4262_v20, 2 }
  0xa2   :  { %v130_v54 = vsel %vm128_vm0, %v129_v60, %v4312_v7  ;;  %v1537_v4 = vadd.s32 1, %v3043_v59  ;;  %v1516_v12 = vadd.s32 3, %v1512_v46  ;;  %v1535_v14 = vor.u32 8388608, %v1534_v3 }
  0xa3   :  { %v1498_v2 = vor.u32 %v1497_v1, %v1496_v6  ;;  %v1501_v43 = vshll.u32 %v1500_v63, 23  ;;  %v131_v8 = vadd.s32 %v130_v54, %v126_v10  ;;  %v178_v15 = vand.u32 2139095040, %v4336_v42 }
  0xa4   :  { %v3563_v40 = vpop.eup %3562  ;;  %vm1538_vm3 = vcmp.gt.s32.totalorder %v1537_v4, 0  ;;  %vm1411_vm4 = vweird.f32 %v3998_v13  ;;  %v175_v45 = vand.u32 2147483647, %v4336_v42  ;;  %v4355_v13 = vand.u32 3, %v1516_v12 }
  0xa5   :  { %v3565_v52 = vpop.eup %3564  ;;  %v1419_v9 = vxor.u32 2147483648, %v3563_v40  ;;  %v1502_v18 = vor.u32 4788187, %v1501_v43  ;;  %v1505_v25 = vcvt.s32.f32 %v1498_v2  ;;  %v132_v0 = vadd.s32 536870912, %v131_v8 }
  0xa6   :  { %v1416_v17 = vxor.u32 2147483648, %v3565_v52  ;;  %v1539_v50 = vsel %vm1538_vm3, %v1537_v4, 0  ;;  %v179_v38 = vshrl.u32 %v178_v15, 23  ;;  %v4358_v39 = vshll.u32 %v1535_v14, 8 }
  0xa7   :  { %v1420_v34 = vsel %vm1418_vm2, %v1419_v9, %v3565_v52  ;;  %v1503_v19 = vand.u32 2147483647, %v1502_v18  ;;  %v4348_v47 = vshrl.u32 %v132_v0, 30  ;;  %v1541_v61 = vand.u32 31, %v1539_v50 }
  0xa8   :  { %v1417_v21 = vsel %vm1415_vm1, %v3563_v40, %v1416_v17  ;;  %v4362_v51 = vadd.s32 %v4311_v11, %v4316_v48  ;;  %v4367_v30 = vand.u32 8388607, %v175_v45  ;;  %v2991_v10 = vadd.s32 4294967169, %v179_v38 }
  0xa9   :  { %v1421_v23 = vsel %vm1414_vm14, %v1417_v21, %v1420_v34  ;;  %v1506_v28 = vmul.f32 %v1505_v25, %v1503_v19  ;;  %v134_v24 = vshll.u32 %v4348_v47, 30  ;;  %v1542_v53 = vsub.s32 32, %v1541_v61 }
  0xaa   :  { %v1422_v49 = vsel %vm1411_vm4, nan, %v1421_v23  ;;  %v1544_v20 = vshll.u32 %v3674_v29, %v1541_v61  ;;  %v1547_v41 = vshll.u32 %v3675_v31, %v1541_v61  ;;  %v1550_v55 = vshll.u32 %v3676_v33, %v1541_v61 }
  0xab   :  { %3302 = vmatprep.mubr.msk.f32.mxu1 %vm1750_vm15, %v1422_v49  ;;  %v1507_v5 = vxor.u32 2147483648, %v1506_v28  ;;  %v4369_v7 = vsub.s32 %v131_v8, %v134_v24  ;;  %v1545_v58 = vshrl.u32 %v3675_v31, %v1542_v53  ;;  %v1548_v11 = vshrl.u32 %v3676_v33, %v1542_v53 }
  0xac   :  { %v1553_v48 = vshll.u32 %v3677_v35, %v1541_v61  ;;  %vm73_vm5 = vcmp.lt.s32.totalorder %v4192_v26, 0  ;;  %v1540_v57 = vshrl.u32 %v1539_v50, 5  ;;  %v1551_v59 = vshrl.u32 %v3677_v35, %v1542_v53 }
  0xad   :  { %v1508_v36 = vsel %vm1425_vm7, %v1507_v5, %v1506_v28  ;;  %v137_v6 = vsub.s32 0, %v4369_v7  ;;  %v1543_v60 = vshrl.u32 %v3674_v29, %v1542_v53  ;;  %v1546_v3 = vor.u32 %v1545_v58, %v1544_v20 }
  0xae   :  { %v1511_v46 = vsel %vm4320_vm13, %v4099_v16, %v1508_v36  ;;  %v1554_v1 = vshrl.u32 %v3678_v37, %v1542_v53  ;;  %v1549_v54 = vor.u32 %v1548_v11, %v1547_v41  ;;  %v1552_v4 = vor.u32 %v1551_v59, %v1550_v55 }
  0xaf   :  { %3566 = vcosq.f32 %v1511_v46  ;;  %v2988_v63 = vmin.u32 %v137_v6, %v4369_v7  ;;  %v1556_v2 = vshll.u32 %v3678_v37, %v1541_v61  ;;  %v1557_v43 = vshrl.u32 %v3679_v44, %v1542_v53  ;;  %v4424_v6 = vld [vmem:[%s5447_s1 + $0x78] sm:$0xff] }
  0xb0   :  { %3568 = vsinq.f32 %v1511_v46  ;;  %v1555_v40 = vor.u32 %v1554_v1, %v1553_v48  ;;  %vm4391_vm6 = vcmp.le.f32.partialorder %v71_v62, 0.7853982  ;;  %v157_v8 = vsub.s32 4, %v4348_v47 }
  0xb1   :  { %v139_v12 = vclz %v2988_v63  ;;  %v183_v52 = vor.u32 8388608, %v4367_v30  ;;  %v185_v9 = vadd.s32 1, %v2991_v10  ;;  %v1558_v14 = vor.u32 %v1557_v43, %v1556_v2 }
  0xb2   :  { %vm1559_vm7 = vcmp.lt.s32.totalorder %v1540_v57, 1  ;;  %vm1560_vm8 = vcmp.lt.s32.totalorder %v1540_v57, 2  ;;  %vm1561_vm11 = vcmp.lt.s32.totalorder %v1540_v57, 3  ;;  %vm1562_vm9 = vcmp.lt.s32.totalorder %v1540_v57, 4 }
  0xb3   :  { %v2989_v15 = vadd.s32 4294967294, %v139_v12  ;;  %v1563_v17 = vsel %vm1559_vm7, %v1543_v60, %v1546_v3  ;;  %v1567_v18 = vsel %vm1559_vm7, %v1546_v3, %v1549_v54  ;;  %v1564_v25 = vsel %vm1562_vm9, %v1552_v4, 2102212464 }
  0xb4   :  { %v1568_v0 = vsel %vm1562_vm9, %v1555_v40, 920167782  ;;  %v1571_v62 = vsel %vm1559_vm7, %v1549_v54, %v1552_v4  ;;  %v1572_v34 = vsel %vm1562_vm9, %v1558_v14, 1326507024  ;;  %v1565_v50 = vsel %vm1561_vm11, %v1549_v54, %v1564_v25 }
  0xb5   :  { %vm2990_vm12 = vcmp.lt.s32.totalorder %v2989_v15, 0  ;;  %v1569_v21 = vsel %vm1561_vm11, %v1552_v4, %v1568_v0  ;;  %v1573_v19 = vsel %vm1561_vm11, %v1555_v40, %v1572_v34  ;;  %v158_v23 = vsel %vm73_vm5, %v157_v8, %v4348_v47 }
  0xb6   :  { %v142_v27 = vsel %vm2990_vm12, 0, %v2989_v15  ;;  %v1570_v61 = vsel %vm1560_vm8, %v1567_v18, %v1569_v21  ;;  %v1574_v38 = vsel %vm1560_vm8, %v1571_v62, %v1573_v19  ;;  %vm1515_vm10 = vweird.f32 %v4099_v16 }
  0xb7   :  { %v143_v49 = vsub.s32 32, %v142_v27  ;;  %v144_v28 = vshll.u32 %v4369_v7, %v142_v27  ;;  %v147_v24 = vsub.s32 4294967266, %v142_v27  ;;  %v1566_v53 = vsel %vm1560_vm8, %v1563_v17, %v1565_v50 }
  0xb8   :  { %v4406_v20 = vmul.u32.u64.low %v4358_v39, %v1574_v38  ;;  %v4407_v30 = vmul.u32.u64.high %v4358_v39, %v1574_v38, %v4406_v20  ;;  %v4410_v5 = vmul.u32.u64.low %v4358_v39, %v1570_v61  ;;  %v4411_v41 = vmul.u32.u64.high %v4358_v39, %v1570_v61, %v4410_v5 }
  0xb9   :  { %vm1518_vm13 = vcmp.lt.s32.totalorder %v4355_v13, 2  ;;  %v145_v47 = vshrl.u32 %v4362_v51, %v143_v49  ;;  %v148_v55 = vadd.s32 127, %v147_v24  ;;  %vm186_vm14 = vcmp.gt.s32.totalorder %v185_v9, 0 }
  0xba   :  { %vm1519_vm0 = vcmp.eq.s32.totalorder %v4355_v13, 0  ;;  %vm1522_vm1 = vcmp.eq.s32.totalorder %v4355_v13, 2  ;;  %v160_v7 = vsel %vm4391_vm6, 0, %v158_v23  ;;  %v187_v58 = vsel %vm186_vm14, %v185_v9, 0 }
  0xbb   :  { %v146_v11 = vor.u32 %v145_v47, %v144_v28  ;;  %v149_v48 = vshll.u32 %v148_v55, 23  ;;  %v1582_v10 = vmul.u32 %v4358_v39, %v1566_v53  ;;  %v189_v36 = vand.u32 31, %v187_v58 }
  0xbc   :  { %v3567_v51 = vpop.eup %3566  ;;  %vm1584_vm2 = vc.u32 %v4407_v30, %v4410_v5  ;;  %v1585_v57 = vadd.s32 1, %v4411_v41  ;;  %v4429_v59 = vshll.u32 %v183_v52, 8  ;;  %v1631_v46 = vand.u32 2147483647, %v4424_v6 }
  0xbd   :  { %v3569_v60 = vpop.eup %3568  ;;  %v1523_v3 = vxor.u32 2147483648, %v3567_v51  ;;  %v150_v1 = vor.u32 4788187, %v149_v48  ;;  %v153_v39 = vcvt.s32.f32 %v146_v11  ;;  %v190_v63 = vsub.s32 32, %v189_v36 }
  0xbe   :  { %v1520_v54 = vxor.u32 2147483648, %v3569_v60  ;;  %v164_v4 = vadd.s32 3, %v160_v7  ;;  %v1586_v40 = vsel %vm1584_vm2, %v1585_v57, %v4411_v41  ;;  %v1634_v2 = vand.u32 2139095040, %v4424_v6 }
  0xbf   :  { %v1524_v43 = vsel %vm1522_vm1, %v1523_v3, %v3569_v60  ;;  %v151_v12 = vand.u32 2147483647, %v150_v1  ;;  %v1587_v8 = vadd.s32 %v1586_v40, %v1582_v10  ;;  %v192_v52 = vshll.u32 %v3674_v29, %v189_v36 }
  0xc0   :  { %v1521_v9 = vsel %vm1519_vm0, %v3567_v51, %v1520_v54  ;;  %v193_v14 = vshrl.u32 %v3675_v31, %v190_v63  ;;  %v195_v15 = vshll.u32 %v3675_v31, %v189_v36  ;;  %v196_v17 = vshrl.u32 %v3676_v33, %v190_v63 }
  0xc1   :  { %v1525_v18 = vsel %vm1518_vm13, %v1521_v9, %v1524_v43  ;;  %v154_v25 = vmul.f32 %v153_v39, %v151_v12  ;;  %v1588_v0 = vadd.s32 536870912, %v1587_v8  ;;  %v188_v62 = vshrl.u32 %v187_v58, 5 }
  0xc2   :  { %v1526_v34 = vsel %vm1515_vm10, nan, %v1525_v18  ;;  %v198_v50 = vshll.u32 %v3676_v33, %v189_v36  ;;  %v199_v21 = vshrl.u32 %v3677_v35, %v190_v63  ;;  %v201_v19 = vshll.u32 %v3677_v35, %v189_v36 }
  0xc3   :  { %3303 = vmatmul.mubr.msk.f32.gmra.mxu1 %vm1750_vm15, %v1526_v34  ;;  %v155_v27 = vxor.u32 2147483648, %v154_v25  ;;  %v1589_v23 = vshrl.u32 %v1588_v0, 30  ;;  %v191_v61 = vshrl.u32 %v3674_v29, %v190_v63  ;;  %v202_v13 = vshrl.u32 %v3678_v37, %v190_v63 }
  0xc4   :  { %v194_v38 = vor.u32 %v193_v14, %v192_v52  ;;  %v197_v49 = vor.u32 %v196_v17, %v195_v15  ;;  %v204_v28 = vshll.u32 %v3678_v37, %v189_v36  ;;  %v205_v16 = vshrl.u32 %v3679_v44, %v190_v63 }
  0xc5   :  { %v156_v24 = vsel %vm73_vm5, %v155_v27, %v154_v25  ;;  %v1590_v53 = vshll.u32 %v1589_v23, 30  ;;  %v203_v20 = vor.u32 %v202_v13, %v201_v19  ;;  %vm207_vm3 = vcmp.lt.s32.totalorder %v188_v62, 1 }
  0xc6   :  { %v159_v41 = vsel %vm4391_vm6, %v4192_v26, %v156_v24  ;;  %v200_v47 = vor.u32 %v199_v21, %v198_v50  ;;  %v206_v55 = vor.u32 %v205_v16, %v204_v28  ;;  %vm210_vm4 = vcmp.lt.s32.totalorder %v188_v62, 4 }
  0xc7   :  { %3570 = vcosq.f32 %v159_v41  ;;  %v4459_v7 = vsub.s32 %v1587_v8, %v1590_v53  ;;  %vm209_vm7 = vcmp.lt.s32.totalorder %v188_v62, 3  ;;  %v1635_v58 = vshrl.u32 %v1634_v2, 23 }
  0xc8   :  { %3572 = vsinq.f32 %v159_v41  ;;  %vm208_vm8 = vcmp.lt.s32.totalorder %v188_v62, 2  ;;  %v212_v11 = vsel %vm210_vm4, %v200_v47, 2102212464  ;;  %v215_v48 = vsel %vm207_vm3, %v194_v38, %v197_v49 }
  0xc9   :  { %v1593_v10 = vsub.s32 0, %v4459_v7  ;;  %v1613_v36 = vsub.s32 4, %v1589_v23  ;;  %v211_v56 = vsel %vm207_vm3, %v191_v61, %v194_v38  ;;  %v216_v51 = vsel %vm210_vm4, %v203_v20, 920167782 }
  0xca   :  { %v213_v57 = vsel %vm209_vm7, %v197_v49, %v212_v11  ;;  %v217_v60 = vsel %vm209_vm7, %v200_v47, %v216_v51  ;;  %v219_v3 = vsel %vm207_vm3, %v197_v49, %v200_v47  ;;  %v220_v1 = vsel %vm210_vm4, %v206_v55, 1326507024 }
  0xcb   :  { %v3044_v39 = vmin.u32 %v1593_v10, %v4459_v7  ;;  %v218_v63 = vsel %vm208_vm8, %v215_v48, %v217_v60  ;;  %v221_v54 = vsel %vm209_vm7, %v203_v20, %v220_v1  ;;  %v165_v40 = vand.u32 3, %v164_v4 }
  0xcc   :  { %v222_v2 = vsel %vm208_vm8, %v219_v3, %v221_v54  ;;  %v4475_v43 = vmul.u32.u64.low %v4429_v59, %v218_v63  ;;  %v4476_v12 = vmul.u32.u64.high %v4429_v59, %v218_v63, %v4475_v43  ;;  %vm1529_vm5 = vcmp.lt.s32.totalorder %v4292_v32, 0 }
  0xcd   :  { %v1595_v8 = vclz %v3044_v39  ;;  %v214_v52 = vsel %vm208_vm8, %v211_v56, %v213_v57  ;;  %v1638_v9 = vand.u32 8388607, %v1631_v46  ;;  %v1614_v14 = vsel %vm1529_vm5, %v1613_v36, %v1589_v23 }
  0xce   :  { %v4486_v4 = vmul.u32.u64.low %v4429_v59, %v222_v2  ;;  %v4487_v15 = vmul.u32.u64.high %v4429_v59, %v222_v2, %v4486_v4  ;;  %v3047_v17 = vadd.s32 4294967169, %v1635_v58  ;;  %vm163_vm6 = vweird.f32 %v4192_v26 }
  0xcf   :  { %vm4492_vm11 = vcmp.le.f32.partialorder %v1527_v22, 0.7853982  ;;  %v3045_v25 = vadd.s32 4294967294, %v1595_v8  ;;  %vm166_vm9 = vcmp.lt.s32.totalorder %v165_v40, 2  ;;  %v230_v0 = vmul.u32 %v4429_v59, %v214_v52  ;;  %v4505_v22 = vld [vmem:[%s5447_s1 + $0x10] sm:$0xff] }
  0xd0   :  { %v233_v62 = vadd.s32 1, %v4476_v12  ;;  %v1641_v34 = vadd.s32 1, %v3047_v17  ;;  %vm167_vm12 = vcmp.eq.s32.totalorder %v165_v40, 0  ;;  %v1583_v50 = vadd.s32 %v4410_v5, %v4407_v30 }
  0xd1   :  { %vm3046_vm10 = vcmp.lt.s32.totalorder %v3045_v25, 0  ;;  %v1616_v21 = vsel %vm4492_vm11, 0, %v1614_v14  ;;  %vm232_vm13 = vc.u32 %v4487_v15, %v4475_v43  ;;  %v1639_v59 = vor.u32 8388608, %v1638_v9 }
  0xd2   :  { %v1598_v19 = vsel %vm3046_vm10, 0, %v3045_v25  ;;  %vm1642_vm14 = vcmp.gt.s32.totalorder %v1641_v34, 0  ;;  %v234_v30 = vsel %vm232_vm13, %v233_v62, %v4476_v12  ;;  %vm170_vm0 = vcmp.eq.s32.totalorder %v165_v40, 2 }
  0xd3   :  { %v1599_v27 = vsub.s32 32, %v1598_v19  ;;  %v1600_v23 = vshll.u32 %v4459_v7, %v1598_v19  ;;  %v1603_v61 = vsub.s32 4294967266, %v1598_v19  ;;  %v235_v13 = vadd.s32 %v234_v30, %v230_v0 }
  0xd4   :  { %v3571_v5 = vpop.eup %3570  ;;  %v1643_v38 = vsel %vm1642_vm14, %v1641_v34, 0  ;;  %v282_v49 = vand.u32 2139095040, %v4505_v22  ;;  %v279_v20 = vand.u32 2147483647, %v4505_v22  ;;  %v4513_v47 = vadd.s32 3, %v1616_v21 }
  0xd5   :  { %v3573_v28 = vpop.eup %3572  ;;  %v171_v16 = vxor.u32 2147483648, %v3571_v5  ;;  %v1601_v24 = vshrl.u32 %v1583_v50, %v1599_v27  ;;  %v1604_v53 = vadd.s32 127, %v1603_v61  ;;  %v236_v55 = vadd.s32 536870912, %v235_v13 }
  0xd6   :  { %v168_v41 = vxor.u32 2147483648, %v3573_v28  ;;  %v1645_v7 = vand.u32 31, %v1643_v38  ;;  %v4515_v10 = vshll.u32 %v1639_v59, 8  ;;  %v283_v57 = vshrl.u32 %v282_v49, 23 }
  0xd7   :  { %v172_v58 = vsel %vm170_vm0, %v171_v16, %v3573_v28  ;;  %v1602_v11 = vor.u32 %v1601_v24, %v1600_v23  ;;  %v1605_v48 = vshll.u32 %v1604_v53, 23  ;;  %v4518_v56 = vshrl.u32 %v236_v55, 30 }
  0xd8   :  { %v169_v36 = vsel %vm167_vm12, %v3571_v5, %v168_v41  ;;  %v1646_v51 = vsub.s32 32, %v1645_v7  ;;  %v1644_v54 = vshrl.u32 %v1643_v38, 5  ;;  %v1648_v2 = vshll.u32 %v3674_v29, %v1645_v7 }
  0xd9   :  { %v173_v60 = vsel %vm166_vm9, %v169_v36, %v172_v58  ;;  %v1606_v3 = vor.u32 4788187, %v1605_v48  ;;  %v1609_v1 = vcvt.s32.f32 %v1602_v11  ;;  %v238_v63 = vshll.u32 %v4518_v56, 30 }
  0xda   :  { %v174_v39 = vsel %vm163_vm6, nan, %v173_v60  ;;  %v1649_v8 = vshrl.u32 %v3675_v31, %v1646_v51  ;;  %v1651_v52 = vshll.u32 %v3675_v31, %v1645_v7  ;;  %v1652_v40 = vshrl.u32 %v3676_v33, %v1646_v51 }
  0xdb   :  { %3284 = vmatprep.mubr.msk.f32.mxu0 %vm1750_vm15, %v174_v39  ;;  %v1607_v12 = vand.u32 2147483647, %v1606_v3  ;;  %v4529_v9 = vsub.s32 %v235_v13, %v238_v63  ;;  %v1657_v14 = vshll.u32 %v3677_v35, %v1645_v7  ;;  %v231_v4 = vadd.s32 %v4475_v43, %v4487_v15 }
  0xdc   :  { %v1654_v17 = vshll.u32 %v3676_v33, %v1645_v7  ;;  %v1655_v25 = vshrl.u32 %v3677_v35, %v1646_v51  ;;  %v1647_v62 = vshrl.u32 %v3674_v29, %v1646_v51  ;;  %v1650_v34 = vor.u32 %v1649_v8, %v1648_v2 }
  0xdd   :  { %v1610_v26 = vmul.f32 %v1609_v1, %v1607_v12  ;;  %v241_v0 = vsub.s32 0, %v4529_v9  ;;  %v1658_v50 = vshrl.u32 %v3678_v37, %v1646_v51  ;;  %v1653_v19 = vor.u32 %v1652_v40, %v1651_v52 }
  0xde   :  { %v1660_v59 = vshll.u32 %v3678_v37, %v1645_v7  ;;  %v1661_v27 = vshrl.u32 %v3679_v44, %v1646_v51  ;;  %vm1663_vm1 = vcmp.lt.s32.totalorder %v1644_v54, 1  ;;  %v2995_v15 = vadd.s32 4294967169, %v283_v57 }
  0xdf   :  { %v1611_v21 = vxor.u32 2147483648, %v1610_v26  ;;  %v2992_v23 = vmin.u32 %v241_v0, %v4529_v9  ;;  %v1659_v43 = vor.u32 %v1658_v50, %v1657_v14  ;;  %v1656_v30 = vor.u32 %v1655_v25, %v1654_v17 }
  0xe0   :  { %v1662_v5 = vor.u32 %v1661_v27, %v1660_v59  ;;  %vm1666_vm2 = vcmp.lt.s32.totalorder %v1644_v54, 4  ;;  %vm1664_vm3 = vcmp.lt.s32.totalorder %v1644_v54, 2  ;;  %vm1665_vm4 = vcmp.lt.s32.totalorder %v1644_v54, 3  ;;  %v4581_v54 = vld [vmem:[%s5447_s1 + $0x18] sm:$0xff] }
  0xe1   :  { %v1612_v61 = vsel %vm1529_vm5, %v1611_v21, %v1610_v26  ;;  %v243_v38 = vclz %v2992_v23  ;;  %v1667_v49 = vsel %vm1663_vm1, %v1647_v62, %v1650_v34  ;;  %v1668_v28 = vsel %vm1666_vm2, %v1656_v30, 2102212464 }
  0xe2   :  { %v1615_v13 = vsel %vm4492_vm11, %v4292_v32, %v1612_v61  ;;  %v1671_v16 = vsel %vm1663_vm1, %v1650_v34, %v1653_v19  ;;  %v1669_v53 = vsel %vm1665_vm4, %v1653_v19, %v1668_v28  ;;  %v1672_v41 = vsel %vm1666_vm2, %v1659_v43, 920167782 }
  0xe3   :  { %3574 = vcosq.f32 %v1615_v13  ;;  %v2993_v24 = vadd.s32 4294967294, %v243_v38  ;;  %v261_v55 = vsub.s32 4, %v4518_v56  ;;  %v1673_v18 = vsel %vm1665_vm4, %v1656_v30, %v1672_v41 }
  0xe4   :  { %3576 = vsinq.f32 %v1615_v13  ;;  %v1675_v7 = vsel %vm1663_vm1, %v1653_v19, %v1656_v30  ;;  %v1676_v58 = vsel %vm1666_vm2, %v1662_v5, 1326507024  ;;  %vm4558_vm7 = vcmp.le.f32.partialorder %v175_v45, 0.7853982 }
  0xe5   :  { %vm2994_vm8 = vcmp.lt.s32.totalorder %v2993_v24, 0  ;;  %v1670_v48 = vsel %vm1664_vm3, %v1667_v49, %v1669_v53  ;;  %v1674_v36 = vsel %vm1664_vm3, %v1671_v16, %v1673_v18  ;;  %v1677_v51 = vsel %vm1665_vm4, %v1659_v43, %v1676_v58 }
  0xe6   :  { %v246_v57 = vsel %vm2994_vm8, 0, %v2993_v24  ;;  %v1678_v60 = vsel %vm1664_vm3, %v1675_v7, %v1677_v51  ;;  %v4567_v3 = vmul.u32.u64.low %v4515_v10, %v1674_v36  ;;  %v4568_v1 = vmul.u32.u64.high %v4515_v10, %v1674_v36, %v4567_v3 }
  0xe7   :  { %v247_v39 = vsub.s32 32, %v246_v57  ;;  %v248_v45 = vshll.u32 %v4529_v9, %v246_v57  ;;  %v251_v63 = vsub.s32 4294967266, %v246_v57  ;;  %v289_v2 = vadd.s32 1, %v2995_v15 }
  0xe8   :  { %v1621_v12 = vand.u32 3, %v4513_v47  ;;  %vm177_vm5 = vcmp.lt.s32.totalorder %v4336_v42, 0  ;;  %v4575_v8 = vmul.u32.u64.low %v4515_v10, %v1678_v60  ;;  %v4576_v52 = vmul.u32.u64.high %v4515_v10, %v1678_v60, %v4575_v8 }
  0xe9   :  { %v249_v40 = vshrl.u32 %v231_v4, %v247_v39  ;;  %v252_v14 = vadd.s32 127, %v251_v63  ;;  %v4585_v9 = vand.u32 8388607, %v279_v20  ;;  %vm290_vm6 = vcmp.gt.s32.totalorder %v289_v2, 0 }
  0xea   :  { %vm1619_vm11 = vweird.f32 %v4292_v32  ;;  %v262_v47 = vsel %vm177_vm5, %v261_v55, %v4518_v56  ;;  %v1686_v26 = vmul.u32 %v4515_v10, %v1670_v48  ;;  %v1689_v17 = vadd.s32 1, %v4568_v1 }
  0xeb   :  { %v291_v25 = vsel %vm290_vm6, %v289_v2, 0  ;;  %v250_v0 = vor.u32 %v249_v40, %v248_v45  ;;  %v253_v62 = vshll.u32 %v252_v14, 23  ;;  %v386_v34 = vand.u32 2139095040, %v4581_v54 }
  0xec   :  { %v293_v4 = vand.u32 31, %v291_v25  ;;  %vm1622_vm9 = vcmp.lt.s32.totalorder %v1621_v12, 2  ;;  %vm1623_vm12 = vcmp.eq.s32.totalorder %v1621_v12, 0  ;;  %vm1626_vm10 = vcmp.eq.s32.totalorder %v1621_v12, 2 }
  0xed   :  { %vm1688_vm13 = vc.u32 %v4576_v52, %v4567_v3  ;;  %v254_v50 = vor.u32 4788187, %v253_v62  ;;  %v257_v21 = vcvt.s32.f32 %v250_v0  ;;  %v264_v10 = vsel %vm4558_vm7, 0, %v262_v47 }
  0xee   :  { %v1690_v56 = vsel %vm1688_vm13, %v1689_v17, %v4568_v1  ;;  %v294_v19 = vsub.s32 32, %v293_v4  ;;  %v287_v27 = vor.u32 8388608, %v4585_v9  ;;  %v4600_v23 = vshrl.u32 %v291_v25, 5 }
  0xef   :  { %v1691_v59 = vadd.s32 %v1690_v56, %v1686_v26  ;;  %v255_v15 = vand.u32 2147483647, %v254_v50  ;;  %v296_v61 = vshll.u32 %v3674_v29, %v293_v4  ;;  %v299_v30 = vshll.u32 %v3675_v31, %v293_v4 }
  0xf0   :  { %v3575_v43 = vpop.eup %3574  ;;  %v387_v5 = vshrl.u32 %v386_v34, 23  ;;  %v297_v28 = vshrl.u32 %v3675_v31, %v294_v19  ;;  %v302_v16 = vshll.u32 %v3676_v33, %v293_v4  ;;  %v300_v41 = vshrl.u32 %v3676_v33, %v294_v19 }
  0xf1   :  { %v3577_v13 = vpop.eup %3576  ;;  %v1627_v38 = vxor.u32 2147483648, %v3575_v43  ;;  %v1692_v49 = vadd.s32 536870912, %v1691_v59  ;;  %v258_v53 = vmul.f32 %v257_v21, %v255_v15  ;;  %v305_v55 = vshll.u32 %v3677_v35, %v293_v4 }
  0xf2   :  { %v1624_v24 = vxor.u32 2147483648, %v3577_v13  ;;  %v303_v58 = vshrl.u32 %v3677_v35, %v294_v19  ;;  %v306_v48 = vshrl.u32 %v3678_v37, %v294_v19  ;;  %v308_v57 = vshll.u32 %v3678_v37, %v293_v4 }
  0xf3   :  { %v1628_v18 = vsel %vm1626_vm10, %v1627_v38, %v3577_v13  ;;  %v4609_v7 = vshrl.u32 %v1692_v49, 30  ;;  %v259_v51 = vxor.u32 2147483648, %v258_v53  ;;  %v309_v60 = vshrl.u32 %v3679_v44, %v294_v19 }
  0xf4   :  { %v1625_v36 = vsel %vm1623_vm12, %v3575_v43, %v1624_v24  ;;  %v295_v45 = vshrl.u32 %v3674_v29, %v294_v19  ;;  %v298_v63 = vor.u32 %v297_v28, %v296_v61  ;;  %v301_v40 = vor.u32 %v300_v41, %v299_v30 }
  0xf5   :  { %v1629_v1 = vsel %vm1622_vm9, %v1625_v36, %v1628_v18  ;;  %v1694_v39 = vshll.u32 %v4609_v7, 30  ;;  %v260_v8 = vsel %vm177_vm5, %v259_v51, %v258_v53  ;;  %v307_v14 = vor.u32 %v306_v48, %v305_v55 }
  0xf6   :  { %v1630_v2 = vsel %vm1619_vm11, nan, %v1629_v1  ;;  %v263_v12 = vsel %vm4558_vm7, %v4336_v42, %v260_v8  ;;  %v304_v47 = vor.u32 %v303_v58, %v302_v16  ;;  %vm311_vm14 = vcmp.lt.s32.totalorder %v4600_v23, 1 }
  0xf7   :  { %3305 = vmatprep.mubr.msk.f32.mxu1 %vm1750_vm15, %v1630_v2  ;;  %v4627_v9 = vsub.s32 %v1691_v59, %v1694_v39  ;;  %3578 = vcosq.f32 %v263_v12  ;;  %v310_v26 = vor.u32 %v309_v60, %v308_v57  ;;  %vm313_vm0 = vcmp.lt.s32.totalorder %v4600_v23, 3 }
  0xf8   :  { %vm314_vm1 = vcmp.lt.s32.totalorder %v4600_v23, 4  ;;  %3580 = vsinq.f32 %v263_v12  ;;  %v268_v32 = vadd.s32 3, %v264_v10  ;;  %vm312_vm2 = vcmp.lt.s32.totalorder %v4600_v23, 2 }
  0xf9   :  { %v1697_v17 = vsub.s32 0, %v4627_v9  ;;  %v316_v25 = vsel %vm314_vm1, %v304_v47, 2102212464  ;;  %v319_v11 = vsel %vm311_vm14, %v298_v63, %v301_v40  ;;  %v320_v0 = vsel %vm314_vm1, %v307_v14, 920167782 }
  0xfa   :  { %v327_v62 = vshll.u32 %v287_v27, 8  ;;  %v315_v34 = vsel %vm311_vm14, %v295_v45, %v298_v63  ;;  %v321_v50 = vsel %vm313_vm0, %v304_v47, %v320_v0  ;;  %v323_v21 = vsel %vm311_vm14, %v301_v40, %v304_v47 }
  0xfb   :  { %v3048_v4 = vmin.u32 %v1697_v17, %v4627_v9  ;;  %v317_v56 = vsel %vm313_vm0, %v301_v40, %v316_v25  ;;  %v322_v19 = vsel %vm312_vm2, %v319_v11, %v321_v50  ;;  %v324_v10 = vsel %vm314_vm1, %v310_v26, 1326507024 }
  0xfc   :  { %v2999_v59 = vadd.s32 4294967169, %v387_v5  ;;  %vm4649_vm3 = vcmp.le.f32.partialorder %v1631_v46, 0.7853982  ;;  %v383_v15 = vand.u32 2147483647, %v4581_v54  ;;  %v1717_v61 = vsub.s32 4, %v4609_v7 }
  0xfd   :  { %v1699_v43 = vclz %v3048_v4  ;;  %v325_v30 = vsel %vm313_vm0, %v307_v14, %v324_v10  ;;  %v4657_v13 = vmul.u32.u64.low %v327_v62, %v322_v19  ;;  %v4658_v38 = vmul.u32.u64.high %v327_v62, %v322_v19, %v4657_v13 }
  0xfe   :  { %v318_v5 = vsel %vm312_vm2, %v315_v34, %v317_v56  ;;  %v326_v46 = vsel %vm312_vm2, %v323_v21, %v325_v30  ;;  %v393_v28 = vadd.s32 1, %v2999_v59  ;;  %vm267_vm4 = vweird.f32 %v4336_v42 }
  0xff   :  { %v3049_v49 = vadd.s32 4294967294, %v1699_v43  ;;  %v269_v16 = vand.u32 3, %v268_v32  ;;  %vm1633_vm7 = vcmp.lt.s32.totalorder %v4424_v6, 0  ;;  %v1687_v41 = vadd.s32 %v4567_v3, %v4576_v52 }
 0x100   :  { %v4667_v24 = vmul.u32.u64.low %v327_v62, %v326_v46  ;;  %v4668_v53 = vmul.u32.u64.high %v327_v62, %v326_v46, %v4667_v24  ;;  %v390_v55 = vand.u32 8388607, %v383_v15  ;;  %vm394_vm5 = vcmp.gt.s32.totalorder %v393_v28, 0 }
 0x101   :  { %vm3050_vm8 = vcmp.lt.s32.totalorder %v3049_v49, 0  ;;  %v334_v23 = vmul.u32 %v327_v62, %v318_v5  ;;  %v337_v58 = vadd.s32 1, %v4658_v38  ;;  %v395_v48 = vsel %vm394_vm5, %v393_v28, 0 }
 0x102   :  { %v1702_v18 = vsel %vm3050_vm8, 0, %v3049_v49  ;;  %v4679_v60 = vsel %vm1633_vm7, %v1717_v61, %v4609_v7  ;;  %vm270_vm6 = vcmp.lt.s32.totalorder %v269_v16, 2  ;;  %vm271_vm11 = vcmp.eq.s32.totalorder %v269_v16, 0 }
 0x103   :  { %v1703_v36 = vsub.s32 32, %v1702_v18  ;;  %v1704_v51 = vshll.u32 %v4627_v9, %v1702_v18  ;;  %v1707_v57 = vsub.s32 4294967266, %v1702_v18  ;;  %vm336_vm9 = vc.u32 %v4668_v53, %v4657_v13 }
 0x104   :  { %v397_v3 = vand.u32 31, %v395_v48  ;;  %v3579_v52 = vpop.eup %3578  ;;  %vm274_vm12 = vcmp.eq.s32.totalorder %v269_v16, 2  ;;  %v338_v45 = vsel %vm336_vm9, %v337_v58, %v4658_v38  ;;  %v1720_v8 = vsel %vm4649_vm3, 0, %v4679_v60 }
 0x105   :  { %v1705_v1 = vshrl.u32 %v1687_v41, %v1703_v36  ;;  %v1708_v39 = vadd.s32 127, %v1707_v57  ;;  %v3581_v63 = vpop.eup %3580  ;;  %v275_v2 = vxor.u32 2147483648, %v3579_v52  ;;  %v339_v7 = vadd.s32 %v338_v45, %v334_v23 }
 0x106   :  { %v398_v40 = vsub.s32 32, %v397_v3  ;;  %v272_v14 = vxor.u32 2147483648, %v3581_v63  ;;  %v391_v47 = vor.u32 8388608, %v390_v55  ;;  %v4687_v17 = vshrl.u32 %v395_v48, 5 }
 0x107   :  { %v1706_v12 = vor.u32 %v1705_v1, %v1704_v51  ;;  %v1709_v9 = vshll.u32 %v1708_v39, 23  ;;  %v276_v26 = vsel %vm274_vm12, %v275_v2, %v3581_v63  ;;  %v340_v32 = vadd.s32 536870912, %v339_v7 }
 0x108   :  { %v400_v25 = vshll.u32 %v3674_v29, %v397_v3  ;;  %v273_v11 = vsel %vm271_vm11, %v3579_v52, %v272_v14  ;;  %v403_v4 = vshll.u32 %v3675_v31, %v397_v3  ;;  %v401_v21 = vshrl.u32 %v3675_v31, %v398_v40 }
 0x109   :  { %v1710_v0 = vor.u32 4788187, %v1709_v9  ;;  %v1713_v62 = vcvt.s32.f32 %v1706_v12  ;;  %v277_v34 = vsel %vm270_vm6, %v273_v11, %v276_v26  ;;  %v341_v50 = vshrl.u32 %v340_v32, 30 }
 0x10a   :  { %v404_v56 = vshrl.u32 %v3676_v33, %v398_v40  ;;  %v278_v19 = vsel %vm267_vm4, nan, %v277_v34  ;;  %v406_v59 = vshll.u32 %v3676_v33, %v397_v3  ;;  %v407_v43 = vshrl.u32 %v3677_v35, %v398_v40 }
 0x10b   :  { %v1711_v10 = vand.u32 2147483647, %v1710_v0  ;;  %3285 = vmatmul.mubr.msk.f32.vlgmr.msra.gmra.mxu0 %vm1750_vm15, %v278_v19  ;;  %v342_v61 = vshll.u32 %v341_v50, 30  ;;  %v409_v30 = vshll.u32 %v3677_v35, %v397_v3  ;;  %v410_v38 = vshrl.u32 %v3678_v37, %v398_v40 }
 0x10c   :  { %v4702_v49 = vshll.u32 %v391_v47, 8  ;;  %v399_v46 = vshrl.u32 %v3674_v29, %v398_v40  ;;  %v412_v42 = vshll.u32 %v3678_v37, %v397_v3  ;;  %v413_v28 = vshrl.u32 %v3679_v44, %v398_v40  ;;  %v4738_v40 = vld [vmem:[%s5447_s1 + $0x20] sm:$0xff] }
 0x10d   :  { %v1714_v5 = vmul.f32 %v1713_v62, %v1711_v10  ;;  %v4707_v16 = vsub.s32 %v339_v7, %v342_v61  ;;  %v402_v24 = vor.u32 %v401_v21, %v400_v25  ;;  %v405_v41 = vor.u32 %v404_v56, %v403_v4 }
 0x10e   :  { %v411_v55 = vor.u32 %v410_v38, %v409_v30  ;;  %v408_v23 = vor.u32 %v407_v43, %v406_v59  ;;  %vm415_vm10 = vcmp.lt.s32.totalorder %v4687_v17, 1  ;;  %vm416_vm13 = vcmp.lt.s32.totalorder %v4687_v17, 2 }
 0x10f   :  { %v1715_v18 = vxor.u32 2147483648, %v1714_v5  ;;  %v345_v58 = vsub.s32 0, %v4707_v16  ;;  %v414_v48 = vor.u32 %v413_v28, %v412_v42  ;;  %vm417_vm14 = vcmp.lt.s32.totalorder %v4687_v17, 3 }
 0x110   :  { %vm418_vm0 = vcmp.lt.s32.totalorder %v4687_v17, 4  ;;  %v419_v51 = vsel %vm415_vm10, %v399_v46, %v402_v24  ;;  %v423_v39 = vsel %vm415_vm10, %v402_v24, %v405_v41  ;;  %v1724_v45 = vadd.s32 3, %v1720_v8 }
 0x111   :  { %v1716_v36 = vsel %vm1633_vm7, %v1715_v18, %v1714_v5  ;;  %v420_v57 = vsel %vm418_vm0, %v408_v23, 2102212464  ;;  %v424_v60 = vsel %vm418_vm0, %v411_v55, 920167782  ;;  %v2996_v52 = vmin.u32 %v345_v58, %v4707_v16 }
 0x112   :  { %v1719_v3 = vsel %vm4649_vm3, %v4424_v6, %v1716_v36  ;;  %v421_v1 = vsel %vm417_vm14, %v405_v41, %v420_v57  ;;  %vm281_vm1 = vcmp.lt.s32.totalorder %v4505_v22, 0  ;;  %v425_v63 = vsel %vm417_vm14, %v408_v23, %v424_v60 }
 0x113   :  { %3582 = vcosq.f32 %v1719_v3  ;;  %v347_v2 = vclz %v2996_v52  ;;  %v365_v7 = vsub.s32 4, %v341_v50  ;;  %v427_v27 = vsel %vm415_vm10, %v405_v41, %v408_v23 }
 0x114   :  { %3584 = vsinq.f32 %v1719_v3  ;;  %vm4742_vm2 = vcmp.le.f32.partialorder %v279_v20, 0.7853982  ;;  %v422_v14 = vsel %vm416_vm13, %v419_v51, %v421_v1  ;;  %v426_v12 = vsel %vm416_vm13, %v423_v39, %v425_v63 }
 0x115   :  { %v428_v9 = vsel %vm418_vm0, %v414_v48, 1326507024  ;;  %v2997_v47 = vadd.s32 4294967294, %v347_v2  ;;  %v4755_v32 = vmul.u32.u64.low %v4702_v49, %v426_v12  ;;  %v4756_v25 = vmul.u32.u64.high %v4702_v49, %v426_v12, %v4755_v32 }
 0x116   :  { %v429_v26 = vsel %vm417_vm14, %v411_v55, %v428_v9  ;;  %v1725_v20 = vand.u32 3, %v1724_v45  ;;  %v335_v11 = vadd.s32 %v4657_v13, %v4668_v53  ;;  %v490_v62 = vand.u32 2139095040, %v4738_v40 }
 0x117   :  { %v430_v0 = vsel %vm416_vm13, %v427_v27, %v429_v26  ;;  %vm2998_vm3 = vcmp.lt.s32.totalorder %v2997_v47, 0  ;;  %v366_v4 = vsel %vm281_vm1, %v365_v7, %v341_v50  ;;  %v438_v19 = vmul.u32 %v4702_v49, %v422_v14 }
 0x118   :  { %v4767_v34 = vmul.u32.u64.low %v4702_v49, %v430_v0  ;;  %v4768_v21 = vmul.u32.u64.high %v4702_v49, %v430_v0, %v4767_v34  ;;  %v350_v56 = vsel %vm2998_vm3, 0, %v2997_v47  ;;  %v487_v10 = vand.u32 2147483647, %v4738_v40  ;;  %v4782_v49 = vld [vmem:[%s5447_s1 + $0x28] sm:$0xff]  ;;  %v3538_v47 = vld [vmem:[%s5449_s0] sm:$0xff]  }
 0x119   :  { %v491_v59 = vshrl.u32 %v490_v62, 23  ;;  %v351_v13 = vsub.s32 32, %v350_v56  ;;  %v352_v53 = vshll.u32 %v4707_v16, %v350_v56  ;;  %v355_v17 = vsub.s32 4294967266, %v350_v56 }
 0x11a   :  { %v441_v43 = vadd.s32 1, %v4756_v25  ;;  %v368_v61 = vsel %vm4742_vm2, 0, %v366_v4  ;;  %vm1723_vm4 = vweird.f32 %v4424_v6  ;;  %vm440_vm7 = vc.u32 %v4768_v21, %v4755_v32 }
 0x11b   :  { %v3003_v50 = vadd.s32 4294967169, %v491_v59  ;;  %v353_v30 = vshrl.u32 %v335_v11, %v351_v13  ;;  %v356_v38 = vadd.s32 127, %v355_v17  ;;  %vm1726_vm8 = vcmp.lt.s32.totalorder %v1725_v20, 2 }
 0x11c   :  { %v442_v5 = vsel %vm440_vm7, %v441_v43, %v4756_v25  ;;  %v494_v46 = vand.u32 8388607, %v487_v10  ;;  %v372_v24 = vadd.s32 3, %v368_v61  ;;  %vm1727_vm5 = vcmp.eq.s32.totalorder %v1725_v20, 0 }
 0x11d   :  { %v497_v42 = vadd.s32 1, %v3003_v50  ;;  %v354_v28 = vor.u32 %v353_v30, %v352_v53  ;;  %v357_v16 = vshll.u32 %v356_v38, 23  ;;  %v443_v41 = vadd.s32 %v442_v5, %v438_v19 }
 0x11e   :  { %vm1730_vm6 = vcmp.eq.s32.totalorder %v1725_v20, 2  ;;  %v594_v55 = vand.u32 2139095040, %v4782_v49  ;;  %vm2020_vm9 = vcmask 785408   ;;  %v495_v60 = vor.u32 8388608, %v494_v46  ;;  %v3539_v20 = vld [vmem:[%s5449_s0 + $0x8] sm:$0xff]  }
 0x11f   :  { %vm498_vm11 = vcmp.gt.s32.totalorder %v497_v42, 0  ;;  %v358_v23 = vor.u32 4788187, %v357_v16  ;;  %v361_v58 = vcvt.s32.f32 %v354_v28  ;;  %v444_v48 = vadd.s32 536870912, %v443_v41 }
 0x120   :  { %v3583_v18 = vpop.eup %3582  ;;  %v499_v36 = vsel %vm498_vm11, %v497_v42, 0  ;;  %v4788_v39 = vand.u32 3, %v372_v24  ;;  %v591_v7 = vand.u32 2147483647, %v4782_v49  ;;  %v595_v27 = vshrl.u32 %v594_v55, 23 }
 0x121   :  { %v3585_v51 = vpop.eup %3584  ;;  %v1731_v57 = vxor.u32 2147483648, %v3583_v18  ;;  %v501_v3 = vand.u32 31, %v499_v36  ;;  %v359_v1 = vand.u32 2147483647, %v358_v23  ;;  %v4790_v45 = vshrl.u32 %v444_v48, 30 }
 0x122   :  { %v1728_v52 = vxor.u32 2147483648, %v3585_v51  ;;  %v4803_v62 = vshll.u32 %v495_v60, 8  ;;  %v500_v59 = vshrl.u32 %v499_v36, 5  ;;  %v3007_v17 = vadd.s32 4294967169, %v595_v27 }
 0x123   :  { %v1732_v63 = vsel %vm1730_vm6, %v1731_v57, %v3585_v51  ;;  %v502_v2 = vsub.s32 32, %v501_v3  ;;  %v362_v12 = vmul.f32 %v361_v58, %v359_v1  ;;  %v446_v9 = vshll.u32 %v4790_v45, 30 }
 0x124   :  { %v1729_v14 = vsel %vm1727_vm5, %v3583_v18, %v1728_v52  ;;  %v504_v26 = vshll.u32 %v3674_v29, %v501_v3  ;;  %v507_v0 = vshll.u32 %v3675_v31, %v501_v3  ;;  %v510_v53 = vshll.u32 %v3676_v33, %v501_v3 }
 0x125   :  { %v1733_v25 = vsel %vm1726_vm8, %v1729_v14, %v1732_v63  ;;  %v505_v11 = vshrl.u32 %v3675_v31, %v502_v2  ;;  %v363_v34 = vxor.u32 2147483648, %v362_v12  ;;  %v4807_v56 = vsub.s32 %v443_v41, %v446_v9 }
 0x126   :  { %v1734_v4 = vsel %vm1723_vm4, nan, %v1733_v25  ;;  %v508_v19 = vshrl.u32 %v3676_v33, %v502_v2  ;;  %v503_v13 = vshrl.u32 %v3674_v29, %v502_v2  ;;  %v511_v50 = vshrl.u32 %v3677_v35, %v502_v2 }
 0x127   :  { %3306 = vmatmul.mubr.msk.f32.gmra.mxu1 %vm1750_vm15, %v1734_v4  ;;  %v364_v6 = vsel %vm281_vm1, %v363_v34, %v362_v12  ;;  %v449_v43 = vsub.s32 0, %v4807_v56  ;;  %v506_v61 = vor.u32 %v505_v11, %v504_v26  ;;  %v513_v38 = vshll.u32 %v3677_v35, %v501_v3 }
 0x128   :  { %3320 = vmatprep.mubr.msk.bf16.mxu1 %vm2020_vm9, %v3538_v47  ;;  %v367_v30 = vsel %vm4742_vm2, %v4505_v22, %v364_v6  ;;  %v514_v5 = vshrl.u32 %v3678_v37, %v502_v2  ;;  %v516_v46 = vshll.u32 %v3678_v37, %v501_v3  ;;  %v509_v28 = vor.u32 %v508_v19, %v507_v0 }
 0x129   :  { %3586 = vcosq.f32 %v367_v30  ;;  %v3000_v42 = vmin.u32 %v449_v43, %v4807_v56  ;;  %v512_v16 = vor.u32 %v511_v50, %v510_v53  ;;  %v517_v41 = vshrl.u32 %v3679_v44, %v502_v2 }
 0x12a   :  { %3588 = vsinq.f32 %v367_v30  ;;  %v515_v24 = vor.u32 %v514_v5, %v513_v38  ;;  %vm519_vm12 = vcmp.lt.s32.totalorder %v500_v59, 1  ;;  %v439_v8 = vadd.s32 %v4755_v32, %v4768_v21 }
 0x12b   :  { %3321 = vmatmul.mubr.msk.bf16.vlgmr.msra.gmra.mxu1 %vm2020_vm9, %v3539_v20  ;;  %v451_v55 = vclz %v3000_v42  ;;  %v598_v18 = vand.u32 8388607, %v591_v7  ;;  %v601_v23 = vadd.s32 1, %v3007_v17  ;;  %v518_v58 = vor.u32 %v517_v41, %v516_v46 }
 0x12c   :  { %vm520_vm10 = vcmp.lt.s32.totalorder %v500_v59, 2  ;;  %vm521_vm13 = vcmp.lt.s32.totalorder %v500_v59, 3  ;;  %vm522_vm14 = vcmp.lt.s32.totalorder %v500_v59, 4  ;;  %v523_v36 = vsel %vm519_vm12, %v503_v13, %v506_v61 }
 0x12d   :  { %v3001_v48 = vadd.s32 4294967294, %v451_v55  ;;  %v524_v51 = vsel %vm522_vm14, %v512_v16, 2102212464  ;;  %v527_v57 = vsel %vm519_vm12, %v506_v61, %v509_v28  ;;  %vm385_vm0 = vcmp.lt.s32.totalorder %v4581_v54, 0 }
 0x12e   :  { %v525_v60 = vsel %vm521_vm13, %v509_v28, %v524_v51  ;;  %v528_v3 = vsel %vm522_vm14, %v515_v24, 920167782  ;;  %v531_v32 = vsel %vm519_vm12, %v509_v28, %v512_v16  ;;  %v532_v21 = vsel %vm522_vm14, %v518_v58, 1326507024  ;;  %v3541_v28 = vld [vmem:[%s5449_s0 + $0x18] sm:$0xff]  }
 0x12f   :  { %vm3002_vm1 = vcmp.lt.s32.totalorder %v3001_v48, 0  ;;  %v529_v52 = vsel %vm521_vm13, %v512_v16, %v528_v3  ;;  %v533_v1 = vsel %vm521_vm13, %v515_v24, %v532_v21  ;;  %v599_v63 = vor.u32 8388608, %v598_v18  ;;  %v3542_v16 = vld [vmem:[%s5449_s0 + $0x20] sm:$0xff]  }
 0x130   :  { %v454_v2 = vsel %vm3002_vm1, 0, %v3001_v48  ;;  %v526_v27 = vsel %vm520_vm10, %v523_v36, %v525_v60  ;;  %v530_v14 = vsel %vm520_vm10, %v527_v57, %v529_v52  ;;  %v534_v12 = vsel %vm520_vm10, %v531_v32, %v533_v1 }
 0x131   :  { %vm371_vm2 = vweird.f32 %v4505_v22  ;;  %v455_v9 = vsub.s32 32, %v454_v2  ;;  %v456_v47 = vshll.u32 %v4807_v56, %v454_v2  ;;  %v459_v26 = vsub.s32 4294967266, %v454_v2  ;;  %v3543_v22 = vld [vmem:[%s5449_s0 + $0x28] sm:$0xff]  }
 0x132   :  { %vm602_vm3 = vcmp.gt.s32.totalorder %v601_v23, 0  ;;  %v4844_v25 = vmul.u32.u64.low %v4803_v62, %v534_v12  ;;  %v4845_v11 = vmul.u32.u64.high %v4803_v62, %v534_v12, %v4844_v25  ;;  %v469_v20 = vsub.s32 4, %v4790_v45 }
 0x133   :  { %v4848_v0 = vmul.u32.u64.low %v4803_v62, %v530_v14  ;;  %v4849_v4 = vmul.u32.u64.high %v4803_v62, %v530_v14, %v4848_v0  ;;  %v457_v34 = vshrl.u32 %v439_v8, %v455_v9  ;;  %v460_v19 = vadd.s32 127, %v459_v26 }
 0x134   :  { %v603_v59 = vsel %vm602_vm3, %v601_v23, 0  ;;  %vm374_vm4 = vcmp.lt.s32.totalorder %v4788_v39, 2  ;;  %vm375_vm7 = vcmp.eq.s32.totalorder %v4788_v39, 0  ;;  %vm4857_vm8 = vcmp.le.f32.partialorder %v383_v15, 0.7853982  ;;  %v3540_v15 = vld [vmem:[%s5449_s0 + $0x10] sm:$0xff]  }
 0x135   :  { %v605_v13 = vand.u32 31, %v603_v59  ;;  %vm378_vm5 = vcmp.eq.s32.totalorder %v4788_v39, 2  ;;  %v458_v53 = vor.u32 %v457_v34, %v456_v47  ;;  %v461_v17 = vshll.u32 %v460_v19, 23  ;;  %3324 = vmatprep.mubr.msk.bf16.mxu1 %vm2020_vm9, %v3540_v15 }
 0x136   :  { %v542_v6 = vmul.u32 %v4803_v62, %v526_v27  ;;  %v3587_v43 = vpop.eup %3586  ;;  %vm544_vm6 = vc.u32 %v4845_v11, %v4848_v0  ;;  %v545_v61 = vadd.s32 1, %v4849_v4  ;;  %v4866_v30 = vshll.u32 %v599_v63, 8  ;;  %3325 = vmatmul.mubr.msk.bf16.gmra.mxu1 %vm2020_vm9, %v3541_v28 }
 0x137   :  { %v606_v50 = vsub.s32 32, %v605_v13  ;;  %v3589_v38 = vpop.eup %3588  ;;  %v379_v5 = vxor.u32 2147483648, %v3587_v43  ;;  %v462_v46 = vor.u32 4788187, %v461_v17  ;;  %v465_v42 = vcvt.s32.f32 %v458_v53  ;;  %3328 = vmatprep.mubr.msk.bf16.mxu1 %vm2020_vm9, %v3542_v16 }
 0x138   :  { %v470_v62 = vsel %vm385_vm0, %v469_v20, %v4790_v45  ;;  %v376_v24 = vxor.u32 2147483648, %v3589_v38  ;;  %v546_v41 = vsel %vm544_vm6, %v545_v61, %v4849_v4  ;;  %v4881_v8 = vshrl.u32 %v603_v59, 5  ;;  %v3544_v4 = vld [vmem:[%s5449_s0 + $0x30] sm:$0xff]  }
 0x139   :  { %v608_v55 = vshll.u32 %v3674_v29, %v605_v13  ;;  %v380_v45 = vsel %vm378_vm5, %v379_v5, %v3589_v38  ;;  %v463_v18 = vand.u32 2147483647, %v462_v46  ;;  %v547_v23 = vadd.s32 %v546_v41, %v542_v6  ;;  %v4921_v59 = vld [vmem:[%s5447_s1 + $0x30] sm:$0xff] }
 0x13a   :  { %v609_v58 = vshrl.u32 %v3675_v31, %v606_v50  ;;  %v377_v48 = vsel %vm375_vm7, %v3587_v43, %v376_v24  ;;  %v611_v36 = vshll.u32 %v3675_v31, %v605_v13  ;;  %v612_v51 = vshrl.u32 %v3676_v33, %v606_v50 }
 0x13b   :  { %v614_v57 = vshll.u32 %v3676_v33, %v605_v13  ;;  %v381_v60 = vsel %vm374_vm4, %v377_v48, %v380_v45  ;;  %v466_v3 = vmul.f32 %v465_v42, %v463_v18  ;;  %v548_v32 = vadd.s32 536870912, %v547_v23  ;;  %v3545_v45 = vld [vmem:[%s5449_s0 + $0x38] sm:$0xff]  }
 0x13c   :  { %v615_v21 = vshrl.u32 %v3677_v35, %v606_v50  ;;  %v382_v52 = vsel %vm371_vm2, nan, %v381_v60  ;;  %v472_v1 = vsel %vm4857_vm8, 0, %v470_v62  ;;  %vm489_vm11 = vcmp.lt.s32.totalorder %v4738_v40, 0 }
 0x13d   :  { %v617_v63 = vshll.u32 %v3677_v35, %v605_v13  ;;  %v618_v2 = vshrl.u32 %v3678_v37, %v606_v50  ;;  %3287 = vmatprep.mubr.msk.f32.mxu0 %vm1750_vm15, %v382_v52  ;;  %v467_v39 = vxor.u32 2147483648, %v466_v3  ;;  %v549_v27 = vshrl.u32 %v548_v32, 30 }
 0x13e   :  { %v607_v14 = vshrl.u32 %v3674_v29, %v606_v50  ;;  %v620_v12 = vshll.u32 %v3678_v37, %v605_v13  ;;  %v610_v9 = vor.u32 %v609_v58, %v608_v55  ;;  %v613_v47 = vor.u32 %v612_v51, %v611_v36  ;;  %3329 = vmatmul.mubr.msk.bf16.gmra.mxu1 %vm2020_vm9, %v3543_v22 }
 0x13f   :  { %v616_v26 = vor.u32 %v615_v21, %v614_v57  ;;  %v621_v25 = vshrl.u32 %v3679_v44, %v606_v50  ;;  %v468_v34 = vsel %vm385_vm0, %v467_v39, %v466_v3  ;;  %v550_v19 = vshll.u32 %v549_v27, 30  ;;  %3332 = vmatprep.mubr.msk.bf16.mxu1 %vm2020_vm9, %v3544_v4 }
 0x140   :  { %v619_v20 = vor.u32 %v618_v2, %v617_v63  ;;  %vm623_vm12 = vcmp.lt.s32.totalorder %v4881_v8, 1  ;;  %v471_v13 = vsel %vm4857_vm8, %v4581_v54, %v468_v34  ;;  %v573_v53 = vsub.s32 4, %v549_v27 }
 0x141   :  { %v622_v17 = vor.u32 %v621_v25, %v620_v12  ;;  %vm626_vm10 = vcmp.lt.s32.totalorder %v4881_v8, 4  ;;  %3590 = vcosq.f32 %v471_v13  ;;  %v4927_v6 = vsub.s32 %v547_v23, %v550_v19 }
 0x142   :  { %vm625_vm13 = vcmp.lt.s32.totalorder %v4881_v8, 3  ;;  %v628_v43 = vsel %vm626_vm10, %v616_v26, 2102212464  ;;  %3592 = vsinq.f32 %v471_v13  ;;  %vm624_vm14 = vcmp.lt.s32.totalorder %v4881_v8, 2 }
 0x143   :  { %v631_v56 = vsel %vm623_vm12, %v610_v9, %v613_v47  ;;  %v698_v61 = vand.u32 2139095040, %v4921_v59  ;;  %v476_v50 = vadd.s32 3, %v472_v1  ;;  %v553_v15 = vsub.s32 0, %v4927_v6 }
 0x144   :  { %v627_v38 = vsel %vm623_vm12, %v607_v14, %v610_v9  ;;  %v632_v5 = vsel %vm626_vm10, %v619_v20, 920167782  ;;  %v629_v46 = vsel %vm625_vm13, %v613_v47, %v628_v43  ;;  %v635_v62 = vsel %vm623_vm12, %v613_v47, %v616_v26  ;;  %v4994_v14 = vld [vmem:[%s5447_s1 + $0x38] sm:$0xff] }
 0x145   :  { %v633_v42 = vsel %vm625_vm13, %v616_v26, %v632_v5  ;;  %v636_v28 = vsel %vm626_vm10, %v622_v17, 1326507024  ;;  %v3004_v16 = vmin.u32 %v553_v15, %v4927_v6  ;;  %v574_v24 = vsel %vm489_vm11, %v573_v53, %v549_v27 }
 0x146   :  { %v634_v41 = vsel %vm624_vm14, %v631_v56, %v633_v42  ;;  %v637_v55 = vsel %vm625_vm13, %v619_v20, %v636_v28  ;;  %v699_v48 = vshrl.u32 %v698_v61, 23  ;;  %v477_v36 = vand.u32 3, %v476_v50  ;;  %3333 = vmatmul.mubr.msk.bf16.gmra.mxu1 %vm2020_vm9, %v3545_v45 }
 0x147   :  { %v638_v18 = vsel %vm624_vm14, %v635_v62, %v637_v55  ;;  %v4964_v23 = vmul.u32.u64.low %v4866_v30, %v634_v41  ;;  %v4965_v58 = vmul.u32.u64.high %v4866_v30, %v634_v41, %v4964_v23  ;;  %v555_v51 = vclz %v3004_v16 }
 0x148   :  { %v630_v57 = vsel %vm624_vm14, %v627_v38, %v629_v46  ;;  %v695_v60 = vand.u32 2147483647, %v4921_v59  ;;  %vm4973_vm0 = vcmp.le.f32.partialorder %v487_v10, 0.7853982  ;;  %v3011_v52 = vadd.s32 4294967169, %v699_v48 }
 0x149   :  { %v4978_v32 = vmul.u32.u64.low %v4866_v30, %v638_v18  ;;  %v4979_v21 = vmul.u32.u64.high %v4866_v30, %v638_v18, %v4978_v32  ;;  %v3005_v1 = vadd.s32 4294967294, %v555_v51  ;;  %v576_v63 = vsel %vm4973_vm0, 0, %v574_v24 }
 0x14a   :  { %vm475_vm1 = vweird.f32 %v4581_v54  ;;  %v646_v8 = vmul.u32 %v4866_v30, %v630_v57  ;;  %v649_v10 = vadd.s32 1, %v4965_v58  ;;  %v705_v2 = vadd.s32 1, %v3011_v52 }
 0x14b   :  { %vm478_vm2 = vcmp.lt.s32.totalorder %v477_v36, 2  ;;  %v543_v39 = vadd.s32 %v4848_v0, %v4845_v11  ;;  %vm3006_vm3 = vcmp.lt.s32.totalorder %v3005_v1, 0  ;;  %v702_v27 = vand.u32 8388607, %v695_v60 }
 0x14c   :  { %v558_v12 = vsel %vm3006_vm3, 0, %v3005_v1  ;;  %v580_v22 = vadd.s32 3, %v576_v63  ;;  %vm648_vm9 = vc.u32 %v4979_v21, %v4964_v23  ;;  %vm706_vm4 = vcmp.gt.s32.totalorder %v705_v2, 0 }
 0x14d   :  { %v559_v30 = vsub.s32 32, %v558_v12  ;;  %v560_v9 = vshll.u32 %v4927_v6, %v558_v12  ;;  %v563_v47 = vsub.s32 4294967266, %v558_v12  ;;  %v650_v11 = vsel %vm648_vm9, %v649_v10, %v4965_v58 }
 0x14e   :  { %v3591_v0 = vpop.eup %3590  ;;  %vm482_vm7 = vcmp.eq.s32.totalorder %v477_v36, 2  ;;  %v651_v26 = vadd.s32 %v650_v11, %v646_v8  ;;  %v707_v25 = vsel %vm706_vm4, %v705_v2, 0  ;;  %v802_v4 = vand.u32 2139095040, %v4994_v14 }
 0x14f   :  { %v3593_v34 = vpop.eup %3592  ;;  %vm479_vm8 = vcmp.eq.s32.totalorder %v477_v36, 0  ;;  %v483_v19 = vxor.u32 2147483648, %v3591_v0  ;;  %v561_v20 = vshrl.u32 %v543_v39, %v559_v30  ;;  %v564_v13 = vadd.s32 127, %v563_v47 }
 0x150   :  { %v480_v53 = vxor.u32 2147483648, %v3593_v34  ;;  %v652_v17 = vadd.s32 536870912, %v651_v26  ;;  %v703_v43 = vor.u32 8388608, %v702_v27  ;;  %v709_v56 = vand.u32 31, %v707_v25 }
 0x151   :  { %v484_v61 = vsel %vm482_vm7, %v483_v19, %v3593_v34  ;;  %v562_v6 = vor.u32 %v561_v20, %v560_v9  ;;  %v565_v50 = vshll.u32 %v564_v13, 23  ;;  %v5001_v15 = vand.u32 3, %v580_v22 }
 0x152   :  { %v481_v38 = vsel %vm479_vm8, %v3591_v0, %v480_v53  ;;  %v5003_v5 = vshrl.u32 %v652_v17, 30  ;;  %v710_v46 = vsub.s32 32, %v709_v56  ;;  %v803_v42 = vshrl.u32 %v802_v4, 23 }
 0x153   :  { %v485_v62 = vsel %vm478_vm2, %v481_v38, %v484_v61  ;;  %v566_v28 = vor.u32 4788187, %v565_v50  ;;  %v569_v16 = vcvt.s32.f32 %v562_v6  ;;  %v799_v24 = vand.u32 2147483647, %v4994_v14 }
 0x154   :  { %v486_v41 = vsel %vm475_vm1, nan, %v485_v62  ;;  %v654_v55 = vshll.u32 %v5003_v5, 30  ;;  %v712_v45 = vshll.u32 %v3674_v29, %v709_v56  ;;  %v5011_v18 = vshll.u32 %v703_v43, 8 }
 0x155   :  { %3288 = vmatmul.mubr.msk.f32.gmra.mxu0 %vm1750_vm15, %v486_v41  ;;  %v567_v58 = vand.u32 2147483647, %v566_v28  ;;  %v713_v48 = vshrl.u32 %v3675_v31, %v710_v46  ;;  %v715_v36 = vshll.u32 %v3675_v31, %v709_v56  ;;  %v716_v51 = vshrl.u32 %v3676_v33, %v710_v46 }
 0x156   :  { %v5017_v57 = vsub.s32 %v651_v26, %v654_v55  ;;  %v708_v32 = vshrl.u32 %v707_v25, 5  ;;  %v721_v54 = vshll.u32 %v3677_v35, %v709_v56  ;;  %v3015_v52 = vadd.s32 4294967169, %v803_v42 }
 0x157   :  { %v570_v1 = vmul.f32 %v569_v16, %v567_v58  ;;  %v718_v63 = vshll.u32 %v3676_v33, %v709_v56  ;;  %v719_v8 = vshrl.u32 %v3677_v35, %v710_v46  ;;  %v5024_v10 = vand.u32 8388607, %v799_v24 }
 0x158   :  { %v657_v2 = vsub.s32 0, %v5017_v57  ;;  %v711_v39 = vshrl.u32 %v3674_v29, %v710_v46  ;;  %v714_v27 = vor.u32 %v713_v48, %v712_v45  ;;  %v722_v12 = vshrl.u32 %v3678_v37, %v710_v46 }
 0x159   :  { %v571_v22 = vxor.u32 2147483648, %v570_v1  ;;  %v717_v30 = vor.u32 %v716_v51, %v715_v36  ;;  %v724_v9 = vshll.u32 %v3678_v37, %v709_v56  ;;  %v725_v47 = vshrl.u32 %v3679_v44, %v710_v46 }
 0x15a   :  { %v3008_v11 = vmin.u32 %v657_v2, %v5017_v57  ;;  %v723_v0 = vor.u32 %v722_v12, %v721_v54  ;;  %vm727_vm5 = vcmp.lt.s32.totalorder %v708_v32, 1  ;;  %v809_v26 = vadd.s32 1, %v3015_v52 }
 0x15b   :  { %v572_v25 = vsel %vm489_vm11, %v571_v22, %v570_v1  ;;  %v720_v4 = vor.u32 %v719_v8, %v718_v63  ;;  %v726_v34 = vor.u32 %v725_v47, %v724_v9  ;;  %vm730_vm6 = vcmp.lt.s32.totalorder %v708_v32, 4 }
 0x15c   :  { %v575_v19 = vsel %vm4973_vm0, %v4738_v40, %v572_v25  ;;  %v659_v20 = vclz %v3008_v11  ;;  %vm728_vm12 = vcmp.lt.s32.totalorder %v708_v32, 2  ;;  %vm729_vm10 = vcmp.lt.s32.totalorder %v708_v32, 3 }
 0x15d   :  { %3594 = vcosq.f32 %v575_v19  ;;  %v731_v13 = vsel %vm727_vm5, %v711_v39, %v714_v27  ;;  %v732_v53 = vsel %vm730_vm6, %v720_v4, 2102212464  ;;  %v735_v17 = vsel %vm727_vm5, %v714_v27, %v717_v30 }
 0x15e   :  { %3596 = vsinq.f32 %v575_v19  ;;  %v3009_v43 = vadd.s32 4294967294, %v659_v20  ;;  %v733_v56 = vsel %vm729_vm10, %v717_v30, %v732_v53  ;;  %v736_v61 = vsel %vm730_vm6, %v723_v0, 920167782 }
 0x15f   :  { %v647_v3 = vadd.s32 %v4964_v23, %v4979_v21  ;;  %v737_v6 = vsel %vm729_vm10, %v720_v4, %v736_v61  ;;  %v739_v50 = vsel %vm727_vm5, %v717_v30, %v720_v4  ;;  %v740_v38 = vsel %vm730_vm6, %v726_v34, 1326507024 }
 0x160   :  { %vm3010_vm11 = vcmp.lt.s32.totalorder %v3009_v43, 0  ;;  %v734_v46 = vsel %vm728_vm12, %v731_v13, %v733_v56  ;;  %v738_v42 = vsel %vm728_vm12, %v735_v17, %v737_v6  ;;  %v741_v62 = vsel %vm729_vm10, %v723_v0, %v740_v38 }
 0x161   :  { %v662_v28 = vsel %vm3010_vm11, 0, %v3009_v43  ;;  %v742_v16 = vsel %vm728_vm12, %v739_v50, %v741_v62  ;;  %v5052_v41 = vmul.u32.u64.low %v5011_v18, %v738_v42  ;;  %v5053_v55 = vmul.u32.u64.high %v5011_v18, %v738_v42, %v5052_v41 }
 0x162   :  { %v663_v23 = vsub.s32 32, %v662_v28  ;;  %v664_v21 = vshll.u32 %v5017_v57, %v662_v28  ;;  %v667_v45 = vsub.s32 4294967266, %v662_v28  ;;  %vm810_vm13 = vcmp.gt.s32.totalorder %v809_v26, 0 }
 0x163   :  { %v677_v58 = vsub.s32 4, %v5003_v5  ;;  %v5059_v48 = vmul.u32.u64.low %v5011_v18, %v742_v16  ;;  %v5060_v36 = vmul.u32.u64.high %v5011_v18, %v742_v16, %v5059_v48  ;;  %v811_v51 = vsel %vm810_vm13, %v809_v26, 0 }
 0x164   :  { %v665_v54 = vshrl.u32 %v647_v3, %v663_v23  ;;  %v668_v32 = vadd.s32 127, %v667_v45  ;;  %v813_v52 = vand.u32 31, %v811_v51  ;;  %vm579_vm14 = vweird.f32 %v4738_v40 }
 0x165   :  { %vm582_vm0 = vcmp.lt.s32.totalorder %v5001_v15, 2  ;;  %vm593_vm1 = vcmp.lt.s32.totalorder %v4782_v49, 0  ;;  %v750_v57 = vmul.u32 %v5011_v18, %v734_v46  ;;  %v753_v1 = vadd.s32 1, %v5053_v55 }
 0x166   :  { %vm583_vm2 = vcmp.eq.s32.totalorder %v5001_v15, 0  ;;  %vm5070_vm3 = vcmp.le.f32.partialorder %v591_v7, 0.7853982  ;;  %v666_v8 = vor.u32 %v665_v54, %v664_v21  ;;  %v669_v2 = vshll.u32 %v668_v32, 23 }
 0x167   :  { %v814_v39 = vsub.s32 32, %v813_v52  ;;  %vm586_vm9 = vcmp.eq.s32.totalorder %v5001_v15, 2  ;;  %v5078_v27 = vsel %vm593_vm1, %v677_v58, %v5003_v5  ;;  %vm752_vm4 = vc.u32 %v5060_v36, %v5052_v41  ;;  %v2188_v5 = vld [vmem:[%s5450_s5 + $0x38] sm:$0xff] }
 0x168   :  { %v807_v18 = vor.u32 8388608, %v5024_v10  ;;  %v670_v12 = vor.u32 4788187, %v669_v2  ;;  %v673_v7 = vcvt.s32.f32 %v666_v8  ;;  %v754_v22 = vsel %vm752_vm4, %v753_v1, %v5053_v55  ;;  %3336 = vmatprep.subr.mxu0 %v2188_v5 }
 0x169   :  { %v5084_v30 = vshrl.u32 %v811_v51, 5  ;;  %v755_v9 = vadd.s32 %v754_v22, %v750_v57  ;;  %v816_v47 = vshll.u32 %v3674_v29, %v813_v52  ;;  %v817_v11 = vshrl.u32 %v3675_v31, %v814_v39  ;;  %3337 = vmatpush3.msra.mxu0 %v2188_v5 }
 0x16a   :  { %v819_v0 = vshll.u32 %v3675_v31, %v813_v52  ;;  %v3595_v26 = vpop.eup %3594  ;;  %v671_v25 = vand.u32 2147483647, %v670_v12  ;;  %v820_v10 = vshrl.u32 %v3676_v33, %v814_v39  ;;  %v822_v4 = vshll.u32 %v3676_v33, %v813_v52 }
 0x16b   :  { %v823_v34 = vshrl.u32 %v3677_v35, %v814_v39  ;;  %v3597_v19 = vpop.eup %3596  ;;  %v587_v20 = vxor.u32 2147483648, %v3595_v26  ;;  %v756_v13 = vadd.s32 536870912, %v755_v9  ;;  %v825_v53 = vshll.u32 %v3677_v35, %v813_v52 }
 0x16c   :  { %v826_v31 = vshrl.u32 %v3678_v37, %v814_v39  ;;  %v584_v17 = vxor.u32 2147483648, %v3597_v19  ;;  %v674_v43 = vmul.f32 %v673_v7, %v671_v25  ;;  %v815_v56 = vshrl.u32 %v3674_v29, %v814_v39 }
 0x16d   :  { %v828_v61 = vshll.u32 %v3678_v37, %v813_v52  ;;  %v588_v33 = vsel %vm586_vm9, %v587_v20, %v3597_v19  ;;  %v5101_v3 = vshrl.u32 %v756_v13, 30  ;;  %v818_v6 = vor.u32 %v817_v11, %v816_v47 }
 0x16e   :  { %v829_v50 = vshrl.u32 %v3679_v44, %v814_v39  ;;  %v585_v35 = vsel %vm583_vm2, %v3595_v26, %v584_v17  ;;  %v675_v38 = vxor.u32 2147483648, %v674_v43  ;;  %v821_v46 = vor.u32 %v820_v10, %v819_v0 }
 0x16f   :  { %v824_v42 = vor.u32 %v823_v34, %v822_v4  ;;  %v589_v62 = vsel %vm582_vm0, %v585_v35, %v588_v33  ;;  %v758_v29 = vshll.u32 %v5101_v3, 30  ;;  %v827_v37 = vor.u32 %v826_v31, %v825_v53 }
 0x170   :  { %vm831_vm7 = vcmp.lt.s32.totalorder %v5084_v30, 1  ;;  %v590_v28 = vsel %vm579_vm14, nan, %v589_v62  ;;  %v676_v44 = vsel %vm593_vm1, %v675_v38, %v674_v43  ;;  %v830_v16 = vor.u32 %v829_v50, %v828_v61 }
 0x171   :  { %vm834_vm8 = vcmp.lt.s32.totalorder %v5084_v30, 4  ;;  %3290 = vmatprep.mubr.msk.f32.mxu0 %vm1750_vm15, %v590_v28  ;;  %v679_v15 = vsel %vm5070_vm3, %v4782_v49, %v676_v44  ;;  %v680_v55 = vsel %vm5070_vm3, 0, %v5078_v27  ;;  %v759_v23 = vsub.s32 %v755_v9, %v758_v29 }
 0x172   :  { %v836_v40 = vsel %vm834_vm8, %v824_v42, 2102212464  ;;  %3598 = vcosq.f32 %v679_v15  ;;  %vm832_vm5 = vcmp.lt.s32.totalorder %v5084_v30, 2  ;;  %vm833_vm6 = vcmp.lt.s32.totalorder %v5084_v30, 3 }
 0x173   :  { %v847_v21 = vshll.u32 %v807_v18, 8  ;;  %3600 = vsinq.f32 %v679_v15  ;;  %v761_v45 = vsub.s32 0, %v759_v23  ;;  %v835_v58 = vsel %vm831_vm7, %v815_v56, %v818_v6 }
 0x174   :  { %v839_v48 = vsel %vm831_vm7, %v818_v6, %v821_v46  ;;  %v837_v51 = vsel %vm833_vm6, %v821_v46, %v836_v40  ;;  %v840_v54 = vsel %vm834_vm8, %v827_v37, 920167782  ;;  %v843_v32 = vsel %vm831_vm7, %v821_v46, %v824_v42 }
 0x175   :  { %v844_v52 = vsel %vm834_vm8, %v830_v16, 1326507024  ;;  %v3012_v57 = vmin.u32 %v761_v45, %v759_v23  ;;  %v841_v1 = vsel %vm833_vm6, %v824_v42, %v840_v54  ;;  %v684_v39 = vadd.s32 3, %v680_v55 }
 0x176   :  { %v845_v63 = vsel %vm833_vm6, %v827_v37, %v844_v52  ;;  %v842_v8 = vsel %vm832_vm5, %v839_v48, %v841_v1  ;;  %v838_v18 = vsel %vm832_vm5, %v835_v58, %v837_v51  ;;  %v751_v0 = vadd.s32 %v5052_v41, %v5060_v36 }
 0x177   :  { %v846_v2 = vsel %vm832_vm5, %v843_v32, %v845_v63  ;;  %v763_v27 = vclz %v3012_v57  ;;  %v5145_v22 = vmul.u32.u64.low %v847_v21, %v842_v8  ;;  %v5146_v9 = vmul.u32.u64.high %v847_v21, %v842_v8, %v5145_v22 }
 0x178   :  { %v5142_v12 = vmul.u32.u64.low %v847_v21, %v846_v2  ;;  %v5143_v7 = vmul.u32.u64.high %v847_v21, %v846_v2, %v5142_v12  ;;  %v685_v11 = vand.u32 3, %v684_v39  ;;  %v854_v5 = vmul.u32 %v847_v21, %v838_v18 }
 0x179   :  { %v3013_v47 = vadd.s32 4294967294, %v763_v27  ;;  %v857_v25 = vadd.s32 1, %v5146_v9  ;;  %vm683_vm0 = vweird.f32 %v4782_v49  ;;  %vm697_vm1 = vcmp.lt.s32.totalorder %v4921_v59, 0 }
 0x17a   :  { %vm856_vm10 = vc.u32 %v5143_v7, %v5145_v22  ;;  %vm690_vm11 = vcmp.eq.s32.totalorder %v685_v11, 2  ;;  %vm686_vm13 = vcmp.lt.s32.totalorder %v685_v11, 2  ;;  %vm687_vm14 = vcmp.eq.s32.totalorder %v685_v11, 0 }
 0x17b   :  { %vm3014_vm12 = vcmp.lt.s32.totalorder %v3013_v47, 0  ;;  %v858_v34 = vsel %vm856_vm10, %v857_v25, %v5146_v9  ;;  %v781_v28 = vsub.s32 4, %v5101_v3  ;;  %vm696_vm2 = vcmp.le.f32.partialorder %v695_v60, 0.7853982  ;;  %v2186_v9 = vld [vmem:[%s5450_s5 + $0x28] sm:$0xff] }
 0x17c   :  { %v766_v26 = vsel %vm3014_vm12, 0, %v3013_v47  ;;  %v859_v53 = vadd.s32 %v858_v34, %v854_v5  ;;  %v855_v58 = vadd.s32 %v5145_v22, %v5143_v7  ;;  %vm787_vm8 = vweird.f32 %v4921_v59 }
 0x17d   :  { %v767_v30 = vsub.s32 32, %v766_v26  ;;  %v768_v10 = vshll.u32 %v759_v23, %v766_v26  ;;  %v771_v4 = vsub.s32 4294967266, %v766_v26  ;;  %v782_v55 = vsel %vm697_vm1, %v781_v28, %v5101_v3  ;;  %v2187_v3 = vld [vmem:[%s5450_s5 + $0x30] sm:$0xff] }
 0x17e   :  { %v860_v56 = vadd.s32 536870912, %v859_v53  ;;  %v784_v21 = vsel %vm696_vm2, 0, %v782_v55  ;;  %3338 = vmatprep.subr.mxu0 %v2187_v3  ;;  %vm801_vm5 = vcmp.lt.s32.totalorder %v4994_v14, 0  ;;  %vm800_vm6 = vcmp.le.f32.partialorder %v799_v24, 0.7853982 }
 0x17f   :  { %v3599_v19 = vpop.eup %3598  ;;  %v769_v20 = vshrl.u32 %v751_v0, %v767_v30  ;;  %v772_v13 = vadd.s32 127, %v771_v4  ;;  %v788_v48 = vadd.s32 3, %v784_v21  ;;  %3339 = vmatpush3.msra.mxu0 %v2187_v3  ;;  %v2410_v3 = vld [vmem:[%s5452_s7 + $0x20] sm:$0xff] }
 0x180   :  { %v3601_v31 = vpop.eup %3600  ;;  %v691_v41 = vxor.u32 2147483648, %v3599_v19  ;;  %v5154_v35 = vshrl.u32 %v860_v56, 30  ;;  %3340 = vmatprep.subr.mxu0 %v2186_v9  ;;  %v2185_v56 = vld [vmem:[%s5450_s5 + $0x20] sm:$0xff] }
 0x181   :  { %v688_v36 = vxor.u32 2147483648, %v3601_v31  ;;  %v770_v17 = vor.u32 %v769_v20, %v768_v10  ;;  %v773_v43 = vshll.u32 %v772_v13, 23  ;;  %v789_v1 = vand.u32 3, %v788_v48  ;;  %3341 = vmatpush3.msra.mxu0 %v2186_v9  ;;  %v2181_v48 = vld [vmem:[%s5450_s5] sm:$0xff] }
 0x182   :  { %v692_v61 = vsel %vm690_vm11, %v691_v41, %v3601_v31  ;;  %v862_v62 = vshll.u32 %v5154_v35, 30  ;;  %v885_v5 = vsub.s32 4, %v5154_v35  ;;  %3342 = vmatprep.subr.mxu0 %v2185_v56 }
 0x183   :  { %v689_v33 = vsel %vm687_vm14, %v3599_v19, %v688_v36  ;;  %v774_v6 = vor.u32 4788187, %v773_v43  ;;  %v777_v50 = vcvt.s32.f32 %v770_v17  ;;  %vm794_vm9 = vcmp.eq.s32.totalorder %v789_v1, 2  ;;  %3343 = vmatpush3.msra.mxu0 %v2185_v56 }
 0x184   :  { %v693_v38 = vsel %vm686_vm13, %v689_v33, %v692_v61  ;;  %v863_v37 = vsub.s32 %v859_v53, %v862_v62  ;;  %vm791_vm4 = vcmp.eq.s32.totalorder %v789_v1, 0  ;;  %vm790_vm7 = vcmp.lt.s32.totalorder %v789_v1, 2  ;;  %v2184_v61 = vld [vmem:[%s5450_s5 + $0x18] sm:$0xff]  ;;  %v5187_v33 = vpop.f32.mrf.mxu1 }
 0x185   :  { %v694_v46 = vsel %vm683_vm0, nan, %v693_v38  ;;  %v775_v42 = vand.u32 2147483647, %v774_v6  ;;  %vm891_vm13 = vweird.f32 %v4994_v14  ;;  %3344 = vmatprep.subr.mxu0 %v2184_v61  ;;  %vm2966_vm14 = vcmask 23552  }
 0x186   :  { %3291 = vmatmul.mubr.msk.f32.gmra.mxu0 %vm1750_vm15, %v694_v46  ;;  %v865_v44 = vsub.s32 0, %v863_v37 }
 0x187   :  { %v778_v29 = vmul.f32 %v777_v50, %v775_v42  ;;  %3345 = vmatpush3.msra.mxu0 %v2184_v61 }
 0x188   :  { %v3016_v15 = vmin.u32 %v865_v44, %v863_v37  ;;  %v5206_v44 = vld [vmem:[%s5451_s4] ss:$0 sm:$0xff] }
 0x189   :  { %v779_v49 = vxor.u32 2147483648, %v778_v29 }
 0x18a   :  { %v867_v40 = vclz %v3016_v15 }
 0x18b   :  { %v780_v16 = vsel %vm697_vm1, %v779_v49, %v778_v29 }
 0x18c   :  { %v783_v23 = vsel %vm696_vm2, %v4921_v59, %v780_v16  ;;  %v3017_v45 = vadd.s32 4294967294, %v867_v40  ;;  %v886_v59 = vsel %vm801_vm5, %v885_v5, %v5154_v35  ;;  %v2183_v40 = vld [vmem:[%s5450_s5 + $0x10] sm:$0xff] }
 0x18d   :  { %3602 = vcosq.f32 %v783_v23  ;;  %v888_v34 = vsel %vm800_vm6, 0, %v886_v59  ;;  %3346 = vmatprep.subr.mxu0 %v2183_v40 }
 0x18e   :  { %3604 = vsinq.f32 %v783_v23  ;;  %vm3018_vm3 = vcmp.lt.s32.totalorder %v3017_v45, 0  ;;  %v892_v19 = vadd.s32 3, %v888_v34  ;;  %3347 = vmatpush3.msra.mxu0 %v2183_v40 }
 0x18f   :  { %v870_v51 = vsel %vm3018_vm3, 0, %v3017_v45  ;;  %v2182_v45 = vld [vmem:[%s5450_s5 + $0x8] sm:$0xff] }
 0x190   :  { %v871_v54 = vsub.s32 32, %v870_v51  ;;  %v872_v60 = vshll.u32 %v863_v37, %v870_v51  ;;  %v875_v32 = vsub.s32 4294967266, %v870_v51  ;;  %v893_v20 = vand.u32 3, %v892_v19  ;;  %3348 = vmatprep.subr.mxu0 %v2182_v45 }
 0x191   :  { %3349 = vmatpush3.msra.mxu0 %v2182_v45 }
 0x192   :  { %v873_v52 = vshrl.u32 %v855_v58, %v871_v54  ;;  %v876_v57 = vadd.s32 127, %v875_v32  ;;  %vm898_vm12 = vcmp.eq.s32.totalorder %v893_v20, 2  ;;  %vm895_vm10 = vcmp.eq.s32.totalorder %v893_v20, 0  ;;  %3350 = vmatprep.subr.mxu0 %v2181_v48  ;;  %v2413_v54 = vld [vmem:[%s5452_s7 + $0x38] sm:$0xff]  ;;  %v2411_v32 = vld [vmem:[%s5452_s7 + $0x28] sm:$0xff] }
 0x193   :  { %vm894_vm11 = vcmp.lt.s32.totalorder %v893_v20, 2  ;;  %3351 = vmatpush3.msra.mxu0 %v2181_v48  ;;  %3376 = vmatprep.subr.mxu1 %v2413_v54 }
 0x194   :  { %v874_v63 = vor.u32 %v873_v52, %v872_v60  ;;  %v877_v8 = vshll.u32 %v876_v57, 23  ;;  %v2412_v60 = vld [vmem:[%s5452_s7 + $0x30] sm:$0xff]  ;;  %3377 = vmatpush3.msra.mxu1 %v2413_v54 }
 0x195   :  { %3378 = vmatprep.subr.mxu1 %v2412_v60 }
 0x196   :  { %v878_v2 = vor.u32 4788187, %v877_v8  ;;  %v881_v39 = vcvt.s32.f32 %v874_v63  ;;  %3379 = vmatpush3.msra.mxu1 %v2412_v60  ;;  %v2409_v8 = vld [vmem:[%s5452_s7 + $0x18] sm:$0xff] }
 0x197   :  { %3380 = vmatprep.subr.mxu1 %v2411_v32 }
 0x198   :  { %v879_v7 = vand.u32 2147483647, %v878_v2  ;;  %3381 = vmatpush3.msra.mxu1 %v2411_v32 }
 0x199   :  { %3382 = vmatprep.subr.mxu1 %v2410_v3 }
 0x19a   :  { %v3603_v27 = vpop.eup %3602  ;;  %v882_v11 = vmul.f32 %v881_v39, %v879_v7  ;;  %3383 = vmatpush3.msra.mxu1 %v2410_v3 }
 0x19b   :  { %v3605_v18 = vpop.eup %3604  ;;  %v795_v12 = vxor.u32 2147483648, %v3603_v27  ;;  %3384 = vmatprep.subr.mxu1 %v2409_v8 }
 0x19c   :  { %v792_v22 = vxor.u32 2147483648, %v3605_v18  ;;  %v883_v25 = vxor.u32 2147483648, %v882_v11  ;;  %3385 = vmatpush3.msra.mxu1 %v2409_v8 }
 0x19d   :  { %v796_v47 = vsel %vm794_vm9, %v795_v12, %v3605_v18  ;;  %v2407_v12 = vld [vmem:[%s5452_s7 + $0x8] sm:$0xff] }
 0x19e   :  { %v793_v0 = vsel %vm791_vm4, %v3603_v27, %v792_v22  ;;  %v884_v10 = vsel %vm801_vm5, %v883_v25, %v882_v11  ;;  %v2408_v27 = vld [vmem:[%s5452_s7 + $0x10] sm:$0xff]  ;;  %v2406_v11 = vld [vmem:[%s5452_s7] sm:$0xff] }
 0x19f   :  { %v797_v26 = vsel %vm790_vm7, %v793_v0, %v796_v47  ;;  %v887_v4 = vsel %vm800_vm6, %v4994_v14, %v884_v10  ;;  %v5189_v14 = vpop.f32.mrf.mxu1  ;;  %3386 = vmatprep.subr.mxu1 %v2408_v27 }
 0x1a0   :  { %v798_v30 = vsel %vm787_vm8, nan, %v797_v26  ;;  %3606 = vcosq.f32 %v887_v4  ;;  %3387 = vmatpush3.msra.mxu1 %v2408_v27  ;;  %v2637_v27 = vld [vmem:[%s5454_s9 + $0x38] sm:$0xff] }
 0x1a1   :  { %3293 = vmatprep.mubr.msk.f32.mxu0 %vm1750_vm15, %v798_v30  ;;  %3608 = vsinq.f32 %v887_v4  ;;  %v5191_v6 = vpop.f32.mrf.mxu1  ;;  %3388 = vmatprep.subr.mxu1 %v2407_v12 }
 0x1a2   :  { %3389 = vmatpush3.msra.mxu1 %v2407_v12  ;;  %3416 = vmatprep.subr.mxu0 %v2637_v27  ;;  %v2635_v12 = vld [vmem:[%s5454_s9 + $0x28] sm:$0xff] }
 0x1a3   :  { %v5193_v50 = vpop.f32.mrf.mxu1  ;;  %3390 = vmatprep.subr.mxu1 %v2406_v11 }
 0x1a4   :  { %3391 = vmatpush3.msra.mxu1 %v2406_v11 }
 0x1a5   :  { %v5195_v35 = vpop.f32.mrf.mxu1 }
 0x1a7   :  { %v5197_v38 = vpop.f32.mrf.mxu1 }
 0x1ad   :  { %v3607_v13 = vpop.eup %3606 }
 0x1ae   :  { %v3609_v53 = vpop.eup %3608  ;;  %v899_v31 = vxor.u32 2147483648, %v3607_v13 }
 0x1af   :  { %v896_v24 = vxor.u32 2147483648, %v3609_v53 }
 0x1b0   :  { %v900_v41 = vsel %vm898_vm12, %v899_v31, %v3609_v53 }
 0x1b1   :  { %v897_v36 = vsel %vm895_vm10, %v3607_v13, %v896_v24 }
 0x1b2   :  { %v901_v17 = vsel %vm894_vm11, %v897_v36, %v900_v41 }
 0x1b3   :  { %v902_v43 = vsel %vm891_vm13, nan, %v901_v17 }
 0x1b4   :  { %3294 = vmatmul.mubr.msk.f32.gmra.mxu0 %vm1750_vm15, %v902_v43  ;;  %vm2196_vm15 = vcmask 523264  }
 0x1cb   :  { %v3286_v62 = vpop.f32.mrf.mxu0 }
 0x1cd   :  { %v1865_v28 = vpop.f32.mrf.mxu0 }
 0x1e7   :  { %v5199_v46 = vpop.f32.mrf.mxu1 }
 0x1e9   :  { %v5201_v42 = vpop.f32.mrf.mxu1 }
 0x1eb   :  { %v3322_v29 = vpop.f32.mrf.mxu1 }
 0x1ed   :  { %v2079_v37 = vpop.f32.mrf.mxu1 }
 0x1ee   :  { %v2080_v49 = vadd.f32 %v2079_v37, %v1865_v28 }
 0x1ef   :  { %v3323_v15 = vpop.f32.mrf.mxu1 }
 0x1f0   :  { %v2149_v16 = vadd.f32 %v5206_v44, %v2080_v49 }
 0x1f1   :  { %v2082_v23 = vpop.f32.mrf.mxu1 }
 0x1f2   :  { %v2165_v55 = vmax.f32 %v2149_v16, 0.0  ;;  %v2083_v21 = vadd.f32 %v3286_v62, %v2082_v23 }
 0x1f4   :  { %v2150_v58 = vadd.f32 %v5206_v44, %v2083_v21  ;;  %3352 = vmatprep.mubr.msk.f32.mxu0 %vm2196_vm15, %v2165_v55 }
 0x1f6   :  { %v2166_v51 = vmax.f32 %v2150_v58, 0.0  ;;  %v3326_v22 = vpop.f32.mrf.mxu1 }
 0x1f8   :  { %3353 = vmatmul.mubr.msk.f32.vlgmr.msra.gmra.mxu0 %vm2196_vm15, %v2166_v51  ;;  %v2095_v9 = vpop.f32.mrf.mxu1 }
 0x1f9   :  { %3417 = vmatpush3.msra.mxu0 %v2637_v27 }
 0x1fa   :  { %v3327_v47 = vpop.f32.mrf.mxu1 }
 0x1fc   :  { %v2098_v0 = vpop.f32.mrf.mxu1 }
 0x1fe   :  { %v3330_v19 = vpop.f32.mrf.mxu1 }
 0x1ff   :  { %v2120_v49 = vadd.f32 %v3330_v19, %v5193_v50 }
 0x200   :  { %v2111_v20 = vpop.f32.mrf.mxu1 }
 0x201   :  { %v2112_v24 = vadd.f32 %v2111_v20, %v5189_v14  ;;  %v2159_v21 = vadd.f32 %v5206_v44, %v2120_v49 }
 0x202   :  { %v3331_v13 = vpop.f32.mrf.mxu1 }
 0x203   :  { %v2157_v62 = vadd.f32 %v5206_v44, %v2112_v24 }
 0x204   :  { %v2114_v53 = vpop.f32.mrf.mxu1 }
 0x205   :  { %v2115_v56 = vadd.f32 %v5187_v33, %v2114_v53  ;;  %v2173_v14 = vmax.f32 %v2157_v62, 0.0  ;;  %v2123_v33 = vadd.f32 %v3331_v13, %v5191_v6 }
 0x206   :  { %v3334_v31 = vpop.f32.mrf.mxu1 }
 0x207   :  { %v2158_v16 = vadd.f32 %v5206_v44, %v2115_v56  ;;  %v2160_v48 = vadd.f32 %v5206_v44, %v2123_v33  ;;  %v2136_v51 = vadd.f32 %v3334_v31, %v5201_v42 }
 0x208   :  { %v2127_v41 = vpop.f32.mrf.mxu1 }
 0x209   :  { %v2128_v55 = vadd.f32 %v2127_v41, %v5197_v38  ;;  %v2174_v45 = vmax.f32 %v2158_v16, 0.0  ;;  %v2175_v38 = vmax.f32 %v2159_v21, 0.0  ;;  %v2176_v60 = vmax.f32 %v2160_v48, 0.0 }
 0x20b   :  { %v2161_v50 = vadd.f32 %v5206_v44, %v2128_v55 }
 0x20d   :  { %v2177_v54 = vmax.f32 %v2161_v50, 0.0 }
 0x215   :  { %v3289_v52 = vpop.f32.mrf.mxu0 }
 0x216   :  { %v2091_v57 = vadd.f32 %v3323_v15, %v3289_v52 }
 0x217   :  { %v1875_v1 = vpop.f32.mrf.mxu0 }
 0x218   :  { %v2088_v63 = vadd.f32 %v3322_v29, %v1875_v1  ;;  %v2152_v2 = vadd.f32 %v5206_v44, %v2091_v57  ;;  %v3335_v29 = vpop.f32.mrf.mxu1 }
 0x219   :  { %v2139_v32 = vadd.f32 %v3335_v29, %v5199_v46  ;;  %v5284_v46 = vld [vmem:[%s5453_s6] ss:$0 sm:$0xff] }
 0x21a   :  { %v2151_v39 = vadd.f32 %v5206_v44, %v2088_v63  ;;  %v2168_v7 = vmax.f32 %v2152_v2, 0.0  ;;  %v2130_v23 = vpop.f32.mrf.mxu1 }
 0x21b   :  { %v2131_v58 = vadd.f32 %v5195_v35, %v2130_v23  ;;  %v2163_v35 = vadd.f32 %v5206_v44, %v2136_v51  ;;  %v2164_v57 = vadd.f32 %v5206_v44, %v2139_v32 }
 0x21c   :  { %v2167_v18 = vmax.f32 %v2151_v39, 0.0 }
 0x21d   :  { %v2162_v6 = vadd.f32 %v5206_v44, %v2131_v58  ;;  %v2179_v42 = vmax.f32 %v2163_v35, 0.0  ;;  %v2180_v3 = vmax.f32 %v2164_v57, 0.0 }
 0x21e   :  { %3355 = vmatprep.mubr.msk.f32.mxu0 %vm2196_vm15, %v2167_v18  ;;  %v2636_v18 = vld [vmem:[%s5454_s9 + $0x30] sm:$0xff] }
 0x21f   :  { %3356 = vmatmul.mubr.msk.f32.gmra.mxu0 %vm2196_vm15, %v2168_v7  ;;  %v2178_v52 = vmax.f32 %v2162_v6, 0.0  ;;  %3418 = vmatprep.subr.mxu0 %v2636_v18  ;;  %v2634_v7 = vld [vmem:[%s5454_s9 + $0x20] sm:$0xff] }
 0x220   :  { %3419 = vmatpush3.msra.mxu0 %v2636_v18 }
 0x221   :  { %3420 = vmatprep.subr.mxu0 %v2635_v12 }
 0x222   :  { %3421 = vmatpush3.msra.mxu0 %v2635_v12 }
 0x223   :  { %3422 = vmatprep.subr.mxu0 %v2634_v7 }
 0x224   :  { %3423 = vmatpush3.msra.mxu0 %v2634_v7 }
 0x246   :  { %v3292_v5 = vpop.f32.mrf.mxu0 }
 0x247   :  { %v2099_v26 = vadd.f32 %v3292_v5, %v2098_v0  ;;  %v2632_v5 = vld [vmem:[%s5454_s9 + $0x10] sm:$0xff] }
 0x248   :  { %v1885_v25 = vpop.f32.mrf.mxu0 }
 0x249   :  { %v2096_v30 = vadd.f32 %v2095_v9, %v1885_v25  ;;  %v2154_v10 = vadd.f32 %v5206_v44, %v2099_v26  ;;  %v2633_v9 = vld [vmem:[%s5454_s9 + $0x18] sm:$0xff]  ;;  %v2631_v25 = vld [vmem:[%s5454_s9 + $0x8] sm:$0xff] }
 0x24a   :  { %3424 = vmatprep.subr.mxu0 %v2633_v9 }
 0x24b   :  { %v2153_v59 = vadd.f32 %v5206_v44, %v2096_v30  ;;  %v2170_v4 = vmax.f32 %v2154_v10, 0.0  ;;  %3425 = vmatpush3.msra.mxu0 %v2633_v9  ;;  %v2630_v10 = vld [vmem:[%s5454_s9] sm:$0xff] }
 0x24c   :  { %3426 = vmatprep.subr.mxu0 %v2632_v5 }
 0x24d   :  { %v2169_v34 = vmax.f32 %v2153_v59, 0.0  ;;  %3427 = vmatpush3.msra.mxu0 %v2632_v5 }
 0x24e   :  { %3428 = vmatprep.subr.mxu0 %v2631_v25 }
 0x24f   :  { %3358 = vmatprep.mubr.msk.f32.mxu0 %vm2196_vm15, %v2169_v34  ;;  %3429 = vmatpush3.msra.mxu0 %v2631_v25 }
 0x250   :  { %3359 = vmatmul.mubr.msk.f32.gmra.mxu0 %vm2196_vm15, %v2170_v4  ;;  %3430 = vmatprep.subr.mxu0 %v2630_v10 }
 0x251   :  { %3431 = vmatpush3.msra.mxu0 %v2630_v10 }
 0x274   :  { %v3295_v36 = vpop.f32.mrf.mxu0 }
 0x275   :  { %v2107_v17 = vadd.f32 %v3327_v47, %v3295_v36 }
 0x276   :  { %v1895_v43 = vpop.f32.mrf.mxu0 }
 0x277   :  { %v2104_v61 = vadd.f32 %v3326_v22, %v1895_v43  ;;  %v2156_v37 = vadd.f32 %v5206_v44, %v2107_v17 }
 0x279   :  { %v2155_v28 = vadd.f32 %v5206_v44, %v2104_v61  ;;  %v2172_v40 = vmax.f32 %v2156_v37, 0.0 }
 0x27b   :  { %v2171_v15 = vmax.f32 %v2155_v28, 0.0 }
 0x27d   :  { %3361 = vmatprep.mubr.msk.f32.mxu0 %vm2196_vm15, %v2171_v15 }
 0x27e   :  { %3362 = vmatmul.mubr.msk.f32.gmra.mxu0 %vm2196_vm15, %v2172_v40 }
 0x27f   :  { %3364 = vmatprep.mubr.msk.f32.mxu0 %vm2196_vm15, %v2173_v14 }
 0x282   :  { %3365 = vmatmul.mubr.msk.f32.gmra.mxu0 %vm2196_vm15, %v2174_v45 }
 0x283   :  { %3367 = vmatprep.mubr.msk.f32.mxu0 %vm2196_vm15, %v2175_v38 }
 0x286   :  { %3368 = vmatmul.mubr.msk.f32.gmra.mxu0 %vm2196_vm15, %v2176_v60  ;;  %v3107_v60 = vld [vmem:[%s5455_s8] ss:$0 sm:$0xff] }
 0x287   :  { %3370 = vmatprep.mubr.msk.f32.mxu0 %vm2196_vm15, %v2177_v54 }
 0x28a   :  { %3371 = vmatmul.mubr.msk.f32.gmra.mxu0 %vm2196_vm15, %v2178_v52 }
 0x28b   :  { %3373 = vmatprep.mubr.msk.f32.mxu0 %vm2196_vm15, %v2179_v42 }
 0x28e   :  { %3374 = vmatmul.mubr.msk.f32.gmra.mxu0 %vm2196_vm15, %v2180_v3 }
 0x2b8   :  { %v3354_v1 = vpop.f32.mrf.mxu0 }
 0x2b9   :  { %v2317_v63 = vadd.f32 %v3354_v1, %v5284_v46 }
 0x2ba   :  { %v2311_v8 = vpop.f32.mrf.mxu0 }
 0x2bb   :  { %v2312_v2 = vadd.f32 %v5284_v46, %v2311_v8  ;;  %v2391_v39 = vmax.f32 %v2317_v63, 0.0 }
 0x2bd   :  { %v2390_v44 = vmax.f32 %v2312_v2, 0.0 }
 0x2bf   :  { %3392 = vmatprep.mubr.msk.f32.mxu1 %vm2196_vm15, %v2390_v44 }
 0x2c0   :  { %3393 = vmatmul.mubr.msk.f32.vlgmr.msra.gmra.mxu1 %vm2196_vm15, %v2391_v39 }
 0x2df   :  { %v3357_v22 = vpop.f32.mrf.mxu0 }
 0x2e0   :  { %v2327_v47 = vadd.f32 %v3357_v22, %v5284_v46 }
 0x2e1   :  { %v2321_v11 = vpop.f32.mrf.mxu0 }
 0x2e2   :  { %v2322_v0 = vadd.f32 %v5284_v46, %v2321_v11  ;;  %v2393_v30 = vmax.f32 %v2327_v47, 0.0 }
 0x2e4   :  { %v2392_v26 = vmax.f32 %v2322_v0, 0.0 }
 0x2e6   :  { %3395 = vmatprep.mubr.msk.f32.mxu1 %vm2196_vm15, %v2392_v26 }
 0x2e7   :  { %3396 = vmatmul.mubr.msk.f32.gmra.mxu1 %vm2196_vm15, %v2393_v30 }
 0x310   :  { %v3360_v59 = vpop.f32.mrf.mxu0 }
 0x311   :  { %v2337_v4 = vadd.f32 %v3360_v59, %v5284_v46 }
 0x312   :  { %v2331_v34 = vpop.f32.mrf.mxu0 }
 0x313   :  { %v2332_v19 = vadd.f32 %v5284_v46, %v2331_v34  ;;  %v2395_v13 = vmax.f32 %v2337_v4, 0.0 }
 0x315   :  { %v2394_v20 = vmax.f32 %v2332_v19, 0.0 }
 0x317   :  { %3398 = vmatprep.mubr.msk.f32.mxu1 %vm2196_vm15, %v2394_v20 }
 0x318   :  { %3399 = vmatmul.mubr.msk.f32.gmra.mxu1 %vm2196_vm15, %v2395_v13 }
 0x33e   :  { %v3363_v53 = vpop.f32.mrf.mxu0 }
 0x33f   :  { %v2347_v31 = vadd.f32 %v3363_v53, %v5284_v46 }
 0x340   :  { %v2341_v24 = vpop.f32.mrf.mxu0 }
 0x341   :  { %v2342_v41 = vadd.f32 %v5284_v46, %v2341_v24  ;;  %v2397_v43 = vmax.f32 %v2347_v31, 0.0 }
 0x342   :  { %v3366_v36 = vpop.f32.mrf.mxu0 }
 0x343   :  { %v2396_v17 = vmax.f32 %v2342_v41, 0.0  ;;  %v2357_v56 = vadd.f32 %v3366_v36, %v5284_v46 }
 0x344   :  { %v2351_v61 = vpop.f32.mrf.mxu0 }
 0x345   :  { %v2352_v62 = vadd.f32 %v5284_v46, %v2351_v61  ;;  %3401 = vmatprep.mubr.msk.f32.mxu1 %vm2196_vm15, %v2396_v17  ;;  %v2399_v28 = vmax.f32 %v2357_v56, 0.0 }
 0x346   :  { %v3369_v29 = vpop.f32.mrf.mxu0  ;;  %3402 = vmatmul.mubr.msk.f32.gmra.mxu1 %vm2196_vm15, %v2397_v43 }
 0x347   :  { %v2398_v37 = vmax.f32 %v2352_v62, 0.0  ;;  %v2367_v49 = vadd.f32 %v3369_v29, %v5284_v46 }
 0x348   :  { %v2361_v16 = vpop.f32.mrf.mxu0 }
 0x349   :  { %v2362_v15 = vadd.f32 %v5284_v46, %v2361_v16  ;;  %3404 = vmatprep.mubr.msk.f32.mxu1 %vm2196_vm15, %v2398_v37  ;;  %v2401_v23 = vmax.f32 %v2367_v49, 0.0 }
 0x34a   :  { %v3372_v14 = vpop.f32.mrf.mxu0  ;;  %3405 = vmatmul.mubr.msk.f32.gmra.mxu1 %vm2196_vm15, %v2399_v28 }
 0x34b   :  { %v2400_v55 = vmax.f32 %v2362_v15, 0.0  ;;  %v2377_v40 = vadd.f32 %v3372_v14, %v5284_v46  ;;  %v5364_v15 = vld [vmem:[%s5456_s10] ss:$0 sm:$0xff] }
 0x34c   :  { %v2371_v33 = vpop.f32.mrf.mxu0 }
 0x34d   :  { %v2372_v21 = vadd.f32 %v5284_v46, %v2371_v33  ;;  %3407 = vmatprep.mubr.msk.f32.mxu1 %vm2196_vm15, %v2400_v55  ;;  %v2403_v50 = vmax.f32 %v2377_v40, 0.0 }
 0x34e   :  { %v3375_v45 = vpop.f32.mrf.mxu0  ;;  %3408 = vmatmul.mubr.msk.f32.gmra.mxu1 %vm2196_vm15, %v2401_v23 }
 0x34f   :  { %v2402_v58 = vmax.f32 %v2372_v21, 0.0  ;;  %v2387_v48 = vadd.f32 %v3375_v45, %v5284_v46 }
 0x350   :  { %v2381_v38 = vpop.f32.mrf.mxu0 }
 0x351   :  { %v2382_v51 = vadd.f32 %v5284_v46, %v2381_v38  ;;  %3410 = vmatprep.mubr.msk.f32.mxu1 %vm2196_vm15, %v2402_v58  ;;  %v2405_v54 = vmax.f32 %v2387_v48, 0.0 }
 0x352   :  { %3411 = vmatmul.mubr.msk.f32.gmra.mxu1 %vm2196_vm15, %v2403_v50 }
 0x353   :  { %v2404_v6 = vmax.f32 %v2382_v51, 0.0 }
 0x355   :  { %3413 = vmatprep.mubr.msk.f32.mxu1 %vm2196_vm15, %v2404_v6 }
 0x356   :  { %3414 = vmatmul.mubr.msk.f32.gmra.mxu1 %vm2196_vm15, %v2405_v54 }
 0x380   :  { %v3394_v32 = vpop.f32.mrf.mxu1 }
 0x381   :  { %v2541_v35 = vadd.f32 %v3394_v32, %v3107_v60 }
 0x382   :  { %v2535_v52 = vpop.f32.mrf.mxu1 }
 0x383   :  { %v2536_v57 = vadd.f32 %v3107_v60, %v2535_v52  ;;  %v2615_v3 = vmax.f32 %v2541_v35, 0.0 }
 0x385   :  { %v2614_v42 = vmax.f32 %v2536_v57, 0.0 }
 0x387   :  { %3432 = vmatprep.mubr.msk.f32.mxu0 %vm2196_vm15, %v2614_v42 }
 0x388   :  { %3433 = vmatmul.mubr.msk.f32.vlgmr.msra.gmra.mxu0 %vm2196_vm15, %v2615_v3 }
 0x3a7   :  { %v3397_v46 = vpop.f32.mrf.mxu1 }
 0x3a8   :  { %v2551_v1 = vadd.f32 %v3397_v46, %v3107_v60 }
 0x3a9   :  { %v2545_v63 = vpop.f32.mrf.mxu1 }
 0x3aa   :  { %v2546_v8 = vadd.f32 %v3107_v60, %v2545_v63  ;;  %v2617_v44 = vmax.f32 %v2551_v1, 0.0 }
 0x3ac   :  { %v2616_v2 = vmax.f32 %v2546_v8, 0.0 }
 0x3ae   :  { %3435 = vmatprep.mubr.msk.f32.mxu0 %vm2196_vm15, %v2616_v2 }
 0x3af   :  { %3436 = vmatmul.mubr.msk.f32.gmra.mxu0 %vm2196_vm15, %v2617_v44 }
 0x3d8   :  { %v3400_v39 = vpop.f32.mrf.mxu1 }
 0x3d9   :  { %v2561_v27 = vadd.f32 %v3400_v39, %v3107_v60 }
 0x3da   :  { %v2555_v18 = vpop.f32.mrf.mxu1 }
 0x3db   :  { %v2556_v12 = vadd.f32 %v3107_v60, %v2555_v18  ;;  %v2619_v22 = vmax.f32 %v2561_v27, 0.0 }
 0x3dd   :  { %v2618_v7 = vmax.f32 %v2556_v12, 0.0 }
 0x3df   :  { %3438 = vmatprep.mubr.msk.f32.mxu0 %vm2196_vm15, %v2618_v7 }
 0x3e0   :  { %3439 = vmatmul.mubr.msk.f32.gmra.mxu0 %vm2196_vm15, %v2619_v22 }
 0x406   :  { %v3403_v9 = vpop.f32.mrf.mxu1 }
 0x407   :  { %v2571_v47 = vadd.f32 %v3403_v9, %v3107_v60 }
 0x408   :  { %v2565_v11 = vpop.f32.mrf.mxu1 }
 0x409   :  { %v2566_v0 = vadd.f32 %v3107_v60, %v2565_v11  ;;  %v2621_v25 = vmax.f32 %v2571_v47, 0.0 }
 0x40a   :  { %v3406_v5 = vpop.f32.mrf.mxu1 }
 0x40b   :  { %v2620_v26 = vmax.f32 %v2566_v0, 0.0  ;;  %v2581_v30 = vadd.f32 %v3406_v5, %v3107_v60 }
 0x40c   :  { %v2575_v10 = vpop.f32.mrf.mxu1 }
 0x40d   :  { %v2576_v59 = vadd.f32 %v3107_v60, %v2575_v10  ;;  %3441 = vmatprep.mubr.msk.f32.mxu0 %vm2196_vm15, %v2620_v26  ;;  %v2623_v19 = vmax.f32 %v2581_v30, 0.0 }
 0x40e   :  { %v3409_v4 = vpop.f32.mrf.mxu1  ;;  %3442 = vmatmul.mubr.msk.f32.gmra.mxu0 %vm2196_vm15, %v2621_v25 }
 0x40f   :  { %v2622_v34 = vmax.f32 %v2576_v59, 0.0  ;;  %v2591_v20 = vadd.f32 %v3409_v4, %v3107_v60 }
 0x410   :  { %v2585_v13 = vpop.f32.mrf.mxu1 }
 0x411   :  { %v2586_v53 = vadd.f32 %v3107_v60, %v2585_v13  ;;  %3444 = vmatprep.mubr.msk.f32.mxu0 %vm2196_vm15, %v2622_v34  ;;  %v2625_v41 = vmax.f32 %v2591_v20, 0.0 }
 0x412   :  { %v3412_v31 = vpop.f32.mrf.mxu1  ;;  %3445 = vmatmul.mubr.msk.f32.gmra.mxu0 %vm2196_vm15, %v2623_v19 }
 0x413   :  { %v2624_v24 = vmax.f32 %v2586_v53, 0.0  ;;  %v2601_v36 = vadd.f32 %v3412_v31, %v3107_v60 }
 0x414   :  { %v2595_v17 = vpop.f32.mrf.mxu1 }
 0x415   :  { %v2596_v43 = vadd.f32 %v3107_v60, %v2595_v17  ;;  %3447 = vmatprep.mubr.msk.f32.mxu0 %vm2196_vm15, %v2624_v24  ;;  %v2627_v62 = vmax.f32 %v2601_v36, 0.0 }
 0x416   :  { %v3415_v56 = vpop.f32.mrf.mxu1  ;;  %3448 = vmatmul.mubr.msk.f32.gmra.mxu0 %vm2196_vm15, %v2625_v41 }
 0x417   :  { %v2626_v61 = vmax.f32 %v2596_v43, 0.0  ;;  %v2611_v29 = vadd.f32 %v3415_v56, %v3107_v60 }
 0x418   :  { %v2605_v37 = vpop.f32.mrf.mxu1 }
 0x419   :  { %v2606_v28 = vadd.f32 %v3107_v60, %v2605_v37  ;;  %3450 = vmatprep.mubr.msk.f32.mxu0 %vm2196_vm15, %v2626_v61  ;;  %v2629_v16 = vmax.f32 %v2611_v29, 0.0 }
 0x41a   :  { %3451 = vmatmul.mubr.msk.f32.gmra.mxu0 %vm2196_vm15, %v2627_v62 }
 0x41b   :  { %v2628_v49 = vmax.f32 %v2606_v28, 0.0 }
 0x41d   :  { %3453 = vmatprep.mubr.msk.f32.mxu0 %vm2196_vm15, %v2628_v49 }
 0x41e   :  { %3454 = vmatmul.mubr.msk.f32.gmra.mxu0 %vm2196_vm15, %v2629_v16 }
 0x448   :  { %v3434_v14 = vpop.f32.mrf.mxu0 }
 0x449   :  { %v2765_v55 = vadd.f32 %v3434_v14, %v5364_v15 }
 0x44a   :  { %v2759_v23 = vpop.f32.mrf.mxu0 }
 0x44b   :  { %v3142_v40 = vmul.f32 -1.442695, %v2765_v55  ;;  %v2760_v33 = vadd.f32 %v5364_v15, %v2759_v23 }
 0x44d   :  { %3610 = vpow2.f32 %v3142_v40  ;;  %v3141_v21 = vmul.f32 -1.442695, %v2760_v33 }
 0x44f   :  { %3612 = vpow2.f32 %v3141_v21 }
 0x45a   :  { %v3611_v45 = vpop.eup %3610 }
 0x45b   :  { %v2887_v58 = vadd.f32 1.0, %v3611_v45 }
 0x45c   :  { %v3613_v50 = vpop.eup %3612 }
 0x45d   :  { %3614 = vrcp.f32 %v2887_v58  ;;  %v2886_v48 = vadd.f32 1.0, %v3613_v50 }
 0x45f   :  { %3616 = vrcp.f32 %v2886_v48 }
 0x46a   :  { %v3615_v51 = vpop.eup %3614 }
 0x46b   :  { %v2935_v54 = vmul.f32 1.002, %v3615_v51 }
 0x46c   :  { %v3617_v32 = vpop.eup %3616 }
 0x46d   :  { %v3158_v57 = vadd.f32 -0.001, %v2935_v54  ;;  %v2934_v42 = vmul.f32 1.002, %v3617_v32 }
 0x46f   :  { %v3437_v38 = vpop.f32.mrf.mxu0  ;;  %2968 = vst.msk [vmem:[%s5457_s11 + $0x8] sm:$0xff] %vm2966_vm14, %v3158_v57  ;;  %v3157_v46 = vadd.f32 -0.001, %v2934_v42 }
 0x470   :  { %v2775_v6 = vadd.f32 %v3437_v38, %v5364_v15 }
 0x471   :  { %v2769_v60 = vpop.f32.mrf.mxu0  ;;  %2967 = vst.msk [vmem:[%s5457_s11] sm:$0xff] %vm2966_vm14, %v3157_v46 }
 0x472   :  { %v3144_v35 = vmul.f32 -1.442695, %v2775_v6  ;;  %v2770_v52 = vadd.f32 %v5364_v15, %v2769_v60 }
 0x474   :  { %3618 = vpow2.f32 %v3144_v35  ;;  %v3143_v3 = vmul.f32 -1.442695, %v2770_v52 }
 0x476   :  { %3620 = vpow2.f32 %v3143_v3 }
 0x481   :  { %v3619_v1 = vpop.eup %3618 }
 0x482   :  { %v2889_v63 = vadd.f32 1.0, %v3619_v1 }
 0x483   :  { %v3621_v8 = vpop.eup %3620 }
 0x484   :  { %3622 = vrcp.f32 %v2889_v63  ;;  %v2888_v2 = vadd.f32 1.0, %v3621_v8 }
 0x486   :  { %3624 = vrcp.f32 %v2888_v2 }
 0x491   :  { %v3623_v44 = vpop.eup %3622 }
 0x492   :  { %v2937_v39 = vmul.f32 1.002, %v3623_v44 }
 0x493   :  { %v3625_v27 = vpop.eup %3624 }
 0x494   :  { %v3160_v18 = vadd.f32 -0.001, %v2937_v39  ;;  %v2936_v12 = vmul.f32 1.002, %v3625_v27 }
 0x496   :  { %2970 = vst.msk [vmem:[%s5457_s11 + $0x18] sm:$0xff] %vm2966_vm14, %v3160_v18  ;;  %v3159_v7 = vadd.f32 -0.001, %v2936_v12 }
 0x498   :  { %2969 = vst.msk [vmem:[%s5457_s11 + $0x10] sm:$0xff] %vm2966_vm14, %v3159_v7 }
 0x4a0   :  { %v3440_v22 = vpop.f32.mrf.mxu0 }
 0x4a1   :  { %v2785_v9 = vadd.f32 %v3440_v22, %v5364_v15 }
 0x4a2   :  { %v2779_v47 = vpop.f32.mrf.mxu0 }
 0x4a3   :  { %v3146_v11 = vmul.f32 -1.442695, %v2785_v9  ;;  %v2780_v0 = vadd.f32 %v5364_v15, %v2779_v47 }
 0x4a5   :  { %3626 = vpow2.f32 %v3146_v11  ;;  %v3145_v5 = vmul.f32 -1.442695, %v2780_v0 }
 0x4a7   :  { %3628 = vpow2.f32 %v3145_v5 }
 0x4b2   :  { %v3627_v26 = vpop.eup %3626 }
 0x4b3   :  { %v2891_v25 = vadd.f32 1.0, %v3627_v26 }
 0x4b4   :  { %v3629_v30 = vpop.eup %3628 }
 0x4b5   :  { %3630 = vrcp.f32 %v2891_v25  ;;  %v2890_v10 = vadd.f32 1.0, %v3629_v30 }
 0x4b7   :  { %3632 = vrcp.f32 %v2890_v10 }
 0x4c2   :  { %v3631_v59 = vpop.eup %3630 }
 0x4c3   :  { %v2939_v4 = vmul.f32 1.002, %v3631_v59 }
 0x4c4   :  { %v3633_v34 = vpop.eup %3632 }
 0x4c5   :  { %v3162_v19 = vadd.f32 -0.001, %v2939_v4  ;;  %v2938_v20 = vmul.f32 1.002, %v3633_v34 }
 0x4c7   :  { %2972 = vst.msk [vmem:[%s5457_s11 + $0x28] sm:$0xff] %vm2966_vm14, %v3162_v19  ;;  %v3161_v13 = vadd.f32 -0.001, %v2938_v20 }
 0x4c9   :  { %2971 = vst.msk [vmem:[%s5457_s11 + $0x20] sm:$0xff] %vm2966_vm14, %v3161_v13 }
 0x4ce   :  { %v3443_v53 = vpop.f32.mrf.mxu0 }
 0x4cf   :  { %v2795_v31 = vadd.f32 %v3443_v53, %v5364_v15 }
 0x4d0   :  { %v2789_v24 = vpop.f32.mrf.mxu0 }
 0x4d1   :  { %v3148_v41 = vmul.f32 -1.442695, %v2795_v31  ;;  %v2790_v36 = vadd.f32 %v5364_v15, %v2789_v24 }
 0x4d2   :  { %v3446_v17 = vpop.f32.mrf.mxu0 }
 0x4d3   :  { %3634 = vpow2.f32 %v3148_v41  ;;  %v3147_v43 = vmul.f32 -1.442695, %v2790_v36  ;;  %v2805_v56 = vadd.f32 %v3446_v17, %v5364_v15 }
 0x4d4   :  { %v2799_v61 = vpop.f32.mrf.mxu0 }
 0x4d5   :  { %3636 = vpow2.f32 %v3147_v43  ;;  %v3150_v62 = vmul.f32 -1.442695, %v2805_v56  ;;  %v2800_v29 = vadd.f32 %v5364_v15, %v2799_v61 }
 0x4d6   :  { %v3449_v37 = vpop.f32.mrf.mxu0 }
 0x4d7   :  { %3638 = vpow2.f32 %v3150_v62  ;;  %v3149_v28 = vmul.f32 -1.442695, %v2800_v29  ;;  %v2815_v49 = vadd.f32 %v3449_v37, %v5364_v15 }
 0x4d8   :  { %v2809_v16 = vpop.f32.mrf.mxu0 }
 0x4d9   :  { %3640 = vpow2.f32 %v3149_v28  ;;  %v3152_v14 = vmul.f32 -1.442695, %v2815_v49  ;;  %v2810_v55 = vadd.f32 %v5364_v15, %v2809_v16 }
 0x4da   :  { %v3452_v23 = vpop.f32.mrf.mxu0 }
 0x4db   :  { %3642 = vpow2.f32 %v3152_v14  ;;  %v3151_v40 = vmul.f32 -1.442695, %v2810_v55  ;;  %v2825_v33 = vadd.f32 %v3452_v23, %v5364_v15 }
 0x4dc   :  { %v2819_v21 = vpop.f32.mrf.mxu0 }
 0x4dd   :  { %3644 = vpow2.f32 %v3151_v40  ;;  %v3154_v45 = vmul.f32 -1.442695, %v2825_v33  ;;  %v2820_v58 = vadd.f32 %v5364_v15, %v2819_v21 }
 0x4de   :  { %v3455_v50 = vpop.f32.mrf.mxu0 }
 0x4df   :  { %3646 = vpow2.f32 %v3154_v45  ;;  %v3153_v48 = vmul.f32 -1.442695, %v2820_v58  ;;  %v2835_v38 = vadd.f32 %v3455_v50, %v5364_v15 }
 0x4e0   :  { %v3635_v51 = vpop.eup %3634  ;;  %v2829_v6 = vpop.f32.mrf.mxu0 }
 0x4e1   :  { %v2893_v54 = vadd.f32 1.0, %v3635_v51  ;;  %3648 = vpow2.f32 %v3153_v48  ;;  %v3156_v60 = vmul.f32 -1.442695, %v2835_v38  ;;  %v2830_v32 = vadd.f32 %v5364_v15, %v2829_v6 }
 0x4e2   :  { %v3637_v35 = vpop.eup %3636 }
 0x4e3   :  { %3650 = vrcp.f32 %v2893_v54  ;;  %v2892_v52 = vadd.f32 1.0, %v3637_v35  ;;  %v3155_v57 = vmul.f32 -1.442695, %v2830_v32 }
 0x4e4   :  { %v3639_v42 = vpop.eup %3638  ;;  %3652 = vpow2.f32 %v3156_v60 }
 0x4e5   :  { %3654 = vrcp.f32 %v2892_v52  ;;  %v2895_v3 = vadd.f32 1.0, %v3639_v42 }
 0x4e6   :  { %v3641_v46 = vpop.eup %3640  ;;  %3656 = vpow2.f32 %v3155_v57 }
 0x4e7   :  { %3658 = vrcp.f32 %v2895_v3  ;;  %v2894_v1 = vadd.f32 1.0, %v3641_v46 }
 0x4e8   :  { %v3643_v63 = vpop.eup %3642 }
 0x4e9   :  { %3660 = vrcp.f32 %v2894_v1  ;;  %v2897_v8 = vadd.f32 1.0, %v3643_v63 }
 0x4ea   :  { %v3645_v2 = vpop.eup %3644 }
 0x4eb   :  { %3662 = vrcp.f32 %v2897_v8  ;;  %v2896_v44 = vadd.f32 1.0, %v3645_v2 }
 0x4ec   :  { %v3647_v39 = vpop.eup %3646 }
 0x4ed   :  { %3664 = vrcp.f32 %v2896_v44  ;;  %v2899_v15 = vadd.f32 1.0, %v3647_v39 }
 0x4ee   :  { %v3649_v27 = vpop.eup %3648 }
 0x4ef   :  { %3666 = vrcp.f32 %v2899_v15  ;;  %v2898_v18 = vadd.f32 1.0, %v3649_v27 }
 0x4f0   :  { %v3651_v12 = vpop.eup %3650 }
 0x4f1   :  { %v3653_v7 = vpop.eup %3652  ;;  %v2941_v22 = vmul.f32 1.002, %v3651_v12  ;;  %3668 = vrcp.f32 %v2898_v18 }
 0x4f2   :  { %v3655_v9 = vpop.eup %3654  ;;  %v2901_v47 = vadd.f32 1.0, %v3653_v7 }
 0x4f3   :  { %v3657_v11 = vpop.eup %3656  ;;  %v3164_v0 = vadd.f32 -0.001, %v2941_v22  ;;  %v2940_v5 = vmul.f32 1.002, %v3655_v9 }
 0x4f4   :  { %v3659_v26 = vpop.eup %3658  ;;  %3670 = vrcp.f32 %v2901_v47  ;;  %v2900_v25 = vadd.f32 1.0, %v3657_v11 }
 0x4f5   :  { %2974 = vst.msk [vmem:[%s5457_s11 + $0x38] sm:$0xff] %vm2966_vm14, %v3164_v0  ;;  %v3163_v30 = vadd.f32 -0.001, %v2940_v5  ;;  %v2943_v10 = vmul.f32 1.002, %v3659_v26 }
 0x4f6   :  { %v3661_v59 = vpop.eup %3660  ;;  %3672 = vrcp.f32 %v2900_v25 }
 0x4f7   :  { %2973 = vst.msk [vmem:[%s5457_s11 + $0x30] sm:$0xff] %vm2966_vm14, %v3163_v30  ;;  %v3166_v4 = vadd.f32 -0.001, %v2943_v10  ;;  %v2942_v34 = vmul.f32 1.002, %v3661_v59 }
 0x4f8   :  { %v3663_v19 = vpop.eup %3662 }
 0x4f9   :  { %2976 = vst.msk [vmem:[%s5457_s11 + $0x48] sm:$0xff] %vm2966_vm14, %v3166_v4  ;;  %v3165_v20 = vadd.f32 -0.001, %v2942_v34  ;;  %v2945_v13 = vmul.f32 1.002, %v3663_v19 }
 0x4fa   :  { %v3665_v53 = vpop.eup %3664 }
 0x4fb   :  { %2975 = vst.msk [vmem:[%s5457_s11 + $0x40] sm:$0xff] %vm2966_vm14, %v3165_v20  ;;  %v3168_v31 = vadd.f32 -0.001, %v2945_v13  ;;  %v2944_v24 = vmul.f32 1.002, %v3665_v53 }
 0x4fc   :  { %v3667_v41 = vpop.eup %3666 }
 0x4fd   :  { %2978 = vst.msk [vmem:[%s5457_s11 + $0x58] sm:$0xff] %vm2966_vm14, %v3168_v31  ;;  %v3167_v36 = vadd.f32 -0.001, %v2944_v24  ;;  %v2947_v17 = vmul.f32 1.002, %v3667_v41 }
 0x4fe   :  { %v3669_v43 = vpop.eup %3668 }
 0x4ff   :  { %2977 = vst.msk [vmem:[%s5457_s11 + $0x50] sm:$0xff] %vm2966_vm14, %v3167_v36  ;;  %v3170_v56 = vadd.f32 -0.001, %v2947_v17  ;;  %v2946_v61 = vmul.f32 1.002, %v3669_v43 }
 0x501   :  { %v3671_v62 = vpop.eup %3670  ;;  %2980 = vst.msk [vmem:[%s5457_s11 + $0x68] sm:$0xff] %vm2966_vm14, %v3170_v56  ;;  %v3169_v29 = vadd.f32 -0.001, %v2946_v61 }
 0x502   :  { %v2949_v37 = vmul.f32 1.002, %v3671_v62 }
 0x503   :  { %v3673_v28 = vpop.eup %3672  ;;  %2979 = vst.msk [vmem:[%s5457_s11 + $0x60] sm:$0xff] %vm2966_vm14, %v3169_v29 }
 0x504   :  { %v3172_v49 = vadd.f32 -0.001, %v2949_v37  ;;  %v2948_v16 = vmul.f32 1.002, %v3673_v28 }
 0x506   :  { %2982 = vst.msk [vmem:[%s5457_s11 + $0x78] sm:$0xff] %vm2966_vm14, %v3172_v49  ;;  %v3171_v14 = vadd.f32 -0.001, %v2948_v16 }
 0x508   :  { %2981 = vst.msk [vmem:[%s5457_s11 + $0x70] sm:$0xff] %vm2966_vm14, %v3171_v14 }

</bundles_post_ra>
